<compile_context>
chip_gen: v7x
topology: tpu7x:2x2x1
jax: 0.10.0
libtpu: 0.0.40
codegen_flags: <defaults>
</compile_context>

<pallas_src>
import math
import numpy as np
import jax
import jax.numpy as jnp
from jax.experimental import pallas as pl
from jax.experimental.pallas import tpu as pltpu

OUT_HW = 28            # nn.Upsample(size=(28, 28))
OO = OUT_HW * OUT_HW   # 784 output pixels (= 6*128 + 16 lanes; full-dim block, no padding)
C_OUT = 512            # nn.Conv2d(feature_dims, 512, kernel_size=1, padding=1)
CUBIC_A = -0.75        # PyTorch bicubic coefficient


# ----------------------------------------------------------------------------
# Bicubic interpolation operator, exactly like PyTorch upsample_bicubic2d
# (align_corners=False, a=-0.75, clamped border reads).
# ----------------------------------------------------------------------------
def _cubic1(x, a=CUBIC_A):
    return ((a + 2.0) * x - (a + 3.0)) * x * x + 1.0


def _cubic2(x, a=CUBIC_A):
    return ((a * x - 5.0 * a) * x + 8.0 * a) * x - 4.0 * a


def bicubic_matrix(in_size, out_size):
    """(out_size, in_size) linear operator == torch bicubic, align_corners=False."""
    mat = np.zeros((out_size, in_size), dtype=np.float64)
    scale = in_size / out_size
    for o in range(out_size):
        real = scale * (o + 0.5) - 0.5          # align_corners=False source coord
        idx = int(math.floor(real))
        t = real - idx
        coeffs = (_cubic2(t + 1.0), _cubic1(t), _cubic1(1.0 - t), _cubic2(2.0 - t))
        for k in range(4):
            j = min(max(idx - 1 + k, 0), in_size - 1)   # clamped border access
            mat[o, j] += coeffs[k]
    return mat


# Module-level cache: the pad+upsample operators depend only on (H, W).
_OP_CACHE = {}


def _pad_upsample_ops(H, W):
    """Returns (M^T (HW, 784) f32, rowsum u1 (784,) f32), cached per (H, W)."""
    key = (H, W)
    if key not in _OP_CACHE:
        Hp, Wp = H + 2, W + 2
        a_h = bicubic_matrix(Hp, OUT_HW)                    # (28, Hp)
        a_w = bicubic_matrix(Wp, OUT_HW)                    # (28, Wp)
        ut = np.kron(a_h, a_w)                              # (784, Hp*Wp)
        interior = np.array([(h + 1) * Wp + (w + 1)
                             for h in range(H) for w in range(W)])
        m_t = np.ascontiguousarray(ut[:, interior].T).astype(np.float32)   # (HW, 784)
        u1 = ut.sum(axis=1).astype(np.float32)                             # (784,)
        _OP_CACHE[key] = (m_t, u1)
    return _OP_CACHE[key]


def _tensorcores_per_chip():
    """Best-effort TensorCore count (2 on v7x); falls back to 1 on any failure."""
    try:
        info = pltpu.get_tpu_info()
    except Exception:
        return 1
    for attr in ("num_tensorcores", "tensorcores_per_chip", "num_cores", "core_count"):
        v = getattr(info, attr, None)
        if isinstance(v, int) and 1 <= v <= 8:
            return v
    return 1


# ----------------------------------------------------------------------------
# Pallas kernel: one (batch element, output-channel block) per grid step.
# ----------------------------------------------------------------------------
def _decoder_kernel(x_ref, w_ref, m_ref, b_ref, u1_ref, o_ref):
    # x_ref  : (1, C_in, HW)   f32   one batch element, channel-major (NCHW flat)
    # w_ref  : (c_blk, C_in)   f32   1x1 conv weight rows for this channel block
    # m_ref  : (HW, 784)       bf16  fused (zero-pad -> bicubic) operator, transposed
    # b_ref  : (c_blk, 1)      f32   conv bias column
    # u1_ref : (1, 784)        f32   rowsum of the pad+bicubic operator
    # o_ref  : (1, c_blk, 784) f32
    x = x_ref[0].astype(jnp.bfloat16)                        # in-kernel cast (no HBM round-trip)
    w = w_ref[...].astype(jnp.bfloat16)
    y = jnp.dot(w, x, preferred_element_type=jnp.float32)    # 1x1 conv (no bias), MXU
    up = jnp.dot(y.astype(jnp.bfloat16), m_ref[...],
                 preferred_element_type=jnp.float32)         # pad + bicubic, MXU
    # bias folded as a rank-1 add on the VPU (hides under the MXU)
    o_ref[0] = up + b_ref[...] * u1_ref[...]


@jax.jit
def decoder_forward(x_nchw, conv_w, conv_b):
    """x_nchw: (N, C_in, H, W) f32; conv_w: (512, C_in, 1, 1); conv_b: (512,)."""
    N, C_in, H, W = x_nchw.shape
    HW = H * W

    # ---- trace-time constants (cached numpy, baked by jit) -----------------
    m_t_np, u1_np = _pad_upsample_ops(H, W)
    m_t = jnp.asarray(m_t_np, dtype=jnp.bfloat16)                   # (HW, 784)
    u1_row = jnp.asarray(u1_np.reshape(1, OO), dtype=jnp.float32)   # (1, 784)

    # ---- channel-major operands: free reshapes only, casts happen in-kernel
    x_cm = x_nchw.reshape(N, C_in, HW)                               # (N, Cin, HW) f32
    w_cm = conv_w.reshape(C_OUT, C_in)                               # (512, Cin)   f32
    b_col = conv_b.reshape(C_OUT, 1).astype(jnp.float32)             # (512, 1)

    # Batch axis is parallel.  Split the output-channel dim when the chip has
    # two TensorCores (v7x) or when N == 1, so both cores have work; on
    # single-TC v5e/v6e extra grid steps would only add per-step overhead.
    n_cblk = 2 if (N == 1 or _tensorcores_per_chip() >= 2) else 1
    c_blk = C_OUT // n_cblk

    const_buf = pl.Buffered(1)   # constant-index operands: no dead second buffer

    out = pl.pallas_call(
        _decoder_kernel,
        out_shape=jax.ShapeDtypeStruct((N, C_OUT, OO), jnp.float32),
        grid_spec=pltpu.PrefetchScalarGridSpec(
            num_scalar_prefetch=0,
            grid=(N, n_cblk),                 # n outermost: x / m_t blocks reused across c
            in_specs=[
                pl.BlockSpec((1, C_in, HW), lambda n, c: (n, 0, 0)),
                pl.BlockSpec((c_blk, C_in), lambda n, c: (c, 0)),
                pl.BlockSpec((HW, OO), lambda n, c: (0, 0), pipeline_mode=const_buf),
                pl.BlockSpec((c_blk, 1), lambda n, c: (c, 0)),
                pl.BlockSpec((1, OO), lambda n, c: (0, 0), pipeline_mode=const_buf),
            ],
            out_specs=pl.BlockSpec((1, c_blk, OO), lambda n, c: (n, c, 0)),
        ),
        compiler_params=pltpu.CompilerParams(
            dimension_semantics=("parallel", "parallel")),
    )(x_cm, w_cm, m_t, b_col, u1_row)

    # (N, 512, 784) -> (N, 512, 28, 28): free reshape, already NCHW.
    return out.reshape(N, C_OUT, OUT_HW, OUT_HW)


if __name__ == "__main__":
    key = jax.random.PRNGKey(0)
    kx, kw, kb = jax.random.split(key, 3)

    # shapes consistent with Decoder(feature_dims=384): N=2, 16x16 feature map
    N, C_in, H, W = 2, 384, 16, 16
    x = jax.random.normal(kx, (N, C_in, H, W), dtype=jnp.float32)
    conv_w = (jax.random.normal(kw, (C_OUT, C_in, 1, 1), dtype=jnp.float32)
              / np.sqrt(C_in).astype(np.float32))
    conv_b = jax.random.normal(kb, (C_OUT,), dtype=jnp.float32) * 0.1

    out = jax.block_until_ready(decoder_forward(x, conv_w, conv_b))
    assert out.shape == (N, C_OUT, OUT_HW, OUT_HW), out.shape

    # pure-JAX fp32 reference: zero-pad, 1x1 conv + bias, separable bicubic 28x28
    Hp, Wp = H + 2, W + 2
    a_h = jnp.asarray(bicubic_matrix(Hp, OUT_HW), dtype=jnp.float32)   # (28, Hp)
    a_w = jnp.asarray(bicubic_matrix(Wp, OUT_HW), dtype=jnp.float32)   # (28, Wp)
    xp = jnp.pad(x, ((0, 0), (0, 0), (1, 1), (1, 1)))
    conv = (jnp.einsum("nchw,oc->nohw", xp, conv_w[:, :, 0, 0])
            + conv_b[None, :, None, None])
    ref = jnp.einsum("yi,ncix,jx->ncyj", a_h, conv, a_w)
    np.testing.assert_allclose(np.asarray(out), np.asarray(ref), rtol=5e-2, atol=5e-2)

    print("KERNEL_OK")
</pallas_src>

<mosaic_0001>
module attributes {stable_mosaic.version = 11 : i64} {
  func.func @_decoder_kernel(%arg0: i32, %arg1: i32, %arg2: memref<1x384x256xf32, #tpu.memory_space<vmem>>, %arg3: memref<512x384xf32, #tpu.memory_space<vmem>>, %arg4: memref<256x784xbf16, #tpu.memory_space<vmem>>, %arg5: memref<512x1xf32, #tpu.memory_space<vmem>>, %arg6: memref<1x784xf32, #tpu.memory_space<vmem>>, %arg7: memref<1x512x784xf32, #tpu.memory_space<vmem>>) attributes {dimension_semantics = [#tpu.dimension_semantics<parallel>, #tpu.dimension_semantics<parallel>], iteration_bounds = array<i64: 2, 1>, scalar_prefetch = 0 : i64, scratch_operands = 0 : i64, tpu.core_type = #tpu.core_type<tc>, window_params = [{transform_indices = @transform_0, window_bounds = array<i64: 1, 384, 256>}, {transform_indices = @transform_1, window_bounds = array<i64: 512, 384>}, {pipeline_mode = #tpu.pipeline_mode<synchronous>, transform_indices = @transform_2, window_bounds = array<i64: 256, 784>}, {transform_indices = @transform_3, window_bounds = array<i64: 512, 1>}, {pipeline_mode = #tpu.pipeline_mode<synchronous>, transform_indices = @transform_4, window_bounds = array<i64: 1, 784>}, {transform_indices = @transform_5, window_bounds = array<i64: 1, 512, 784>}]} {
    %c0 = arith.constant 0 : index
    %c0_0 = arith.constant 0 : index
    %c0_1 = arith.constant 0 : index
    %0 = vector.load %arg2[%c0, %c0_0, %c0_1] : memref<1x384x256xf32, #tpu.memory_space<vmem>>, vector<1x384x256xf32>
    %1 = vector.shape_cast %0 : vector<1x384x256xf32> to vector<384x256xf32>
    %2 = arith.truncf %1 : vector<384x256xf32> to vector<384x256xbf16>
    %c0_2 = arith.constant 0 : index
    %c0_3 = arith.constant 0 : index
    %3 = vector.load %arg3[%c0_2, %c0_3] : memref<512x384xf32, #tpu.memory_space<vmem>>, vector<512x384xf32>
    %4 = arith.truncf %3 : vector<512x384xf32> to vector<512x384xbf16>
    %cst = arith.constant dense<0.000000e+00> : vector<512x256xf32>
    %5 = tpu.matmul %4, %2, %cst {dimension_numbers = #tpu.dot_dimension_numbers<[1], [0], [0], [1], [0, 0, 1, 1], [], []>} : vector<512x384xbf16>, vector<384x256xbf16>, vector<512x256xf32> -> vector<512x256xf32>
    %6 = arith.truncf %5 : vector<512x256xf32> to vector<512x256xbf16>
    %c0_4 = arith.constant 0 : index
    %c0_5 = arith.constant 0 : index
    %7 = vector.load %arg4[%c0_4, %c0_5] : memref<256x784xbf16, #tpu.memory_space<vmem>>, vector<256x784xbf16>
    %cst_6 = arith.constant dense<0.000000e+00> : vector<512x784xf32>
    %8 = tpu.matmul %6, %7, %cst_6 {dimension_numbers = #tpu.dot_dimension_numbers<[1], [0], [0], [1], [0, 0, 1, 1], [], []>} : vector<512x256xbf16>, vector<256x784xbf16>, vector<512x784xf32> -> vector<512x784xf32>
    %c0_7 = arith.constant 0 : index
    %c0_8 = arith.constant 0 : index
    %9 = vector.load %arg5[%c0_7, %c0_8] : memref<512x1xf32, #tpu.memory_space<vmem>>, vector<512x1xf32>
    %c0_9 = arith.constant 0 : index
    %c0_10 = arith.constant 0 : index
    %10 = vector.load %arg6[%c0_9, %c0_10] : memref<1x784xf32, #tpu.memory_space<vmem>>, vector<1x784xf32>
    %11 = vector.broadcast %9 : vector<512x1xf32> to vector<512x784xf32>
    %12 = vector.broadcast %10 : vector<1x784xf32> to vector<512x784xf32>
    %13 = arith.mulf %11, %12 : vector<512x784xf32>
    %14 = arith.addf %8, %13 : vector<512x784xf32>
    %c0_11 = arith.constant 0 : index
    %c0_12 = arith.constant 0 : index
    %c0_13 = arith.constant 0 : index
    %15 = vector.load %arg7[%c0_11, %c0_12, %c0_13] : memref<1x512x784xf32, #tpu.memory_space<vmem>>, vector<1x512x784xf32>
    %16 = vector.shape_cast %15 : vector<1x512x784xf32> to vector<512x784xf32>
    %17 = vector.shape_cast %14 : vector<512x784xf32> to vector<1x512x784xf32>
    tpu.vector_store %arg7[%c0_11, %c0_12, %c0_13], %17 {strides = array<i32>} : memref<1x512x784xf32, #tpu.memory_space<vmem>>, vector<1x512x784xf32>,
    return
  }
  func.func @transform_0(%arg0: i32, %arg1: i32) -> (i32, i32, i32) {
    %c0_i32 = arith.constant 0 : i32
    %c0_i32_0 = arith.constant 0 : i32
    %c0_i32_1 = arith.constant 0 : i32
    return %arg0, %c0_i32, %c0_i32_0 : i32, i32, i32
  }
  func.func @transform_1(%arg0: i32, %arg1: i32) -> (i32, i32) {
    %c0_i32 = arith.constant 0 : i32
    %c0_i32_0 = arith.constant 0 : i32
    return %arg1, %c0_i32 : i32, i32
  }
  func.func @transform_2(%arg0: i32, %arg1: i32) -> (i32, i32) {
    %c0_i32 = arith.constant 0 : i32
    %c0_i32_0 = arith.constant 0 : i32
    %c0_i32_1 = arith.constant 0 : i32
    return %c0_i32, %c0_i32_0 : i32, i32
  }
  func.func @transform_3(%arg0: i32, %arg1: i32) -> (i32, i32) {
    %c0_i32 = arith.constant 0 : i32
    %c0_i32_0 = arith.constant 0 : i32
    return %arg1, %c0_i32 : i32, i32
  }
  func.func @transform_4(%arg0: i32, %arg1: i32) -> (i32, i32) {
    %c0_i32 = arith.constant 0 : i32
    %c0_i32_0 = arith.constant 0 : i32
    %c0_i32_1 = arith.constant 0 : i32
    return %c0_i32, %c0_i32_0 : i32, i32
  }
  func.func @transform_5(%arg0: i32, %arg1: i32) -> (i32, i32, i32) {
    %c0_i32 = arith.constant 0 : i32
    %c0_i32_0 = arith.constant 0 : i32
    return %arg0, %arg1, %c0_i32 : i32, i32, i32
  }
}

</mosaic_0001>

<bundles_post_ra>
// kernel: decoder_forward.1
= control target key start
LH: loop header
LB: loop body
LE: loop exit
PB: predicated region body
PF: predicated region fallthrough
CT: control target
= control target key end

     0   :  { %s5484_s18 = smov 0   ;;  %s5486_s19 = smov 0   ;;  %s8733_s0 = inlined_call_operand.vmem [shape: f32[2,384,256], index: 0, kind: input, shape index: {}]   ;;  %s8734_s1 = inlined_call_operand.vmem [shape: f32[512,384], index: 1, kind: input, shape index: {}]   ;;  %s8735_s2 = inlined_call_operand.vmem [shape: bf16[256,784], index: 2, kind: input, shape index: {}]   ;;  %s8736_s3 = inlined_call_operand.vmem [shape: f32[512,1], index: 3, kind: input, shape index: {}]   ;;  %s8737_s4 = inlined_call_operand.vmem [shape: f32[1,784], index: 4, kind: input, shape index: {}]   ;;  %s8738_s5 = inlined_call_operand.vmem [shape: f32[2,512,784], index: 5, kind: output, shape index: {}]  }
   0x1   :  { %s5488_s20 = smov 0  }
   0x2 LB: > { %s27_s21 = sadd.s32 1, %s5447_s19  ;;  %p4993_p0 = scmp.ge.s32.totalorder %s5451_s20, 1  ;;  %s5451_s20 = sphi %s5488_s20, %s15_s20   ;;  %s5447_s19 = sphi %s5486_s19, %s9172_s19   ;;  %s5443_s18 = sphi %s5484_s18, %s9171_s18  }
   0x3   : > { %p29_p1 = scmp.ge.s32.totalorder %s27_s21, 2  ;;  %p224_p2 = scmp.lt.s32.totalorder %s5451_s20, 3 }
   0x5   : > { %s9174_s21 = smov (%p29_p1, %s27_s21), 0  ;;  %p225_p3 = pnand %p4993_p0, %p224_p2 }
   0x7   : > { %228 = sbr.rel (%p225_p3) target bundleno = 1538 (0x602), region = 40 }
   0xe   : > { %p268_p4 = scmp.lt.s32.totalorder %s5443_s18, 1  ;;  %v443_v0 = vld [vmem:[%s8734_s1 + $0x8] sm:$0xff]  ;;  %v446_v1 = vld [vmem:[%s8734_s1 + $0x20] sm:$0xff]  ;;  %vm4427_vm0 = vcmask 130048  }
   0xf   : > { %v635_v2 = vpack.c.bf16 %v446_v1, %v443_v0 }
  0x10   : > { %s9176_s18 = smov (!%p268_p4, %s5443_s18), 1 }
  0x11   : > { %762 = vmatprep.mubr.bf16.mxu0 %v635_v2  ;;  %s5238_s26 = smul.u32 768, %s9176_s18 }
  0x13   : > { %s5514_s29 = scalar_lea.vmem %s8733_s0, %s5238_s26 }
  0x14   : > { %v299_v3 = vld [vmem:[%s5514_s29 + $0x8] sm:$0xff]  ;;  %v301_v4 = vld [vmem:[%s5514_s29 + $0x18] sm:$0xff]  ;;  %v298_v5 = vld [vmem:[%s5514_s29] sm:$0xff] }
  0x15   : > { %v395_v6 = vpack.c.bf16 %v301_v4, %v299_v3  ;;  %v300_v7 = vld [vmem:[%s5514_s29 + $0x10] sm:$0xff]  ;;  %v303_v8 = vld [vmem:[%s5514_s29 + $0x28] sm:$0xff]  ;;  %v305_v9 = vld [vmem:[%s5514_s29 + $0x38] sm:$0xff] }
  0x16   : > { %v394_v10 = vpack.c.bf16 %v300_v7, %v298_v5  ;;  %v397_v11 = vpack.c.bf16 %v305_v9, %v303_v8  ;;  %v302_v12 = vld [vmem:[%s5514_s29 + $0x20] sm:$0xff]  ;;  %v304_v13 = vld [vmem:[%s5514_s29 + $0x30] sm:$0xff]  ;;  %v307_v14 = vld [vmem:[%s5514_s29 + $0x48] sm:$0xff] }
  0x17   : > { %730 = vmatprep.subr.bf16.mxu0 %v395_v6  ;;  %v309_v15 = vld [vmem:[%s5514_s29 + $0x58] sm:$0xff]  ;;  %v396_v16 = vpack.c.bf16 %v304_v13, %v302_v12  ;;  %v306_v18 = vld [vmem:[%s5514_s29 + $0x40] sm:$0xff]  ;;  %v308_v19 = vld [vmem:[%s5514_s29 + $0x50] sm:$0xff] }
  0x18   : > { %731 = vmatpush1.bf16.msra.mxu0 %v394_v10  ;;  %v399_v17 = vpack.c.bf16 %v309_v15, %v307_v14  ;;  %v311_v20 = vld [vmem:[%s5514_s29 + $0x68] sm:$0xff]  ;;  %v313_v21 = vld [vmem:[%s5514_s29 + $0x78] sm:$0xff]  ;;  %v398_v22 = vpack.c.bf16 %v308_v19, %v306_v18  ;;  %v310_v24 = vld [vmem:[%s5514_s29 + $0x60] sm:$0xff] }
  0x19   : > { %732 = vmatprep.subr.bf16.mxu0 %v397_v11  ;;  %v401_v23 = vpack.c.bf16 %v313_v21, %v311_v20  ;;  %v312_v25 = vld [vmem:[%s5514_s29 + $0x70] sm:$0xff]  ;;  %v315_v26 = vld [vmem:[%s5514_s29 + $0x88] sm:$0xff]  ;;  %v317_v27 = vld [vmem:[%s5514_s29 + $0x98] sm:$0xff] }
  0x1a   : > { %v400_v28 = vpack.c.bf16 %v312_v25, %v310_v24  ;;  %v403_v29 = vpack.c.bf16 %v317_v27, %v315_v26  ;;  %v314_v30 = vld [vmem:[%s5514_s29 + $0x80] sm:$0xff]  ;;  %v316_v31 = vld [vmem:[%s5514_s29 + $0x90] sm:$0xff]  ;;  %v319_v32 = vld [vmem:[%s5514_s29 + $0xa8] sm:$0xff] }
  0x1b   : > { %v321_v33 = vld [vmem:[%s5514_s29 + $0xb8] sm:$0xff]  ;;  %v402_v34 = vpack.c.bf16 %v316_v31, %v314_v30  ;;  %v318_v36 = vld [vmem:[%s5514_s29 + $0xa0] sm:$0xff]  ;;  %v320_v37 = vld [vmem:[%s5514_s29 + $0xb0] sm:$0xff] }
  0x1c   : > { %733 = vmatpush1.bf16.msra.mxu0 %v396_v16  ;;  %v405_v35 = vpack.c.bf16 %v321_v33, %v319_v32  ;;  %v323_v38 = vld [vmem:[%s5514_s29 + $0xc8] sm:$0xff]  ;;  %v325_v39 = vld [vmem:[%s5514_s29 + $0xd8] sm:$0xff]  ;;  %v404_v40 = vpack.c.bf16 %v320_v37, %v318_v36  ;;  %v322_v42 = vld [vmem:[%s5514_s29 + $0xc0] sm:$0xff] }
  0x1d   : > { %734 = vmatprep.subr.bf16.mxu0 %v399_v17  ;;  %v407_v41 = vpack.c.bf16 %v325_v39, %v323_v38  ;;  %v324_v43 = vld [vmem:[%s5514_s29 + $0xd0] sm:$0xff]  ;;  %v327_v44 = vld [vmem:[%s5514_s29 + $0xe8] sm:$0xff]  ;;  %v329_v45 = vld [vmem:[%s5514_s29 + $0xf8] sm:$0xff] }
  0x1e   : > { %v406_v46 = vpack.c.bf16 %v324_v43, %v322_v42  ;;  %v409_v47 = vpack.c.bf16 %v329_v45, %v327_v44  ;;  %v326_v48 = vld [vmem:[%s5514_s29 + $0xe0] sm:$0xff]  ;;  %v328_v49 = vld [vmem:[%s5514_s29 + $0xf0] sm:$0xff]  ;;  %v331_v50 = vld [vmem:[%s5514_s29 + $0x108] sm:$0xff] }
  0x1f   : > { %v333_v51 = vld [vmem:[%s5514_s29 + $0x118] sm:$0xff]  ;;  %v408_v52 = vpack.c.bf16 %v328_v49, %v326_v48  ;;  %v330_v54 = vld [vmem:[%s5514_s29 + $0x100] sm:$0xff]  ;;  %v332_v55 = vld [vmem:[%s5514_s29 + $0x110] sm:$0xff] }
  0x20   : > { %735 = vmatpush1.bf16.msra.mxu0 %v398_v22  ;;  %v411_v53 = vpack.c.bf16 %v333_v51, %v331_v50  ;;  %v335_v56 = vld [vmem:[%s5514_s29 + $0x128] sm:$0xff]  ;;  %v337_v57 = vld [vmem:[%s5514_s29 + $0x138] sm:$0xff]  ;;  %v410_v58 = vpack.c.bf16 %v332_v55, %v330_v54  ;;  %v334_v60 = vld [vmem:[%s5514_s29 + $0x120] sm:$0xff] }
  0x21   : > { %736 = vmatprep.subr.bf16.mxu0 %v401_v23  ;;  %v413_v59 = vpack.c.bf16 %v337_v57, %v335_v56  ;;  %v336_v61 = vld [vmem:[%s5514_s29 + $0x130] sm:$0xff]  ;;  %v339_v62 = vld [vmem:[%s5514_s29 + $0x148] sm:$0xff]  ;;  %v341_v63 = vld [vmem:[%s5514_s29 + $0x158] sm:$0xff] }
  0x22   : > { %v412_v0 = vpack.c.bf16 %v336_v61, %v334_v60  ;;  %v415_v1 = vpack.c.bf16 %v341_v63, %v339_v62  ;;  %v338_v2 = vld [vmem:[%s5514_s29 + $0x140] sm:$0xff]  ;;  %v340_v3 = vld [vmem:[%s5514_s29 + $0x150] sm:$0xff]  ;;  %v343_v4 = vld [vmem:[%s5514_s29 + $0x168] sm:$0xff] }
  0x23   : > { %v345_v5 = vld [vmem:[%s5514_s29 + $0x178] sm:$0xff]  ;;  %v342_v6 = vld [vmem:[%s5514_s29 + $0x160] sm:$0xff]  ;;  %v344_v7 = vld [vmem:[%s5514_s29 + $0x170] sm:$0xff]  ;;  %v414_v8 = vpack.c.bf16 %v340_v3, %v338_v2 }
  0x24   : > { %737 = vmatpush1.bf16.msra.mxu0 %v400_v28  ;;  %v347_v9 = vld [vmem:[%s5514_s29 + $0x188] sm:$0xff]  ;;  %v349_v10 = vld [vmem:[%s5514_s29 + $0x198] sm:$0xff]  ;;  %v417_v11 = vpack.c.bf16 %v345_v5, %v343_v4  ;;  %v346_v12 = vld [vmem:[%s5514_s29 + $0x180] sm:$0xff]  ;;  %v416_v14 = vpack.c.bf16 %v344_v7, %v342_v6 }
  0x25   : > { %738 = vmatprep.subr.bf16.mxu0 %v403_v29  ;;  %v348_v13 = vld [vmem:[%s5514_s29 + $0x190] sm:$0xff]  ;;  %v351_v15 = vld [vmem:[%s5514_s29 + $0x1a8] sm:$0xff]  ;;  %v353_v16 = vld [vmem:[%s5514_s29 + $0x1b8] sm:$0xff]  ;;  %v419_v17 = vpack.c.bf16 %v349_v10, %v347_v9 }
  0x26   : > { %v350_v18 = vld [vmem:[%s5514_s29 + $0x1a0] sm:$0xff]  ;;  %v352_v19 = vld [vmem:[%s5514_s29 + $0x1b0] sm:$0xff]  ;;  %v418_v20 = vpack.c.bf16 %v348_v13, %v346_v12  ;;  %v355_v21 = vld [vmem:[%s5514_s29 + $0x1c8] sm:$0xff]  ;;  %v421_v23 = vpack.c.bf16 %v353_v16, %v351_v15 }
  0x27   : > { %v357_v22 = vld [vmem:[%s5514_s29 + $0x1d8] sm:$0xff]  ;;  %v354_v24 = vld [vmem:[%s5514_s29 + $0x1c0] sm:$0xff]  ;;  %v356_v25 = vld [vmem:[%s5514_s29 + $0x1d0] sm:$0xff]  ;;  %v420_v26 = vpack.c.bf16 %v352_v19, %v350_v18 }
  0x28   : > { %739 = vmatpush1.bf16.msra.mxu0 %v402_v34  ;;  %v359_v27 = vld [vmem:[%s5514_s29 + $0x1e8] sm:$0xff]  ;;  %v361_v28 = vld [vmem:[%s5514_s29 + $0x1f8] sm:$0xff]  ;;  %v423_v29 = vpack.c.bf16 %v357_v22, %v355_v21  ;;  %v358_v30 = vld [vmem:[%s5514_s29 + $0x1e0] sm:$0xff]  ;;  %v422_v32 = vpack.c.bf16 %v356_v25, %v354_v24 }
  0x29   : > { %740 = vmatprep.subr.bf16.mxu0 %v405_v35  ;;  %v360_v31 = vld [vmem:[%s5514_s29 + $0x1f0] sm:$0xff]  ;;  %v363_v33 = vld [vmem:[%s5514_s29 + $0x208] sm:$0xff]  ;;  %v365_v34 = vld [vmem:[%s5514_s29 + $0x218] sm:$0xff]  ;;  %v425_v35 = vpack.c.bf16 %v361_v28, %v359_v27 }
  0x2a   : > { %v442_v36 = vld [vmem:[%s8734_s1] sm:$0xff]  ;;  %v445_v37 = vld [vmem:[%s8734_s1 + $0x18] sm:$0xff]  ;;  %v364_v39 = vld [vmem:[%s5514_s29 + $0x210] sm:$0xff]  ;;  %v424_v42 = vpack.c.bf16 %v360_v31, %v358_v30  ;;  %v427_v45 = vpack.c.bf16 %v365_v34, %v363_v33 }
  0x2b   : > { %v362_v38 = vld [vmem:[%s5514_s29 + $0x200] sm:$0xff]  ;;  %v367_v43 = vld [vmem:[%s5514_s29 + $0x228] sm:$0xff]  ;;  %v369_v44 = vld [vmem:[%s5514_s29 + $0x238] sm:$0xff] }
  0x2c   : > { %741 = vmatpush1.bf16.msra.mxu0 %v404_v40  ;;  %v449_v40 = vld [vmem:[%s8734_s1 + $0x38] sm:$0xff]  ;;  %v368_v48 = vld [vmem:[%s5514_s29 + $0x230] sm:$0xff]  ;;  %v426_v49 = vpack.c.bf16 %v364_v39, %v362_v38  ;;  %v371_v51 = vld [vmem:[%s5514_s29 + $0x248] sm:$0xff] }
  0x2d   : > { %742 = vmatprep.subr.bf16.mxu0 %v407_v41  ;;  %v452_v41 = vld [vmem:[%s8734_s1 + $0x50] sm:$0xff]  ;;  %v451_v55 = vld [vmem:[%s8734_s1 + $0x48] sm:$0xff]  ;;  %v458_v57 = vld [vmem:[%s8734_s1 + $0x80] sm:$0xff] }
  0x2e   : > { %v638_v50 = vpack.c.bf16 %v452_v41, %v449_v40  ;;  %v448_v54 = vld [vmem:[%s8734_s1 + $0x30] sm:$0xff]  ;;  %v455_v56 = vld [vmem:[%s8734_s1 + $0x68] sm:$0xff]  ;;  %v377_v63 = vld [vmem:[%s5514_s29 + $0x278] sm:$0xff] }
  0x2f   : > { %v372_v60 = vld [vmem:[%s5514_s29 + $0x250] sm:$0xff]  ;;  %v375_v62 = vld [vmem:[%s5514_s29 + $0x268] sm:$0xff]  ;;  %v641_v3 = vpack.c.bf16 %v458_v57, %v455_v56  ;;  %v381_v6 = vld [vmem:[%s5514_s29 + $0x298] sm:$0xff] }
  0x30   : > { %743 = vmatpush1.bf16.msra.mxu0 %v406_v46  ;;  %v634_v46 = vpack.c.bf16 %v445_v37, %v442_v36  ;;  %v376_v2 = vld [vmem:[%s5514_s29 + $0x270] sm:$0xff]  ;;  %v379_v5 = vld [vmem:[%s5514_s29 + $0x288] sm:$0xff]  ;;  %v433_v7 = vpack.c.bf16 %v377_v63, %v375_v62  ;;  %v457_v9 = vld [vmem:[%s8734_s1 + $0x78] sm:$0xff] }
  0x31   : > { %744 = vmatprep.subr.bf16.mxu0 %v409_v47  ;;  %v366_v47 = vld [vmem:[%s5514_s29 + $0x220] sm:$0xff]  ;;  %v461_v10 = vld [vmem:[%s8734_s1 + $0x98] sm:$0xff]  ;;  %v435_v15 = vpack.c.bf16 %v381_v6, %v379_v5  ;;  %v460_v19 = vld [vmem:[%s8734_s1 + $0x90] sm:$0xff] }
  0x32   : > { %v378_v13 = vld [vmem:[%s5514_s29 + $0x280] sm:$0xff]  ;;  %v467_v21 = vld [vmem:[%s8734_s1 + $0xc8] sm:$0xff]  ;;  %v473_v27 = vld [vmem:[%s8734_s1 + $0xf8] sm:$0xff] }
  0x33   : > { %v470_v22 = vld [vmem:[%s8734_s1 + $0xe0] sm:$0xff]  ;;  %v476_v28 = vld [vmem:[%s8734_s1 + $0x110] sm:$0xff]  ;;  %v383_v31 = vld [vmem:[%s5514_s29 + $0x2a8] sm:$0xff] }
  0x34   : > { %745 = vmatpush1.bf16.msra.mxu0 %v408_v52  ;;  %v373_v52 = vld [vmem:[%s5514_s29 + $0x258] sm:$0xff]  ;;  %v647_v24 = vpack.c.bf16 %v470_v22, %v467_v21  ;;  %v466_v25 = vld [vmem:[%s8734_s1 + $0xc0] sm:$0xff]  ;;  %v650_v30 = vpack.c.bf16 %v476_v28, %v473_v27  ;;  %v472_v34 = vld [vmem:[%s8734_s1 + $0xf0] sm:$0xff] }
  0x35   : > { %746 = vmatprep.subr.bf16.mxu0 %v411_v53  ;;  %v429_v53 = vpack.c.bf16 %v369_v44, %v367_v43  ;;  %v431_v61 = vpack.c.bf16 %v373_v52, %v371_v51  ;;  %v382_v33 = vld [vmem:[%s5514_s29 + $0x2a0] sm:$0xff]  ;;  %v384_v37 = vld [vmem:[%s5514_s29 + $0x2b0] sm:$0xff]  ;;  %v479_v38 = vld [vmem:[%s8734_s1 + $0x128] sm:$0xff] }
  0x36   : > { %v482_v39 = vld [vmem:[%s8734_s1 + $0x140] sm:$0xff]  ;;  %v436_v40 = vpack.c.bf16 %v384_v37, %v382_v33  ;;  %v481_v44 = vld [vmem:[%s8734_s1 + $0x138] sm:$0xff]  ;;  %v491_v51 = vld [vmem:[%s8734_s1 + $0x188] sm:$0xff] }
  0x37   : > { %v478_v43 = vld [vmem:[%s8734_s1 + $0x120] sm:$0xff]  ;;  %v493_v56 = vld [vmem:[%s8734_s1 + $0x198] sm:$0xff]  ;;  %v391_v27 = vld [vmem:[%s5514_s29 + $0x2e8] sm:$0xff] }
  0x38   : > { %747 = vmatpush1.bf16.msra.mxu0 %v410_v58  ;;  %v428_v58 = vpack.c.bf16 %v368_v48, %v366_v47  ;;  %v652_v47 = vpack.c.bf16 %v481_v44, %v478_v43  ;;  %v494_v52 = vld [vmem:[%s8734_s1 + $0x1a0] sm:$0xff]  ;;  %v497_v57 = vld [vmem:[%s8734_s1 + $0x1b8] sm:$0xff]  ;;  %v392_v33 = vld [vmem:[%s5514_s29 + $0x2f0] sm:$0xff] }
  0x39   : > { %748 = vmatprep.subr.bf16.mxu0 %v413_v59  ;;  %v370_v59 = vld [vmem:[%s5514_s29 + $0x240] sm:$0xff]  ;;  %v389_v62 = vld [vmem:[%s5514_s29 + $0x2d8] sm:$0xff] }
  0x3a   : > { %v430_v4 = vpack.c.bf16 %v372_v60, %v370_v59  ;;  %v386_v63 = vld [vmem:[%s5514_s29 + $0x2c0] sm:$0xff]  ;;  %v517_v22 = vld [vmem:[%s8734_s1 + $0x258] sm:$0xff] }
  0x3b   : > { %v506_v5 = vld [vmem:[%s8734_s1 + $0x200] sm:$0xff]  ;;  %v393_v28 = vld [vmem:[%s5514_s29 + $0x2f8] sm:$0xff] }
  0x3c   : > { %749 = vmatpush1.bf16.msra.mxu0 %v412_v0  ;;  %v637_v0 = vpack.c.bf16 %v451_v55, %v448_v54  ;;  %v659_v54 = vpack.c.bf16 %v494_v52, %v491_v51  ;;  %v490_v55 = vld [vmem:[%s8734_s1 + $0x180] sm:$0xff]  ;;  %v541_v52 = vld [vmem:[%s8734_s1 + $0x318] sm:$0xff] }
  0x3d   : > { %750 = vmatprep.subr.bf16.mxu0 %v415_v1  ;;  %v374_v1 = vld [vmem:[%s5514_s29 + $0x260] sm:$0xff]  ;;  %v658_v59 = vpack.c.bf16 %v493_v56, %v490_v55  ;;  %v548_v55 = vld [vmem:[%s8734_s1 + $0x350] sm:$0xff] }
  0x3e   : > { %v432_v12 = vpack.c.bf16 %v376_v2, %v374_v1  ;;  %v499_v1 = vld [vmem:[%s8734_s1 + $0x1c8] sm:$0xff]  ;;  %v514_v21 = vld [vmem:[%s8734_s1 + $0x240] sm:$0xff] }
  0x3f   : > { %v538_v51 = vld [vmem:[%s8734_s1 + $0x300] sm:$0xff] }
  0x40   : > { %751 = vmatpush1.bf16.msra.mxu0 %v414_v8  ;;  %v454_v8 = vld [vmem:[%s8734_s1 + $0x60] sm:$0xff]  ;;  %v682_v56 = vpack.c.bf16 %v541_v52, %v538_v51  ;;  %v608_v51 = vld [vmem:[%s8734_s1 + $0x530] sm:$0xff] }
  0x41   : > { %752 = vmatprep.subr.bf16.mxu0 %v417_v11  ;;  %v464_v11 = vld [vmem:[%s8734_s1 + $0xb0] sm:$0xff]  ;;  %v640_v16 = vpack.c.bf16 %v457_v9, %v454_v8  ;;  %v502_v9 = vld [vmem:[%s8734_s1 + $0x1e0] sm:$0xff] }
  0x44   : > { %753 = vmatpush1.bf16.msra.mxu0 %v416_v14  ;;  %v380_v14 = vld [vmem:[%s5514_s29 + $0x290] sm:$0xff] }
  0x45   : > { %754 = vmatprep.subr.bf16.mxu0 %v419_v17  ;;  %v644_v17 = vpack.c.bf16 %v464_v11, %v461_v10  ;;  %v434_v18 = vpack.c.bf16 %v380_v14, %v378_v13  ;;  %v505_v10 = vld [vmem:[%s8734_s1 + $0x1f8] sm:$0xff] }
  0x46   : > { %v509_v11 = vld [vmem:[%s8734_s1 + $0x218] sm:$0xff]  ;;  %v664_v13 = vpack.c.bf16 %v505_v10, %v502_v9  ;;  %v566_v9 = vld [vmem:[%s8734_s1 + $0x3e0] sm:$0xff] }
  0x48   : > { %755 = vmatpush1.bf16.msra.mxu0 %v418_v20  ;;  %v463_v20 = vld [vmem:[%s8734_s1 + $0xa8] sm:$0xff] }
  0x49   : > { %756 = vmatprep.subr.bf16.mxu0 %v421_v23  ;;  %v643_v23 = vpack.c.bf16 %v463_v20, %v460_v19 }
  0x4c   : > { %757 = vmatpush1.bf16.msra.mxu0 %v420_v26  ;;  %v469_v26 = vld [vmem:[%s8734_s1 + $0xd8] sm:$0xff] }
  0x4d   : > { %758 = vmatprep.subr.bf16.mxu0 %v423_v29  ;;  %v646_v29 = vpack.c.bf16 %v469_v26, %v466_v25  ;;  %v670_v25 = vpack.c.bf16 %v517_v22, %v514_v21  ;;  %v578_v21 = vld [vmem:[%s8734_s1 + $0x440] sm:$0xff] }
  0x50   : > { %759 = vmatpush1.bf16.msra.mxu0 %v422_v32  ;;  %v385_v32 = vld [vmem:[%s5514_s29 + $0x2b8] sm:$0xff] }
  0x51   : > { %760 = vmatprep.subr.bf16.mxu0 %v425_v35  ;;  %v475_v35 = vld [vmem:[%s8734_s1 + $0x108] sm:$0xff]  ;;  %v437_v36 = vpack.c.bf16 %v385_v32, %v383_v31  ;;  %v441_v32 = vpack.c.bf16 %v393_v28, %v391_v27  ;;  %v584_v27 = vld [vmem:[%s8734_s1 + $0x470] sm:$0xff] }
  0x52   : > { %v649_v41 = vpack.c.bf16 %v475_v35, %v472_v34  ;;  %v523_v31 = vld [vmem:[%s8734_s1 + $0x288] sm:$0xff]  ;;  %v530_v35 = vld [vmem:[%s8734_s1 + $0x2c0] sm:$0xff] }
  0x53   : > { %v527_v34 = vld [vmem:[%s8734_s1 + $0x2a8] sm:$0xff] }
  0x54   : > { %761 = vmatpush1.bf16.msra.mxu0 %v424_v42  ;;  %v653_v42 = vpack.c.bf16 %v482_v39, %v479_v38  ;;  %v677_v38 = vpack.c.bf16 %v530_v35, %v527_v34  ;;  %v526_v39 = vld [vmem:[%s8734_s1 + $0x2a0] sm:$0xff] }
  0x55   : > { %1083 = vmatprep.subr.bf16.mxu0 %v427_v45  ;;  %v485_v45 = vld [vmem:[%s8734_s1 + $0x158] sm:$0xff] }
  0x57   : > { %763 = vmatmul.mubr.bf16.vlgmr.msra.gmra.mrb[0].mxu0 %v634_v46  ;;  %v488_v46 = vld [vmem:[%s8734_s1 + $0x170] sm:$0xff] }
  0x58   : > { %1084 = vmatpush1.bf16.msra.mxu0 %v426_v49  ;;  %772 = vmatprep.mubr.bf16.mxu0 %v638_v50  ;;  %v656_v48 = vpack.c.bf16 %v488_v46, %v485_v45  ;;  %v484_v49 = vld [vmem:[%s8734_s1 + $0x150] sm:$0xff]  ;;  %v487_v50 = vld [vmem:[%s8734_s1 + $0x168] sm:$0xff] }
  0x59   : > { %1085 = vmatprep.subr.bf16.mxu0 %v429_v53  ;;  %v655_v53 = vpack.c.bf16 %v487_v50, %v484_v49  ;;  %v532_v45 = vld [vmem:[%s8734_s1 + $0x2d0] sm:$0xff]  ;;  %v535_v46 = vld [vmem:[%s8734_s1 + $0x2e8] sm:$0xff] }
  0x5a   : > { %v679_v49 = vpack.c.bf16 %v535_v46, %v532_v45  ;;  %v602_v45 = vld [vmem:[%s8734_s1 + $0x500] sm:$0xff] }
  0x5c   : > { %1086 = vmatpush1.bf16.msra.mxu0 %v428_v58  ;;  %v500_v58 = vld [vmem:[%s8734_s1 + $0x1d0] sm:$0xff] }
  0x5d   : > { %1087 = vmatprep.subr.bf16.mxu0 %v431_v61  ;;  %v662_v60 = vpack.c.bf16 %v500_v58, %v497_v57  ;;  %v387_v61 = vld [vmem:[%s5514_s29 + $0x2c8] sm:$0xff]  ;;  %v544_v58 = vld [vmem:[%s8734_s1 + $0x330] sm:$0xff] }
  0x5e   : > { %v439_v2 = vpack.c.bf16 %v389_v62, %v387_v61  ;;  %v554_v61 = vld [vmem:[%s8734_s1 + $0x380] sm:$0xff] }
  0x5f   : > { %773 = vmatmul.mubr.bf16.gmra.mrb[4].mxu0 %v637_v0  ;;  %v496_v0 = vld [vmem:[%s8734_s1 + $0x1b0] sm:$0xff] }
  0x60   : > { %782 = vmatprep.mubr.bf16.mxu0 %v641_v3  ;;  %1088 = vmatpush1.bf16.msra.mxu0 %v430_v4  ;;  %v388_v3 = vld [vmem:[%s5514_s29 + $0x2d0] sm:$0xff]  ;;  %v503_v4 = vld [vmem:[%s8734_s1 + $0x1e8] sm:$0xff] }
  0x61   : > { %1089 = vmatprep.subr.bf16.mxu0 %v433_v7  ;;  %v438_v6 = vpack.c.bf16 %v388_v3, %v386_v63  ;;  %v661_v7 = vpack.c.bf16 %v499_v1, %v496_v0  ;;  %v665_v8 = vpack.c.bf16 %v506_v5, %v503_v4  ;;  %v550_v0 = vld [vmem:[%s8734_s1 + $0x360] sm:$0xff]  ;;  %v553_v1 = vld [vmem:[%s8734_s1 + $0x378] sm:$0xff]  ;;  %v560_v3 = vld [vmem:[%s8734_s1 + $0x3b0] sm:$0xff] }
  0x62   : > { %v688_v4 = vpack.c.bf16 %v553_v1, %v550_v0  ;;  %v620_v0 = vld [vmem:[%s8734_s1 + $0x590] sm:$0xff] }
  0x64   : > { %1090 = vmatpush1.bf16.msra.mxu0 %v432_v12  ;;  %v512_v12 = vld [vmem:[%s8734_s1 + $0x230] sm:$0xff] }
  0x65   : > { %1091 = vmatprep.subr.bf16.mxu0 %v435_v15  ;;  %v668_v14 = vpack.c.bf16 %v512_v12, %v509_v11  ;;  %v508_v15 = vld [vmem:[%s8734_s1 + $0x210] sm:$0xff]  ;;  %v562_v12 = vld [vmem:[%s8734_s1 + $0x3c0] sm:$0xff] }
  0x67   : > { %783 = vmatmul.mubr.bf16.gmra.mrb[8].mxu0 %v640_v16  ;;  %v511_v16 = vld [vmem:[%s8734_s1 + $0x228] sm:$0xff] }
  0x68   : > { %792 = vmatprep.mubr.bf16.mxu0 %v644_v17  ;;  %1092 = vmatpush1.bf16.msra.mxu0 %v434_v18  ;;  %v515_v17 = vld [vmem:[%s8734_s1 + $0x248] sm:$0xff]  ;;  %v518_v18 = vld [vmem:[%s8734_s1 + $0x260] sm:$0xff]  ;;  %v667_v19 = vpack.c.bf16 %v511_v16, %v508_v15  ;;  %v572_v15 = vld [vmem:[%s8734_s1 + $0x410] sm:$0xff] }
  0x69   : > { %1093 = vmatprep.subr.bf16.mxu0 %v437_v36  ;;  %v671_v20 = vpack.c.bf16 %v518_v18, %v515_v17  ;;  %v568_v18 = vld [vmem:[%s8734_s1 + $0x3f0] sm:$0xff] }
  0x6c   : > { %1094 = vmatpush1.bf16.msra.mxu0 %v436_v40  ;;  %v529_v40 = vld [vmem:[%s8734_s1 + $0x2b8] sm:$0xff] }
  0x6d   : > { %1095 = vmatprep.subr.bf16.mxu0 %v439_v2  ;;  %v676_v43 = vpack.c.bf16 %v529_v40, %v526_v39  ;;  %v557_v2 = vld [vmem:[%s8734_s1 + $0x398] sm:$0xff]  ;;  %v596_v39 = vld [vmem:[%s8734_s1 + $0x4d0] sm:$0xff] }
  0x6e   : > { %v692_v5 = vpack.c.bf16 %v560_v3, %v557_v2  ;;  %v616_v3 = vld [vmem:[%s8734_s1 + $0x570] sm:$0xff] }
  0x6f   : > { %793 = vmatmul.mubr.bf16.gmra.mrb[12].mxu0 %v643_v23  ;;  %v521_v23 = vld [vmem:[%s8734_s1 + $0x278] sm:$0xff] }
  0x70   : > { %802 = vmatprep.mubr.bf16.mxu0 %v647_v24  ;;  %1096 = vmatpush1.bf16.msra.mxu0 %v438_v6  ;;  %v524_v24 = vld [vmem:[%s8734_s1 + $0x290] sm:$0xff] }
  0x71   : > { %v674_v26 = vpack.c.bf16 %v524_v24, %v521_v23  ;;  %1097 = vmatprep.subr.bf16.mxu0 %v441_v32  ;;  %v556_v6 = vld [vmem:[%s8734_s1 + $0x390] sm:$0xff]  ;;  %v574_v24 = vld [vmem:[%s8734_s1 + $0x420] sm:$0xff]  ;;  %v587_v32 = vld [vmem:[%s8734_s1 + $0x488] sm:$0xff] }
  0x77   : > { %803 = vmatmul.mubr.bf16.gmra.mrb[16].mxu0 %v646_v29  ;;  %v390_v29 = vld [vmem:[%s5514_s29 + $0x2e0] sm:$0xff]  ;;  %s5239_s29 = smul.u32 3584, %s9176_s18 }
  0x78   : > { %812 = vmatprep.mubr.bf16.mxu0 %v650_v30  ;;  %v520_v30 = vld [vmem:[%s8734_s1 + $0x270] sm:$0xff]  ;;  %v440_v36 = vpack.c.bf16 %v392_v33, %v390_v29  ;;  %v590_v33 = vld [vmem:[%s8734_s1 + $0x4a0] sm:$0xff] }
  0x79   : > { %v673_v37 = vpack.c.bf16 %v523_v31, %v520_v30  ;;  %v580_v30 = vld [vmem:[%s8734_s1 + $0x450] sm:$0xff]  ;;  %v583_v31 = vld [vmem:[%s8734_s1 + $0x468] sm:$0xff]  ;;  %v707_v35 = vpack.c.bf16 %v590_v33, %v587_v32  ;;  %v5270_v32 = vld [vmem:[%s8735_s2 + $0x3c] ss:$28 sps:$4 sm:$0xff]   ;;  %s6935_s24 = scalar_lea.vmem %s8738_s5, %s5239_s29 }
  0x7a   : > { %1098 = vmatpush1.bf16.msra.mxu0 %v440_v36  ;;  %v703_v34 = vpack.c.bf16 %v583_v31, %v580_v30  ;;  %v586_v36 = vld [vmem:[%s8734_s1 + $0x480] sm:$0xff]  ;;  %v468_v33 = vld [vmem:[%s8734_s1 + $0xd0] sm:$0xff] }
  0x7b   : > { %v5267_v30 = vld [vmem:[%s8735_s2 + $0x4] ss:$28 sps:$4 sm:$0xff]  }
  0x7c   : > { %v5269_v31 = vld [vmem:[%s8735_s2] ss:$28 sps:$4 sm:$0xff]   ;;  %3073 = vmatprep.subr.bf16.mxu1 %v5267_v30  ;;  %v5329_v30 = vld [vmem:[%s8735_s2 + $0x12c] ss:$28 sps:$4 sm:$0xff]  }
  0x7d   : > { %3074 = vmatpush1.bf16.msra.mxu1 %v5269_v31  ;;  %v5327_v31 = vld [vmem:[%s8735_s2 + $0x128] ss:$28 sps:$4 sm:$0xff]  }
  0x7e   : > { %3075 = vmatprep.subr.bf16.mxu1 %v5270_v32 }
  0x7f   : > { %813 = vmatmul.mubr.bf16.gmra.mrb[20].mxu0 %v649_v41  ;;  %v533_v41 = vld [vmem:[%s8734_s1 + $0x2d8] sm:$0xff] }
  0x80   : > { %822 = vmatprep.mubr.bf16.mxu0 %v653_v42  ;;  %v536_v42 = vld [vmem:[%s8734_s1 + $0x2f0] sm:$0xff] }
  0x81   : > { %v680_v44 = vpack.c.bf16 %v536_v42, %v533_v41  ;;  %v592_v42 = vld [vmem:[%s8734_s1 + $0x4b0] sm:$0xff] }
  0x87   : > { %823 = vmatmul.mubr.bf16.gmra.mrb[24].mxu0 %v652_v47  ;;  %v539_v47 = vld [vmem:[%s8734_s1 + $0x308] sm:$0xff] }
  0x88   : > { %832 = vmatprep.mubr.bf16.mxu0 %v656_v48  ;;  %v542_v48 = vld [vmem:[%s8734_s1 + $0x320] sm:$0xff] }
  0x89   : > { %v683_v50 = vpack.c.bf16 %v542_v48, %v539_v47  ;;  %v598_v48 = vld [vmem:[%s8734_s1 + $0x4e0] sm:$0xff] }
  0x8f   : > { %833 = vmatmul.mubr.bf16.gmra.mrb[28].mxu0 %v655_v53  ;;  %v8739_v53 = vmov 0  }
  0x90   : > { %842 = vmatprep.mubr.bf16.mxu0 %v659_v54  ;;  %5265 = vset.pattern.permute.xlu0 %v8739_v53  ;;  %v545_v54 = vld [vmem:[%s8734_s1 + $0x338] sm:$0xff] }
  0x91   : > { %5266 = vset.pattern.permute.xlu1 %v8739_v53  ;;  %v686_v57 = vpack.c.bf16 %v548_v55, %v545_v54  ;;  %v604_v55 = vld [vmem:[%s8734_s1 + $0x510] sm:$0xff] }
  0x97   : > { %843 = vmatmul.mubr.bf16.gmra.mrb[32].mxu0 %v658_v59  ;;  %v547_v59 = vld [vmem:[%s8734_s1 + $0x348] sm:$0xff] }
  0x98   : > { %852 = vmatprep.mubr.bf16.mxu0 %v662_v60  ;;  %v551_v60 = vld [vmem:[%s8734_s1 + $0x368] sm:$0xff]  ;;  %v685_v62 = vpack.c.bf16 %v547_v59, %v544_v58  ;;  %v614_v58 = vld [vmem:[%s8734_s1 + $0x560] sm:$0xff] }
  0x99   : > { %v689_v63 = vpack.c.bf16 %v554_v61, %v551_v60  ;;  %v610_v61 = vld [vmem:[%s8734_s1 + $0x540] sm:$0xff] }
  0x9f   : > { %853 = vmatmul.mubr.bf16.gmra.mrb[36].mxu0 %v661_v7  ;;  %v559_v7 = vld [vmem:[%s8734_s1 + $0x3a8] sm:$0xff] }
  0xa0   : > { %862 = vmatprep.mubr.bf16.mxu0 %v665_v8  ;;  %v563_v8 = vld [vmem:[%s8734_s1 + $0x3c8] sm:$0xff]  ;;  %v691_v10 = vpack.c.bf16 %v559_v7, %v556_v6  ;;  %v626_v6 = vld [vmem:[%s8734_s1 + $0x5c0] sm:$0xff] }
  0xa1   : > { %v695_v11 = vpack.c.bf16 %v566_v9, %v563_v8  ;;  %v622_v9 = vld [vmem:[%s8734_s1 + $0x5a0] sm:$0xff] }
  0xa7   : > { %863 = vmatmul.mubr.bf16.gmra.mrb[40].mxu0 %v664_v13  ;;  %v565_v13 = vld [vmem:[%s8734_s1 + $0x3d8] sm:$0xff] }
  0xa8   : > { %872 = vmatprep.mubr.bf16.mxu0 %v668_v14  ;;  %v569_v14 = vld [vmem:[%s8734_s1 + $0x3f8] sm:$0xff]  ;;  %v694_v16 = vpack.c.bf16 %v565_v13, %v562_v12  ;;  %v632_v12 = vld [vmem:[%s8734_s1 + $0x5f0] sm:$0xff] }
  0xa9   : > { %v698_v17 = vpack.c.bf16 %v572_v15, %v569_v14  ;;  %v628_v15 = vld [vmem:[%s8734_s1 + $0x5d0] sm:$0xff] }
  0xaf   : > { %873 = vmatmul.mubr.bf16.gmra.mrb[44].mxu0 %v667_v19  ;;  %v571_v19 = vld [vmem:[%s8734_s1 + $0x408] sm:$0xff] }
  0xb0   : > { %882 = vmatprep.mubr.bf16.mxu0 %v671_v20  ;;  %v575_v20 = vld [vmem:[%s8734_s1 + $0x428] sm:$0xff]  ;;  %v697_v22 = vpack.c.bf16 %v571_v19, %v568_v18  ;;  %v444_v18 = vld [vmem:[%s8734_s1 + $0x10] sm:$0xff] }
  0xb1   : > { %v701_v23 = vpack.c.bf16 %v578_v21, %v575_v20  ;;  %v447_v19 = vld [vmem:[%s8734_s1 + $0x28] sm:$0xff]  ;;  %v450_v21 = vld [vmem:[%s8734_s1 + $0x40] sm:$0xff] }
  0xb2   : > { %v636_v20 = vpack.c.bf16 %v447_v19, %v444_v18  ;;  %v5314_v18 = vld [vmem:[%s8735_s2 + $0x2a0] ss:$28 sps:$4 sm:$0xff]   ;;  %v5315_v19 = vld [vmem:[%s8735_s2 + $0xb8] ss:$28 sps:$4 sm:$0xff]  }
  0xb7   : > { %883 = vmatmul.mubr.bf16.gmra.mrb[48].mxu0 %v670_v25  ;;  %v577_v25 = vld [vmem:[%s8734_s1 + $0x438] sm:$0xff] }
  0xb8   : > { %892 = vmatprep.mubr.bf16.mxu0 %v674_v26  ;;  %v581_v26 = vld [vmem:[%s8734_s1 + $0x458] sm:$0xff]  ;;  %v700_v28 = vpack.c.bf16 %v577_v25, %v574_v24  ;;  %v456_v24 = vld [vmem:[%s8734_s1 + $0x70] sm:$0xff]  ;;  %v459_v25 = vld [vmem:[%s8734_s1 + $0x88] sm:$0xff] }
  0xb9   : > { %v704_v29 = vpack.c.bf16 %v584_v27, %v581_v26  ;;  %v642_v26 = vpack.c.bf16 %v459_v25, %v456_v24  ;;  %v462_v27 = vld [vmem:[%s8734_s1 + $0xa0] sm:$0xff]  ;;  %v5323_v24 = vld [vmem:[%s8735_s2 + $0xf4] ss:$28 sps:$4 sm:$0xff]  }
  0xba   : > { %v5321_v25 = vld [vmem:[%s8735_s2 + $0xf0] ss:$28 sps:$4 sm:$0xff]  }
  0xbf   : > { %893 = vmatmul.mubr.bf16.gmra.mrb[52].mxu0 %v673_v37  ;;  %v589_v37 = vld [vmem:[%s8734_s1 + $0x498] sm:$0xff] }
  0xc0   : > { %902 = vmatprep.mubr.bf16.mxu0 %v677_v38  ;;  %v593_v38 = vld [vmem:[%s8734_s1 + $0x4b8] sm:$0xff]  ;;  %v706_v40 = vpack.c.bf16 %v589_v37, %v586_v36  ;;  %v5273_v37 = vld [vmem:[%s8735_s2 + $0x74] ss:$28 sps:$4 sm:$0xff]  }
  0xc1   : > { %v710_v41 = vpack.c.bf16 %v596_v39, %v593_v38  ;;  %v5275_v38 = vld [vmem:[%s8735_s2 + $0x70] ss:$28 sps:$4 sm:$0xff]  }
  0xc2   : > { %v5276_v39 = vld [vmem:[%s8735_s2 + $0xac] ss:$28 sps:$4 sm:$0xff]  }
  0xc7   : > { %903 = vmatmul.mubr.bf16.gmra.mrb[56].mxu0 %v676_v43  ;;  %v595_v43 = vld [vmem:[%s8734_s1 + $0x4c8] sm:$0xff] }
  0xc8   : > { %912 = vmatprep.mubr.bf16.mxu0 %v680_v44  ;;  %v599_v44 = vld [vmem:[%s8734_s1 + $0x4e8] sm:$0xff]  ;;  %v709_v46 = vpack.c.bf16 %v595_v43, %v592_v42 }
  0xc9   : > { %v713_v47 = vpack.c.bf16 %v602_v45, %v599_v44  ;;  %v5278_v42 = vld [vmem:[%s8735_s2 + $0xa8] ss:$28 sps:$4 sm:$0xff]   ;;  %v5281_v45 = vld [vmem:[%s8735_s2 + $0xe0] ss:$28 sps:$4 sm:$0xff]  }
  0xca   : > { %v5279_v44 = vld [vmem:[%s8735_s2 + $0xe4] ss:$28 sps:$4 sm:$0xff]  }
  0xcf   : > { %913 = vmatmul.mubr.bf16.gmra.mrb[60].mxu0 %v679_v49  ;;  %v601_v49 = vld [vmem:[%s8734_s1 + $0x4f8] sm:$0xff] }
  0xd0   : > { %922 = vmatprep.mubr.bf16.mxu0 %v683_v50  ;;  %v605_v50 = vld [vmem:[%s8734_s1 + $0x518] sm:$0xff]  ;;  %v712_v52 = vpack.c.bf16 %v601_v49, %v598_v48  ;;  %v483_v48 = vld [vmem:[%s8734_s1 + $0x148] sm:$0xff] }
  0xd1   : > { %v716_v54 = vpack.c.bf16 %v608_v51, %v605_v50  ;;  %v5284_v49 = vld [vmem:[%s8735_s2 + $0x118] ss:$28 sps:$4 sm:$0xff]  }
  0xd2   : > { %v5285_v51 = vld [vmem:[%s8735_s2 + $0x154] ss:$28 sps:$4 sm:$0xff]  }
  0xd7   : > { %923 = vmatmul.mubr.bf16.gmra.mrb[64].mxu0 %v682_v56  ;;  %v607_v56 = vld [vmem:[%s8734_s1 + $0x528] sm:$0xff] }
  0xd8   : > { %932 = vmatprep.mubr.bf16.mxu0 %v686_v57  ;;  %v611_v57 = vld [vmem:[%s8734_s1 + $0x548] sm:$0xff]  ;;  %v715_v59 = vpack.c.bf16 %v607_v56, %v604_v55  ;;  %v486_v55 = vld [vmem:[%s8734_s1 + $0x160] sm:$0xff]  ;;  %v489_v56 = vld [vmem:[%s8734_s1 + $0x178] sm:$0xff] }
  0xd9   : > { %v719_v60 = vpack.c.bf16 %v614_v58, %v611_v57  ;;  %v5290_v57 = vld [vmem:[%s8735_s2 + $0x188] ss:$28 sps:$4 sm:$0xff]   ;;  %v657_v58 = vpack.c.bf16 %v489_v56, %v486_v55  ;;  %v5356_v55 = vld [vmem:[%s8735_s2 + $0x27c] ss:$28 sps:$4 sm:$0xff]  }
  0xda   : > { %v5354_v56 = vld [vmem:[%s8735_s2 + $0x278] ss:$28 sps:$4 sm:$0xff]  }
  0xdf   : > { %933 = vmatmul.mubr.bf16.gmra.mrb[68].mxu0 %v685_v62  ;;  %v613_v62 = vld [vmem:[%s8734_s1 + $0x558] sm:$0xff] }
  0xe0   : > { %942 = vmatprep.mubr.bf16.mxu0 %v689_v63  ;;  %v617_v63 = vld [vmem:[%s8734_s1 + $0x578] sm:$0xff]  ;;  %v718_v1 = vpack.c.bf16 %v613_v62, %v610_v61  ;;  %v492_v62 = vld [vmem:[%s8734_s1 + $0x190] sm:$0xff] }
  0xe1   : > { %v722_v2 = vpack.c.bf16 %v620_v0, %v617_v63  ;;  %v5294_v61 = vld [vmem:[%s8735_s2 + $0x1fc] ss:$28 sps:$4 sm:$0xff]   ;;  %v495_v63 = vld [vmem:[%s8734_s1 + $0x1a8] sm:$0xff] }
  0xe2   : > { %v5296_v0 = vld [vmem:[%s8735_s2 + $0x1f8] ss:$28 sps:$4 sm:$0xff]  }
  0xe7   : > { %943 = vmatmul.mubr.bf16.gmra.mrb[72].mxu0 %v688_v4  ;;  %v619_v4 = vld [vmem:[%s8734_s1 + $0x588] sm:$0xff] }
  0xe8   : > { %952 = vmatprep.mubr.bf16.mxu0 %v692_v5  ;;  %v623_v5 = vld [vmem:[%s8734_s1 + $0x5a8] sm:$0xff]  ;;  %v721_v7 = vpack.c.bf16 %v619_v4, %v616_v3  ;;  %v498_v3 = vld [vmem:[%s8734_s1 + $0x1c0] sm:$0xff] }
  0xe9   : > { %v725_v8 = vpack.c.bf16 %v626_v6, %v623_v5  ;;  %v5297_v4 = vld [vmem:[%s8735_s2 + $0x10] ss:$28 sps:$4 sm:$0xff]   ;;  %v501_v5 = vld [vmem:[%s8734_s1 + $0x1d8] sm:$0xff] }
  0xea   : > { %v5300_v6 = vld [vmem:[%s8735_s2 + $0x234] ss:$28 sps:$4 sm:$0xff]  }
  0xef   : > { %953 = vmatmul.mubr.bf16.gmra.mrb[76].mxu0 %v691_v10  ;;  %v625_v10 = vld [vmem:[%s8734_s1 + $0x5b8] sm:$0xff] }
  0xf0   : > { %962 = vmatprep.mubr.bf16.mxu0 %v695_v11  ;;  %v629_v11 = vld [vmem:[%s8734_s1 + $0x5d8] sm:$0xff]  ;;  %v724_v13 = vpack.c.bf16 %v625_v10, %v622_v9  ;;  %v5305_v9 = vld [vmem:[%s8735_s2 + $0x4c] ss:$28 sps:$4 sm:$0xff]  }
  0xf1   : > { %v728_v14 = vpack.c.bf16 %v632_v12, %v629_v11  ;;  %v5306_v10 = vld [vmem:[%s8735_s2 + $0x26c] ss:$28 sps:$4 sm:$0xff]   ;;  %v663_v12 = vpack.c.bf16 %v501_v5, %v498_v3  ;;  %v540_v3 = vld [vmem:[%s8734_s1 + $0x310] sm:$0xff]  ;;  %v5371_v5 = vld [vmem:[%s8735_s2 + $0x35c] ss:$28 sps:$4 sm:$0xff]  }
  0xf2   : > { %v5308_v11 = vld [vmem:[%s8735_s2 + $0x268] ss:$28 sps:$4 sm:$0xff]  }
  0xf7   : > { %963 = vmatmul.mubr.bf16.gmra.mrb[80].mxu0 %v694_v16  ;;  %v631_v16 = vld [vmem:[%s8734_s1 + $0x5e8] sm:$0xff] }
  0xf8   : > { %972 = vmatprep.mubr.bf16.mxu0 %v698_v17  ;;  %v727_v17 = vpack.c.bf16 %v631_v16, %v628_v15  ;;  %v5309_v15 = vld [vmem:[%s8735_s2 + $0x80] ss:$28 sps:$4 sm:$0xff]   ;;  %v507_v16 = vld [vmem:[%s8734_s1 + $0x208] sm:$0xff] }
  0xff   : > { %973 = vmatmul.mubr.bf16.gmra.mrb[84].mxu0 %v697_v22  ;;  %v453_v22 = vld [vmem:[%s8734_s1 + $0x58] sm:$0xff] }
 0x100   : > { %982 = vmatprep.mubr.bf16.mxu0 %v701_v23  ;;  %v639_v23 = vpack.c.bf16 %v453_v22, %v450_v21  ;;  %v5318_v21 = vld [vmem:[%s8735_s2 + $0x2dc] ss:$28 sps:$4 sm:$0xff]  }
 0x101   : > { %v5320_v22 = vld [vmem:[%s8735_s2 + $0x2d8] ss:$28 sps:$4 sm:$0xff]  }
 0x107   : > { %983 = vmatmul.mubr.bf16.gmra.mrb[88].mxu0 %v700_v28  ;;  %v465_v28 = vld [vmem:[%s8734_s1 + $0xb8] sm:$0xff] }
 0x108   : > { %992 = vmatprep.mubr.bf16.mxu0 %v704_v29  ;;  %v645_v29 = vpack.c.bf16 %v465_v28, %v462_v27  ;;  %v510_v27 = vld [vmem:[%s8734_s1 + $0x220] sm:$0xff]  ;;  %v513_v28 = vld [vmem:[%s8734_s1 + $0x238] sm:$0xff] }
 0x109   : > { %v669_v32 = vpack.c.bf16 %v513_v28, %v510_v27  ;;  %v1629_v27 = vld [vmem:[%s8736_s3 + $0x8] sm:$0xff]  ;;  %v582_v28 = vld [vmem:[%s8734_s1 + $0x460] sm:$0xff] }
 0x10f   : > { %993 = vmatmul.mubr.bf16.gmra.mrb[92].mxu0 %v703_v34  ;;  %v471_v34 = vld [vmem:[%s8734_s1 + $0xe8] sm:$0xff] }
 0x110   : > { %1002 = vmatprep.mubr.bf16.mxu0 %v707_v35  ;;  %v5272_v35 = vld [vmem:[%s8735_s2 + $0x38] ss:$28 sps:$4 sm:$0xff]   ;;  %v648_v36 = vpack.c.bf16 %v471_v34, %v468_v33  ;;  %v5330_v33 = vld [vmem:[%s8735_s2 + $0x34c] ss:$28 sps:$4 sm:$0xff]  }
 0x111   : > { %3076 = vmatpush1.bf16.msra.mxu1 %v5272_v35  ;;  %v5332_v34 = vld [vmem:[%s8735_s2 + $0x348] ss:$28 sps:$4 sm:$0xff]  }
 0x112   : > { %3077 = vmatprep.subr.bf16.mxu1 %v5273_v37  ;;  %v5335_v35 = vld [vmem:[%s8735_s2 + $0x164] ss:$28 sps:$4 sm:$0xff]   ;;  %v516_v37 = vld [vmem:[%s8734_s1 + $0x250] sm:$0xff] }
 0x115   : > { %3078 = vmatpush1.bf16.msra.mxu1 %v5275_v38  ;;  %v519_v38 = vld [vmem:[%s8734_s1 + $0x268] sm:$0xff] }
 0x116   : > { %3079 = vmatprep.subr.bf16.mxu1 %v5276_v39  ;;  %v5338_v39 = vld [vmem:[%s8735_s2 + $0xc] ss:$28 sps:$4 sm:$0xff]  }
 0x117   : > { %1003 = vmatmul.mubr.bf16.gmra.mrb[96].mxu0 %v706_v40  ;;  %v474_v40 = vld [vmem:[%s8734_s1 + $0x100] sm:$0xff] }
 0x118   : > { %1012 = vmatprep.mubr.bf16.mxu0 %v710_v41  ;;  %v477_v41 = vld [vmem:[%s8734_s1 + $0x118] sm:$0xff] }
 0x119   : > { %v651_v43 = vpack.c.bf16 %v477_v41, %v474_v40  ;;  %3080 = vmatpush1.bf16.msra.mxu1 %v5278_v42  ;;  %v5341_v40 = vld [vmem:[%s8735_s2 + $0x19c] ss:$28 sps:$4 sm:$0xff]   ;;  %v672_v42 = vpack.c.bf16 %v519_v38, %v516_v37  ;;  %v1633_v37 = vld [vmem:[%s8736_s3 + $0x28] sm:$0xff]  ;;  %v594_v38 = vld [vmem:[%s8734_s1 + $0x4c0] sm:$0xff] }
 0x11a   : > { %3081 = vmatprep.subr.bf16.mxu1 %v5279_v44  ;;  %v5339_v41 = vld [vmem:[%s8735_s2 + $0x198] ss:$28 sps:$4 sm:$0xff]   ;;  %v5342_v44 = vld [vmem:[%s8735_s2 + $0x1d0] ss:$28 sps:$4 sm:$0xff]  }
 0x11d   : > { %3082 = vmatpush1.bf16.msra.mxu1 %v5281_v45  ;;  %v522_v45 = vld [vmem:[%s8734_s1 + $0x280] sm:$0xff] }
 0x11f   : > { %1013 = vmatmul.mubr.bf16.gmra.mrb[100].mxu0 %v709_v46  ;;  %v5282_v46 = vld [vmem:[%s8735_s2 + $0x11c] ss:$28 sps:$4 sm:$0xff]  }
 0x120   : > { %1022 = vmatprep.mubr.bf16.mxu0 %v713_v47  ;;  %v480_v47 = vld [vmem:[%s8734_s1 + $0x130] sm:$0xff]  ;;  %3083 = vmatprep.subr.bf16.mxu1 %v5282_v46  ;;  %v525_v46 = vld [vmem:[%s8734_s1 + $0x298] sm:$0xff] }
 0x121   : > { %v654_v50 = vpack.c.bf16 %v483_v48, %v480_v47  ;;  %3084 = vmatpush1.bf16.msra.mxu1 %v5284_v49  ;;  %v5347_v47 = vld [vmem:[%s8735_s2 + $0x20c] ss:$28 sps:$4 sm:$0xff]   ;;  %v675_v49 = vpack.c.bf16 %v525_v46, %v522_v45  ;;  %v1636_v45 = vld [vmem:[%s8736_s3 + $0x40] sm:$0xff] }
 0x122   : > { %3085 = vmatprep.subr.bf16.mxu1 %v5285_v51  ;;  %v5345_v48 = vld [vmem:[%s8735_s2 + $0x208] ss:$28 sps:$4 sm:$0xff]   ;;  %v5348_v51 = vld [vmem:[%s8735_s2 + $0x240] ss:$28 sps:$4 sm:$0xff]  }
 0x127   : > { %1023 = vmatmul.mubr.bf16.gmra.mrb[104].mxu0 %v712_v52  ;;  %v5287_v52 = vld [vmem:[%s8735_s2 + $0x150] ss:$28 sps:$4 sm:$0xff]  }
 0x128   : > { %1032 = vmatprep.mubr.bf16.mxu0 %v716_v54  ;;  %v5288_v54 = vld [vmem:[%s8735_s2 + $0x18c] ss:$28 sps:$4 sm:$0xff]   ;;  %3086 = vmatpush1.bf16.msra.mxu1 %v5287_v52  ;;  %v528_v52 = vld [vmem:[%s8734_s1 + $0x2b0] sm:$0xff] }
 0x129   : > { %3087 = vmatprep.subr.bf16.mxu1 %v5288_v54  ;;  %v531_v54 = vld [vmem:[%s8734_s1 + $0x2c8] sm:$0xff] }
 0x12c   : > { %3088 = vmatpush1.bf16.msra.mxu1 %v5290_v57  ;;  %v678_v57 = vpack.c.bf16 %v531_v54, %v528_v52 }
 0x12f   : > { %1033 = vmatmul.mubr.bf16.gmra.mrb[108].mxu0 %v715_v59  ;;  %v5291_v59 = vld [vmem:[%s8735_s2 + $0x1c4] ss:$28 sps:$4 sm:$0xff]  }
 0x130   : > { %1042 = vmatprep.mubr.bf16.mxu0 %v719_v60  ;;  %v5293_v60 = vld [vmem:[%s8735_s2 + $0x1c0] ss:$28 sps:$4 sm:$0xff]   ;;  %3089 = vmatprep.subr.bf16.mxu1 %v5291_v59  ;;  %v5357_v59 = vld [vmem:[%s8735_s2 + $0x2b0] ss:$28 sps:$4 sm:$0xff]  }
 0x131   : > { %3090 = vmatpush1.bf16.msra.mxu1 %v5293_v60  ;;  %v534_v60 = vld [vmem:[%s8734_s1 + $0x2e0] sm:$0xff] }
 0x132   : > { %3091 = vmatprep.subr.bf16.mxu1 %v5294_v61  ;;  %v537_v61 = vld [vmem:[%s8734_s1 + $0x2f8] sm:$0xff] }
 0x135   : > { %3092 = vmatpush1.bf16.msra.mxu1 %v5296_v0  ;;  %v681_v0 = vpack.c.bf16 %v537_v61, %v534_v60  ;;  %v5336_v60 = vld [vmem:[%s8735_s2 + $0x8] ss:$28 sps:$4 sm:$0xff]  }
 0x136   : > { %3093 = vmatprep.subr.bf16.mxu1 %v5300_v6  ;;  %v5369_v6 = vld [vmem:[%s8735_s2 + $0x358] ss:$28 sps:$4 sm:$0xff]   ;;  %v5353_v61 = vld [vmem:[%s8735_s2 + $0x44] ss:$28 sps:$4 sm:$0xff]  }
 0x137   : > { %1043 = vmatmul.mubr.bf16.gmra.mrb[112].mxu0 %v718_v1  ;;  %v660_v1 = vpack.c.bf16 %v495_v63, %v492_v62  ;;  %v5362_v62 = vld [vmem:[%s8735_s2 + $0x2ec] ss:$28 sps:$4 sm:$0xff]  }
 0x138   : > { %1052 = vmatprep.mubr.bf16.mxu0 %v722_v2  ;;  %v5299_v2 = vld [vmem:[%s8735_s2 + $0x14] ss:$28 sps:$4 sm:$0xff]   ;;  %v5360_v63 = vld [vmem:[%s8735_s2 + $0x2e8] ss:$28 sps:$4 sm:$0xff]  }
 0x139   : > { %3779 = vmatprep.subr.bf16.mxu0 %v5299_v2  ;;  %v5363_v2 = vld [vmem:[%s8735_s2 + $0x320] ss:$28 sps:$4 sm:$0xff]  }
 0x13f   : > { %1053 = vmatmul.mubr.bf16.gmra.mrb[116].mxu0 %v721_v7  ;;  %v5302_v7 = vld [vmem:[%s8735_s2 + $0x230] ss:$28 sps:$4 sm:$0xff]  }
 0x140   : > { %1062 = vmatprep.mubr.bf16.mxu0 %v725_v8  ;;  %v5303_v8 = vld [vmem:[%s8735_s2 + $0x48] ss:$28 sps:$4 sm:$0xff]   ;;  %3094 = vmatpush1.bf16.msra.mxu1 %v5302_v7 }
 0x141   : > { %3095 = vmatprep.subr.bf16.mxu1 %v5306_v10 }
 0x144   : > { %3096 = vmatpush1.bf16.msra.mxu1 %v5308_v11  ;;  %v552_v11 = vld [vmem:[%s8734_s1 + $0x370] sm:$0xff] }
 0x147   : > { %1063 = vmatmul.mubr.bf16.gmra.mrb[120].mxu0 %v724_v13  ;;  %v5311_v13 = vld [vmem:[%s8735_s2 + $0x84] ss:$28 sps:$4 sm:$0xff]  }
 0x148   : > { %1072 = vmatprep.mubr.bf16.mxu0 %v728_v14  ;;  %v504_v14 = vld [vmem:[%s8734_s1 + $0x1f0] sm:$0xff] }
 0x14f   : > { %1073 = vmatmul.mubr.bf16.gmra.mrb[124].mxu0 %v727_v17  ;;  %v5312_v17 = vld [vmem:[%s8735_s2 + $0x2a4] ss:$28 sps:$4 sm:$0xff]  }
 0x150   : > { %1115 = vmatprep.mubr.bf16.mxu0 %v8739_v53  ;;  %3097 = vmatprep.subr.bf16.mxu1 %v5312_v17  ;;  %v564_v17 = vld [vmem:[%s8734_s1 + $0x3d0] sm:$0xff] }
 0x151   : > { %3098 = vmatpush1.bf16.msra.mxu1 %v5314_v18  ;;  %v567_v18 = vld [vmem:[%s8734_s1 + $0x3e8] sm:$0xff] }
 0x152   : > { %3099 = vmatprep.subr.bf16.mxu1 %v5318_v21  ;;  %v573_v21 = vld [vmem:[%s8734_s1 + $0x418] sm:$0xff] }
 0x155   : > { %3100 = vmatpush1.bf16.msra.mxu1 %v5320_v22 }
 0x157   : > { %1116 = vmatmul.mubr.bf16.vlgmr.msra.gmra.mrb[0].mxu0 %v636_v20  ;;  %v5317_v20 = vld [vmem:[%s8735_s2 + $0xbc] ss:$28 sps:$4 sm:$0xff]  }
 0x158   : > { %1125 = vmatprep.mubr.bf16.mxu0 %v8739_v53  ;;  %3780 = vmatpush1.bf16.msra.mxu0 %v5297_v4  ;;  %v543_v4 = vld [vmem:[%s8734_s1 + $0x328] sm:$0xff] }
 0x159   : > { %3781 = vmatprep.subr.bf16.mxu0 %v5305_v9  ;;  %v684_v7 = vpack.c.bf16 %v543_v4, %v540_v3  ;;  %v549_v9 = vld [vmem:[%s8734_s1 + $0x358] sm:$0xff] }
 0x15c   : > { %3782 = vmatpush1.bf16.msra.mxu0 %v5303_v8  ;;  %v546_v8 = vld [vmem:[%s8734_s1 + $0x340] sm:$0xff] }
 0x15d   : > { %3783 = vmatprep.subr.bf16.mxu0 %v5311_v13  ;;  %v687_v10 = vpack.c.bf16 %v549_v9, %v546_v8 }
 0x15f   : > { %1126 = vmatmul.mubr.bf16.gmra.mrb[4].mxu0 %v639_v23  ;;  %v666_v23 = vpack.c.bf16 %v507_v16, %v504_v14  ;;  %v558_v14 = vld [vmem:[%s8734_s1 + $0x3a0] sm:$0xff] }
 0x160   : > { %1135 = vmatprep.mubr.bf16.mxu0 %v8739_v53  ;;  %3784 = vmatpush1.bf16.msra.mxu0 %v5309_v15  ;;  %v561_v15 = vld [vmem:[%s8734_s1 + $0x3b8] sm:$0xff] }
 0x161   : > { %3785 = vmatprep.subr.bf16.mxu0 %v5317_v20  ;;  %v693_v16 = vpack.c.bf16 %v561_v15, %v558_v14  ;;  %v570_v20 = vld [vmem:[%s8734_s1 + $0x400] sm:$0xff]  ;;  %v621_v14 = vld [vmem:[%s8734_s1 + $0x598] sm:$0xff] }
 0x162   : > { %v699_v22 = vpack.c.bf16 %v573_v21, %v570_v20  ;;  %v5377_v20 = vld [vmem:[%s8735_s2 + $0xec] ss:$28 sps:$4 sm:$0xff]  }
 0x164   : > { %3786 = vmatpush1.bf16.msra.mxu0 %v5315_v19  ;;  %v696_v19 = vpack.c.bf16 %v567_v18, %v564_v17  ;;  %v1642_v17 = vld [vmem:[%s8736_s3 + $0x70] sm:$0xff] }
 0x165   : > { %3787 = vmatprep.subr.bf16.mxu0 %v5323_v24  ;;  %v579_v24 = vld [vmem:[%s8734_s1 + $0x448] sm:$0xff] }
 0x167   : > { %1136 = vmatmul.mubr.bf16.gmra.mrb[8].mxu0 %v642_v26  ;;  %v5324_v26 = vld [vmem:[%s8735_s2 + $0x314] ss:$28 sps:$4 sm:$0xff]  }
 0x168   : > { %1145 = vmatprep.mubr.bf16.mxu0 %v8739_v53  ;;  %3788 = vmatpush1.bf16.msra.mxu0 %v5321_v25  ;;  %v1628_v25 = vld [vmem:[%s8736_s3] sm:$0xff] }
 0x169   : > { %3101 = vmatprep.subr.bf16.mxu1 %v5324_v26  ;;  %3789 = vmatprep.subr.bf16.mxu0 %v5329_v30  ;;  %v1630_v30 = vld [vmem:[%s8736_s3 + $0x10] sm:$0xff] }
 0x16a   : > { %1695 = vperm.xlu0 %5265, %v1628_v25   ;;  %1705 = vperm.xlu1 %5266, %v1630_v30  }
 0x16c   : > { %3790 = vmatpush1.bf16.msra.mxu0 %v5327_v31 }
 0x16d   : > { %3791 = vmatprep.subr.bf16.mxu0 %v5335_v35  ;;  %v1632_v35 = vld [vmem:[%s8736_s3 + $0x20] sm:$0xff] }
 0x16e   : > { %1700 = vperm.xlu0 %5265, %v1629_v27   ;;  %v5380_v27 = vld [vmem:[%s8735_s2 + $0x124] ss:$28 sps:$4 sm:$0xff]  }
 0x16f   : > { %1146 = vmatmul.mubr.bf16.gmra.mrb[12].mxu0 %v645_v29  ;;  %v5326_v29 = vld [vmem:[%s8735_s2 + $0x310] ss:$28 sps:$4 sm:$0xff]  }
 0x170   : > { %1155 = vmatprep.mubr.bf16.mxu0 %v8739_v53  ;;  %3102 = vmatpush1.bf16.msra.mxu1 %v5326_v29  ;;  %v585_v29 = vld [vmem:[%s8734_s1 + $0x478] sm:$0xff] }
 0x171   : > { %3103 = vmatprep.subr.bf16.mxu1 %v5330_v33  ;;  %v705_v31 = vpack.c.bf16 %v585_v29, %v582_v28  ;;  %v588_v33 = vld [vmem:[%s8734_s1 + $0x490] sm:$0xff]  ;;  %v627_v29 = vld [vmem:[%s8734_s1 + $0x5c8] sm:$0xff] }
 0x172   : > { %1715 = vperm.xlu0 %5265, %v1632_v35   ;;  %v624_v28 = vld [vmem:[%s8734_s1 + $0x5b0] sm:$0xff]  ;;  %v5383_v35 = vld [vmem:[%s8735_s2 + $0x15c] ss:$28 sps:$4 sm:$0xff]  }
 0x174   : > { %3104 = vmatpush1.bf16.msra.mxu1 %v5332_v34  ;;  %v591_v34 = vld [vmem:[%s8734_s1 + $0x4a8] sm:$0xff] }
 0x175   : > { %3426 = vmatprep.subr.bf16.mxu1 %v5338_v39  ;;  %v597_v39 = vld [vmem:[%s8734_s1 + $0x4d8] sm:$0xff] }
 0x177   : > { %1156 = vmatmul.mubr.bf16.gmra.mrb[16].mxu0 %v648_v36  ;;  %v5333_v36 = vld [vmem:[%s8735_s2 + $0x160] ss:$28 sps:$4 sm:$0xff]  }
 0x178   : > { %1165 = vmatprep.mubr.bf16.mxu0 %v8739_v53  ;;  %3792 = vmatpush1.bf16.msra.mxu0 %v5333_v36  ;;  %v708_v36 = vpack.c.bf16 %v591_v34, %v588_v33  ;;  %v726_v34 = vpack.c.bf16 %v627_v29, %v624_v28 }
 0x179   : > { %3793 = vmatprep.subr.bf16.mxu0 %v5341_v40  ;;  %v1634_v40 = vld [vmem:[%s8736_s3 + $0x30] sm:$0xff] }
 0x17a   : > { %1725 = vperm.xlu0 %5265, %v1634_v40  }
 0x17c   : > { %3794 = vmatpush1.bf16.msra.mxu0 %v5339_v41  ;;  %v711_v41 = vpack.c.bf16 %v597_v39, %v594_v38 }
 0x17e   : > { %1735 = vperm.xlu0 %5265, %v1636_v45  }
 0x17f   : > { %1166 = vmatmul.mubr.bf16.gmra.mrb[20].mxu0 %v651_v43  ;;  %v5344_v43 = vld [vmem:[%s8735_s2 + $0x1d4] ss:$28 sps:$4 sm:$0xff]  }
 0x180   : > { %1175 = vmatprep.mubr.bf16.mxu0 %v8739_v53  ;;  %3795 = vmatprep.subr.bf16.mxu0 %v5344_v43  ;;  %v600_v43 = vld [vmem:[%s8734_s1 + $0x4f0] sm:$0xff] }
 0x181   : > { %3796 = vmatpush1.bf16.msra.mxu0 %v5342_v44  ;;  %v603_v44 = vld [vmem:[%s8734_s1 + $0x508] sm:$0xff] }
 0x182   : > { %3797 = vmatprep.subr.bf16.mxu0 %v5347_v47  ;;  %v714_v46 = vpack.c.bf16 %v603_v44, %v600_v43  ;;  %v1637_v47 = vld [vmem:[%s8736_s3 + $0x48] sm:$0xff]  ;;  %v630_v43 = vld [vmem:[%s8734_s1 + $0x5e0] sm:$0xff]  ;;  %v633_v44 = vld [vmem:[%s8734_s1 + $0x5f8] sm:$0xff] }
 0x185   : > { %3798 = vmatpush1.bf16.msra.mxu0 %v5345_v48  ;;  %v606_v48 = vld [vmem:[%s8734_s1 + $0x520] sm:$0xff] }
 0x187   : > { %1176 = vmatmul.mubr.bf16.gmra.mrb[24].mxu0 %v654_v50  ;;  %v5350_v50 = vld [vmem:[%s8735_s2 + $0x244] ss:$28 sps:$4 sm:$0xff]  }
 0x188   : > { %1185 = vmatprep.mubr.bf16.mxu0 %v8739_v53  ;;  %3799 = vmatprep.subr.bf16.mxu0 %v5350_v50 }
 0x189   : > { %3800 = vmatpush1.bf16.msra.mxu0 %v5348_v51  ;;  %v1638_v51 = vld [vmem:[%s8736_s3 + $0x50] sm:$0xff] }
 0x18a   : > { %3801 = vmatprep.subr.bf16.mxu0 %v5356_v55  ;;  %1745 = vperm.xlu0 %5265, %v1638_v51  }
 0x18d   : > { %3802 = vmatpush1.bf16.msra.mxu0 %v5354_v56  ;;  %v1639_v56 = vld [vmem:[%s8736_s3 + $0x58] sm:$0xff] }
 0x18f   : > { %1186 = vmatmul.mubr.bf16.gmra.mrb[28].mxu0 %v657_v58  ;;  %v5359_v58 = vld [vmem:[%s8735_s2 + $0x2b4] ss:$28 sps:$4 sm:$0xff]  }
 0x190   : > { %1195 = vmatprep.mubr.bf16.mxu0 %v8739_v53  ;;  %3803 = vmatprep.subr.bf16.mxu0 %v5359_v58 }
 0x191   : > { %3804 = vmatpush1.bf16.msra.mxu0 %v5357_v59 }
 0x192   : > { %3805 = vmatprep.subr.bf16.mxu0 %v5362_v62  ;;  %v612_v62 = vld [vmem:[%s8734_s1 + $0x550] sm:$0xff] }
 0x195   : > { %3806 = vmatpush1.bf16.msra.mxu0 %v5360_v63  ;;  %v615_v63 = vld [vmem:[%s8734_s1 + $0x568] sm:$0xff] }
 0x196   : > { %v720_v4 = vpack.c.bf16 %v615_v63, %v612_v62  ;;  %v5390_v62 = vld [vmem:[%s8735_s2 + $0x200] ss:$28 sps:$4 sm:$0xff]  }
 0x197   : > { %1196 = vmatmul.mubr.bf16.gmra.mrb[32].mxu0 %v660_v1  ;;  %v5365_v1 = vld [vmem:[%s8735_s2 + $0x324] ss:$28 sps:$4 sm:$0xff]  }
 0x198   : > { %1205 = vmatprep.mubr.bf16.mxu0 %v8739_v53  ;;  %3807 = vmatprep.subr.bf16.mxu0 %v5365_v1  ;;  %v5351_v1 = vld [vmem:[%s8735_s2 + $0x40] ss:$28 sps:$4 sm:$0xff]  }
 0x199   : > { %3808 = vmatpush1.bf16.msra.mxu0 %v5363_v2  ;;  %v1640_v2 = vld [vmem:[%s8736_s3 + $0x60] sm:$0xff] }
 0x19a   : > { %3809 = vmatprep.subr.bf16.mxu0 %v5371_v5  ;;  %v5368_v5 = vld [vmem:[%s8735_s2 + $0x7c] ss:$28 sps:$4 sm:$0xff]   ;;  %1755 = vperm.xlu0 %5265, %v1640_v2   ;;  %v1648_v63 = vld [vmem:[%s8736_s3 + $0xa0] sm:$0xff] }
 0x19d   : > { %3810 = vmatpush1.bf16.msra.mxu0 %v5369_v6 }
 0x19e   : > { %1765 = vperm.xlu0 %5265, %v1642_v17  }
 0x19f   : > { %1206 = vmatmul.mubr.bf16.gmra.mrb[36].mxu0 %v663_v12  ;;  %v555_v12 = vld [vmem:[%s8734_s1 + $0x388] sm:$0xff] }
 0x1a0   : > { %1215 = vmatprep.mubr.bf16.mxu0 %v8739_v53  ;;  %v690_v13 = vpack.c.bf16 %v555_v12, %v552_v11  ;;  %v5366_v11 = vld [vmem:[%s8735_s2 + $0x78] ss:$28 sps:$4 sm:$0xff]  }
 0x1a1   : > { %v5374_v12 = vld [vmem:[%s8735_s2 + $0xb4] ss:$28 sps:$4 sm:$0xff]  }
 0x1a7   : > { %1216 = vmatmul.mubr.bf16.gmra.mrb[40].mxu0 %v666_v23  ;;  %v576_v23 = vld [vmem:[%s8734_s1 + $0x430] sm:$0xff] }
 0x1a8   : > { %1225 = vmatprep.mubr.bf16.mxu0 %v8739_v53  ;;  %v702_v26 = vpack.c.bf16 %v579_v24, %v576_v23 }
 0x1af   : > { %1226 = vmatmul.mubr.bf16.gmra.mrb[44].mxu0 %v669_v32  ;;  %v1631_v32 = vld [vmem:[%s8736_s3 + $0x18] sm:$0xff] }
 0x1b0   : > { %1235 = vmatprep.mubr.bf16.mxu0 %v8739_v53  ;;  %1710 = vperm.xlu1 %5266, %v1631_v32   ;;  %v1644_v32 = vld [vmem:[%s8736_s3 + $0x80] sm:$0xff] }
 0x1b1   : > { %1775 = vperm.xlu0 %5265, %v1644_v32  }
 0x1b4   : > { %1720 = vperm.xlu1 %5266, %v1633_v37   ;;  %v1645_v37 = vld [vmem:[%s8736_s3 + $0x88] sm:$0xff] }
 0x1b7   : > { %1236 = vmatmul.mubr.bf16.gmra.mrb[48].mxu0 %v672_v42  ;;  %v1635_v42 = vld [vmem:[%s8736_s3 + $0x38] sm:$0xff] }
 0x1b8   : > { %1245 = vmatprep.mubr.bf16.mxu0 %v8739_v53  ;;  %1730 = vperm.xlu1 %5266, %v1635_v42   ;;  %v5386_v42 = vld [vmem:[%s8735_s2 + $0x194] ss:$28 sps:$4 sm:$0xff]  }
 0x1bc   : > { %1740 = vperm.xlu1 %5266, %v1637_v47   ;;  %v1646_v47 = vld [vmem:[%s8736_s3 + $0x90] sm:$0xff] }
 0x1bd   : > { %1785 = vperm.xlu0 %5265, %v1646_v47  }
 0x1bf   : > { %1246 = vmatmul.mubr.bf16.gmra.mrb[52].mxu0 %v675_v49  ;;  %v609_v49 = vld [vmem:[%s8734_s1 + $0x538] sm:$0xff] }
 0x1c0   : > { %1255 = vmatprep.mubr.bf16.mxu0 %v8739_v53  ;;  %v717_v54 = vpack.c.bf16 %v609_v49, %v606_v48  ;;  %1750 = vperm.xlu1 %5266, %v1639_v56   ;;  %v729_v49 = vpack.c.bf16 %v633_v44, %v630_v43  ;;  %v1656_v43 = vld [vmem:[%s8736_s3 + $0xe0] sm:$0xff] }
 0x1c1   : > { %1795 = vperm.xlu0 %5265, %v1648_v63   ;;  %v5402_v63 = vld [vmem:[%s8735_s2 + $0x2e0] ss:$28 sps:$4 sm:$0xff]  }
 0x1c7   : > { %1256 = vmatmul.mubr.bf16.gmra.mrb[56].mxu0 %v678_v57 }
 0x1c8   : > { %1265 = vmatprep.mubr.bf16.mxu0 %v8739_v53 }
 0x1cf   : > { %1266 = vmatmul.mubr.bf16.gmra.mrb[60].mxu0 %v681_v0 }
 0x1d0   : > { %1275 = vmatprep.mubr.bf16.mxu0 %v8739_v53 }
 0x1d7   : > { %1276 = vmatmul.mubr.bf16.gmra.mrb[64].mxu0 %v684_v7  ;;  %v1641_v7 = vld [vmem:[%s8736_s3 + $0x68] sm:$0xff] }
 0x1d8   : > { %1285 = vmatprep.mubr.bf16.mxu0 %v8739_v53  ;;  %1760 = vperm.xlu1 %5266, %v1641_v7   ;;  %v5393_v7 = vld [vmem:[%s8735_s2 + $0x238] ss:$28 sps:$4 sm:$0xff]  }
 0x1df   : > { %1286 = vmatmul.mubr.bf16.gmra.mrb[68].mxu0 %v687_v10 }
 0x1e0   : > { %1295 = vmatprep.mubr.bf16.mxu0 %v8739_v53 }
 0x1e7   : > { %1296 = vmatmul.mubr.bf16.gmra.mrb[72].mxu0 %v690_v13  ;;  %v618_v13 = vld [vmem:[%s8734_s1 + $0x580] sm:$0xff] }
 0x1e8   : > { %1305 = vmatprep.mubr.bf16.mxu0 %v8739_v53 }
 0x1ef   : > { %1306 = vmatmul.mubr.bf16.gmra.mrb[76].mxu0 %v693_v16  ;;  %v5372_v16 = vld [vmem:[%s8735_s2 + $0xb0] ss:$28 sps:$4 sm:$0xff]  }
 0x1f0   : > { %1315 = vmatprep.mubr.bf16.mxu0 %v8739_v53 }
 0x1f7   : > { %1316 = vmatmul.mubr.bf16.gmra.mrb[80].mxu0 %v696_v19  ;;  %v723_v19 = vpack.c.bf16 %v621_v14, %v618_v13  ;;  %v1651_v14 = vld [vmem:[%s8736_s3 + $0xb8] sm:$0xff] }
 0x1f8   : > { %1325 = vmatprep.mubr.bf16.mxu0 %v8739_v53 }
 0x1ff   : > { %1326 = vmatmul.mubr.bf16.gmra.mrb[84].mxu0 %v699_v22  ;;  %v1643_v22 = vld [vmem:[%s8736_s3 + $0x78] sm:$0xff] }
 0x200   : > { %1335 = vmatprep.mubr.bf16.mxu0 %v8739_v53  ;;  %1770 = vperm.xlu1 %5266, %v1643_v22  }
 0x204   : > { %1780 = vperm.xlu1 %5266, %v1645_v37  }
 0x207   : > { %1336 = vmatmul.mubr.bf16.gmra.mrb[88].mxu0 %v702_v26  ;;  %v5375_v26 = vld [vmem:[%s8735_s2 + $0xe8] ss:$28 sps:$4 sm:$0xff]  }
 0x208   : > { %1345 = vmatprep.mubr.bf16.mxu0 %v8739_v53 }
 0x20f   : > { %1346 = vmatmul.mubr.bf16.gmra.mrb[92].mxu0 %v705_v31  ;;  %v5378_v31 = vld [vmem:[%s8735_s2 + $0x120] ss:$28 sps:$4 sm:$0xff]  }
 0x210   : > { %1355 = vmatprep.mubr.bf16.mxu0 %v8739_v53 }
 0x217   : > { %1356 = vmatmul.mubr.bf16.gmra.mrb[96].mxu0 %v708_v36 }
 0x218   : > { %1365 = vmatprep.mubr.bf16.mxu0 %v8739_v53 }
 0x21f   : > { %1366 = vmatmul.mubr.bf16.gmra.mrb[100].mxu0 %v711_v41  ;;  %v5381_v41 = vld [vmem:[%s8735_s2 + $0x158] ss:$28 sps:$4 sm:$0xff]  }
 0x220   : > { %1375 = vmatprep.mubr.bf16.mxu0 %v8739_v53 }
 0x227   : > { %1376 = vmatmul.mubr.bf16.gmra.mrb[104].mxu0 %v714_v46  ;;  %v5384_v46 = vld [vmem:[%s8735_s2 + $0x190] ss:$28 sps:$4 sm:$0xff]  }
 0x228   : > { %1385 = vmatprep.mubr.bf16.mxu0 %v8739_v53 }
 0x22a   : > { %v1117_v50 = vpop.f32.mrb[0].mxu0 }
 0x22b   : > { %v1119_v52 = vpop.f32.mrb[1].mxu0 }
 0x22c   : > { %v1121_v55 = vpop.f32.mrb[2].mxu0 }
 0x22d   : > { %v6419_v57 = vpack.c.bf16 %v1121_v55, %v1117_v50  ;;  %v1123_v58 = vpop.f32.mrb[3].mxu0  ;;  %v5389_v50 = vld [vmem:[%s8735_s2 + $0x1cc] ss:$28 sps:$4 sm:$0xff]  }
 0x22e   : > { %v6421_v59 = vpack.c.bf16 %v1123_v58, %v1119_v52  ;;  %v1647_v52 = vld [vmem:[%s8736_s3 + $0x98] sm:$0xff]  ;;  %v5387_v58 = vld [vmem:[%s8735_s2 + $0x1c8] ss:$28 sps:$4 sm:$0xff]  }
 0x22f   : > { %8927 = vst [vmem:[#allocation2_spill] sm:$0xff] %v6419_v57  ;;  %1386 = vmatmul.mubr.bf16.gmra.mrb[108].mxu0 %v717_v54  ;;  %1790 = vperm.xlu1 %5266, %v1647_v52  }
 0x230   : > { %8928 = vst [vmem:[#allocation3_spill] sm:$0xff] %v6421_v59  ;;  %3105 = vmatprep.mubr.bf16.mxu1 %v6421_v59  ;;  %1395 = vmatprep.mubr.bf16.mxu0 %v8739_v53 }
 0x231   : > { %3106 = vmatmul.mubr.bf16.vlgmr.msra.gmra.mrb[0].mxu1 %v6419_v57 }
 0x232   : > { %v1127_v0 = vpop.f32.mrb[4].mxu0  ;;  %3427 = vmatpush1.bf16.msra.mxu1 %v5336_v60  ;;  %v5392_v60 = vld [vmem:[%s8735_s2 + $0x204] ss:$28 sps:$4 sm:$0xff]  }
 0x233   : > { %v1129_v3 = vpop.f32.mrb[5].mxu0  ;;  %3428 = vmatprep.subr.bf16.mxu1 %v5353_v61 }
 0x234   : > { %v1131_v6 = vpop.f32.mrb[6].mxu0 }
 0x235   : > { %v6450_v8 = vpack.c.bf16 %v1131_v6, %v1127_v0  ;;  %v1133_v9 = vpop.f32.mrb[7].mxu0 }
 0x236   : > { %v6452_v10 = vpack.c.bf16 %v1133_v9, %v1129_v3  ;;  %3429 = vmatpush1.bf16.msra.mxu1 %v5351_v1  ;;  %v5395_v1 = vld [vmem:[%s8735_s2 + $0x23c] ss:$28 sps:$4 sm:$0xff]   ;;  %v1649_v3 = vld [vmem:[%s8736_s3 + $0xa8] sm:$0xff] }
 0x237   : > { %8929 = vst [vmem:[#allocation4_spill] sm:$0xff] %v6450_v8  ;;  %1396 = vmatmul.mubr.bf16.gmra.mrb[112].mxu0 %v720_v4  ;;  %3430 = vmatprep.subr.bf16.mxu1 %v5368_v5 }
 0x238   : > { %8930 = vst [vmem:[#allocation5_spill] sm:$0xff] %v6452_v10  ;;  %3115 = vmatprep.mubr.bf16.mxu1 %v6452_v10  ;;  %1405 = vmatprep.mubr.bf16.mxu0 %v8739_v53 }
 0x239   : > { %3116 = vmatmul.mubr.bf16.gmra.mrb[4].mxu1 %v6450_v8  ;;  %1800 = vperm.xlu1 %5266, %v1649_v3  }
 0x23a   : > { %v1137_v15 = vpop.f32.mrb[8].mxu0  ;;  %3431 = vmatpush1.bf16.msra.mxu1 %v5366_v11  ;;  %v1650_v11 = vld [vmem:[%s8736_s3 + $0xb0] sm:$0xff] }
 0x23b   : > { %v1139_v18 = vpop.f32.mrb[9].mxu0  ;;  %3432 = vmatprep.subr.bf16.mxu1 %v5374_v12  ;;  %1805 = vperm.xlu0 %5265, %v1650_v11  }
 0x23c   : > { %v1141_v21 = vpop.f32.mrb[10].mxu0 }
 0x23d   : > { %v6481_v23 = vpack.c.bf16 %v1141_v21, %v1137_v15  ;;  %v1143_v24 = vpop.f32.mrb[11].mxu0  ;;  %1810 = vperm.xlu1 %5266, %v1651_v14   ;;  %v1652_v21 = vld [vmem:[%s8736_s3 + $0xc0] sm:$0xff]  ;;  %v1662_v14 = vld [vmem:[%s8736_s3 + $0x110] sm:$0xff] }
 0x23e   : > { %v6483_v25 = vpack.c.bf16 %v1143_v24, %v1139_v18  ;;  %3433 = vmatpush1.bf16.msra.mxu1 %v5372_v16  ;;  %v5396_v18 = vld [vmem:[%s8735_s2 + $0x270] ss:$28 sps:$4 sm:$0xff]  }
 0x23f   : > { %8931 = vst [vmem:[#allocation6_spill] sm:$0xff] %v6481_v23  ;;  %1406 = vmatmul.mubr.bf16.gmra.mrb[116].mxu0 %v723_v19  ;;  %3434 = vmatprep.subr.bf16.mxu1 %v5377_v20  ;;  %v5398_v19 = vld [vmem:[%s8735_s2 + $0x274] ss:$28 sps:$4 sm:$0xff]  }
 0x240   : > { %8932 = vst [vmem:[#allocation7_spill] sm:$0xff] %v6483_v25  ;;  %3125 = vmatprep.mubr.bf16.mxu1 %v6483_v25  ;;  %1415 = vmatprep.mubr.bf16.mxu0 %v8739_v53 }
 0x241   : > { %3126 = vmatmul.mubr.bf16.gmra.mrb[8].mxu1 %v6481_v23  ;;  %1815 = vperm.xlu0 %5265, %v1652_v21  }
 0x242   : > { %v1147_v30 = vpop.f32.mrb[12].mxu0  ;;  %3435 = vmatpush1.bf16.msra.mxu1 %v5375_v26  ;;  %v1653_v26 = vld [vmem:[%s8736_s3 + $0xc8] sm:$0xff] }
 0x243   : > { %v1149_v33 = vpop.f32.mrb[13].mxu0  ;;  %3436 = vmatprep.subr.bf16.mxu1 %v5380_v27  ;;  %1820 = vperm.xlu1 %5266, %v1653_v26   ;;  %v5405_v26 = vld [vmem:[%s8735_s2 + $0x318] ss:$28 sps:$4 sm:$0xff]  }
 0x244   : > { %v1151_v36 = vpop.f32.mrb[14].mxu0 }
 0x245   : > { %v6512_v38 = vpack.c.bf16 %v1151_v36, %v1147_v30  ;;  %v1153_v39 = vpop.f32.mrb[15].mxu0 }
 0x246   : > { %v6514_v40 = vpack.c.bf16 %v1153_v39, %v1149_v33  ;;  %3437 = vmatpush1.bf16.msra.mxu1 %v5378_v31  ;;  %v1654_v31 = vld [vmem:[%s8736_s3 + $0xd0] sm:$0xff]  ;;  %v5399_v39 = vld [vmem:[%s8735_s2 + $0x2a8] ss:$28 sps:$4 sm:$0xff]  }
 0x247   : > { %1416 = vmatmul.mubr.bf16.gmra.mrb[120].mxu0 %v726_v34  ;;  %3438 = vmatprep.subr.bf16.mxu1 %v5383_v35  ;;  %v1655_v34 = vld [vmem:[%s8736_s3 + $0xd8] sm:$0xff] }
 0x248   : > { %8933 = vst [vmem:[#allocation8_spill] sm:$0xff] %v6514_v40  ;;  %3135 = vmatprep.mubr.bf16.mxu1 %v6514_v40  ;;  %1425 = vmatprep.mubr.bf16.mxu0 %v8739_v53 }
 0x249   : > { %3136 = vmatmul.mubr.bf16.gmra.mrb[12].mxu1 %v6512_v38  ;;  %1825 = vperm.xlu0 %5265, %v1654_v31  }
 0x24a   : > { %v1157_v45 = vpop.f32.mrb[16].mxu0  ;;  %3439 = vmatpush1.bf16.msra.mxu1 %v5381_v41  ;;  %1830 = vperm.xlu1 %5266, %v1655_v34   ;;  %v5401_v41 = vld [vmem:[%s8735_s2 + $0x2ac] ss:$28 sps:$4 sm:$0xff]  }
 0x24b   : > { %v1159_v48 = vpop.f32.mrb[17].mxu0  ;;  %3440 = vmatprep.subr.bf16.mxu1 %v5386_v42 }
 0x24c   : > { %v1161_v51 = vpop.f32.mrb[18].mxu0 }
 0x24d   : > { %v6543_v54 = vpack.c.bf16 %v1161_v51, %v1157_v45  ;;  %v1163_v55 = vpop.f32.mrb[19].mxu0  ;;  %1835 = vperm.xlu0 %5265, %v1656_v43   ;;  %v1658_v51 = vld [vmem:[%s8736_s3 + $0xf0] sm:$0xff] }
 0x24e   : > { %v6545_v56 = vpack.c.bf16 %v1163_v55, %v1159_v48  ;;  %3441 = vmatpush1.bf16.msra.mxu1 %v5384_v46  ;;  %v1657_v46 = vld [vmem:[%s8736_s3 + $0xe8] sm:$0xff] }
 0x24f   : > { %8934 = vst [vmem:[#allocation9_spill] sm:$0xff] %v6543_v54  ;;  %1426 = vmatmul.mubr.bf16.gmra.mrb[124].mxu0 %v729_v49  ;;  %3442 = vmatprep.subr.bf16.mxu1 %v5389_v50 }
 0x250   : > { %8935 = vst [vmem:[#allocation10_spill] sm:$0xff] %v6545_v56  ;;  %3145 = vmatprep.mubr.bf16.mxu1 %v6545_v56  ;;  %3811 = vmatprep.mubr.bf16.mxu0 %v6421_v59 }
 0x251   : > { %3146 = vmatmul.mubr.bf16.gmra.mrb[16].mxu1 %v6543_v54  ;;  %1840 = vperm.xlu1 %5266, %v1657_v46  }
 0x252   : > { %v1167_v61 = vpop.f32.mrb[20].mxu0  ;;  %3443 = vmatpush1.bf16.msra.mxu1 %v5387_v58  ;;  %1845 = vperm.xlu0 %5265, %v1658_v51   ;;  %v1659_v58 = vld [vmem:[%s8736_s3 + $0xf8] sm:$0xff] }
 0x253   : > { %v1169_v0 = vpop.f32.mrb[21].mxu0  ;;  %3444 = vmatprep.subr.bf16.mxu1 %v5392_v60 }
 0x254   : > { %v1171_v2 = vpop.f32.mrb[22].mxu0 }
 0x255   : > { %v6568_v4 = vpack.c.bf16 %v1171_v2, %v1167_v61  ;;  %v1173_v5 = vpop.f32.mrb[23].mxu0  ;;  %1850 = vperm.xlu1 %5266, %v1659_v58   ;;  %v1660_v2 = vld [vmem:[%s8736_s3 + $0x100] sm:$0xff] }
 0x256   : > { %v6570_v6 = vpack.c.bf16 %v1173_v5, %v1169_v0  ;;  %3445 = vmatpush1.bf16.msra.mxu1 %v5390_v62  ;;  %v5404_v0 = vld [vmem:[%s8735_s2 + $0x2e4] ss:$28 sps:$4 sm:$0xff]   ;;  %1855 = vperm.xlu0 %5265, %v1660_v2  }
 0x257   : > { %8936 = vst [vmem:[#allocation11_spill] sm:$0xff] %v6568_v4  ;;  %3812 = vmatmul.mubr.bf16.vlgmr.msra.gmra.mrb[128].mxu0 %v6419_v57  ;;  %3446 = vmatprep.subr.bf16.mxu1 %v5395_v1  ;;  %v1668_v58 = vld [vmem:[%s8736_s3 + $0x140] sm:$0xff] }
 0x258   : > { %8937 = vst [vmem:[#allocation12_spill] sm:$0xff] %v6570_v6  ;;  %3155 = vmatprep.mubr.bf16.mxu1 %v6570_v6  ;;  %3821 = vmatprep.mubr.bf16.mxu0 %v6452_v10 }
 0x259   : > { %3156 = vmatmul.mubr.bf16.gmra.mrb[20].mxu1 %v6568_v4 }
 0x25a   : > { %v1177_v9 = vpop.f32.mrb[24].mxu0  ;;  %3447 = vmatpush1.bf16.msra.mxu1 %v5393_v7  ;;  %v1661_v7 = vld [vmem:[%s8736_s3 + $0x108] sm:$0xff]  ;;  %1865 = vperm.xlu0 %5265, %v1662_v14   ;;  %v1671_v14 = vld [vmem:[%s8736_s3 + $0x158] sm:$0xff] }
 0x25b   : > { %v1179_v12 = vpop.f32.mrb[25].mxu0  ;;  %3448 = vmatprep.subr.bf16.mxu1 %v5398_v19  ;;  %1860 = vperm.xlu1 %5266, %v1661_v7   ;;  %v1663_v19 = vld [vmem:[%s8736_s3 + $0x118] sm:$0xff]  ;;  %v1670_v7 = vld [vmem:[%s8736_s3 + $0x150] sm:$0xff] }
 0x25c   : > { %v1181_v13 = vpop.f32.mrb[26].mxu0 }
 0x25d   : > { %v6585_v15 = vpack.c.bf16 %v1181_v13, %v1177_v9  ;;  %v1183_v16 = vpop.f32.mrb[27].mxu0 }
 0x25e   : > { %v6587_v17 = vpack.c.bf16 %v1183_v16, %v1179_v12  ;;  %3449 = vmatpush1.bf16.msra.mxu1 %v5396_v18 }
 0x25f   : > { %8938 = vst [vmem:[#allocation13_spill] sm:$0xff] %v6585_v15  ;;  %3822 = vmatmul.mubr.bf16.gmra.mrb[132].mxu0 %v6450_v8  ;;  %3450 = vmatprep.subr.bf16.mxu1 %v5401_v41 }
 0x260   : > { %8939 = vst [vmem:[#allocation14_spill] sm:$0xff] %v6587_v17  ;;  %3165 = vmatprep.mubr.bf16.mxu1 %v6587_v17  ;;  %3831 = vmatprep.mubr.bf16.mxu0 %v6483_v25 }
 0x261   : > { %3166 = vmatmul.mubr.bf16.gmra.mrb[24].mxu1 %v6585_v15  ;;  %1870 = vperm.xlu1 %5266, %v1663_v19  }
 0x262   : > { %v1187_v20 = vpop.f32.mrb[28].mxu0  ;;  %3451 = vmatpush1.bf16.msra.mxu1 %v5399_v39 }
 0x263   : > { %v1189_v22 = vpop.f32.mrb[29].mxu0  ;;  %3452 = vmatprep.subr.bf16.mxu1 %v5404_v0  ;;  %v1669_v0 = vld [vmem:[%s8736_s3 + $0x148] sm:$0xff] }
 0x264   : > { %v1191_v24 = vpop.f32.mrb[30].mxu0 }
 0x265   : > { %v6605_v27 = vpack.c.bf16 %v1191_v24, %v1187_v20  ;;  %v1193_v28 = vpop.f32.mrb[31].mxu0 }
 0x266   : > { %v6607_v29 = vpack.c.bf16 %v1193_v28, %v1189_v22  ;;  %3453 = vmatpush1.bf16.msra.mxu1 %v5402_v63  ;;  %v5407_v28 = vld [vmem:[%s8735_s2 + $0x31c] ss:$28 sps:$4 sm:$0xff]  }
 0x267   : > { %8940 = vst [vmem:[#allocation15_spill] sm:$0xff] %v6605_v27  ;;  %3832 = vmatmul.mubr.bf16.gmra.mrb[136].mxu0 %v6481_v23  ;;  %3454 = vmatprep.subr.bf16.mxu1 %v5407_v28 }
 0x268   : > { %8941 = vst [vmem:[#allocation16_spill] sm:$0xff] %v6607_v29  ;;  %3175 = vmatprep.mubr.bf16.mxu1 %v6607_v29  ;;  %3841 = vmatprep.mubr.bf16.mxu0 %v6514_v40 }
 0x269   : > { %3176 = vmatmul.mubr.bf16.gmra.mrb[28].mxu1 %v6605_v27 }
 0x26a   : > { %v1197_v30 = vpop.f32.mrb[32].mxu0  ;;  %3455 = vmatpush1.bf16.msra.mxu1 %v5405_v26 }
 0x26b   : > { %v1199_v32 = vpop.f32.mrb[33].mxu0 }
 0x26c   : > { %v1201_v33 = vpop.f32.mrb[34].mxu0 }
 0x26d   : > { %v6619_v35 = vpack.c.bf16 %v1201_v33, %v1197_v30  ;;  %v1203_v36 = vpop.f32.mrb[35].mxu0  ;;  %v1664_v30 = vld [vmem:[%s8736_s3 + $0x120] sm:$0xff]  ;;  %v1665_v33 = vld [vmem:[%s8736_s3 + $0x128] sm:$0xff] }
 0x26e   : > { %v6621_v37 = vpack.c.bf16 %v1203_v36, %v1199_v32  ;;  %1875 = vperm.xlu0 %5265, %v1664_v30   ;;  %1880 = vperm.xlu1 %5266, %v1665_v33   ;;  %v1673_v30 = vld [vmem:[%s8736_s3 + $0x168] sm:$0xff] }
 0x26f   : > { %8942 = vst [vmem:[#allocation17_spill] sm:$0xff] %v6619_v35  ;;  %3842 = vmatmul.mubr.bf16.gmra.mrb[140].mxu0 %v6512_v38 }
 0x270   : > { %8943 = vst [vmem:[#allocation18_spill] sm:$0xff] %v6621_v37  ;;  %3185 = vmatprep.mubr.bf16.mxu1 %v6621_v37  ;;  %3851 = vmatprep.mubr.bf16.mxu0 %v6545_v56 }
 0x271   : > { %3186 = vmatmul.mubr.bf16.gmra.mrb[32].mxu1 %v6619_v35 }
 0x272   : > { %v1207_v42 = vpop.f32.mrb[36].mxu0 }
 0x273   : > { %v1209_v44 = vpop.f32.mrb[37].mxu0 }
 0x274   : > { %v1211_v45 = vpop.f32.mrb[38].mxu0 }
 0x275   : > { %v6639_v47 = vpack.c.bf16 %v1211_v45, %v1207_v42  ;;  %v1213_v48 = vpop.f32.mrb[39].mxu0  ;;  %v1666_v42 = vld [vmem:[%s8736_s3 + $0x130] sm:$0xff]  ;;  %v1667_v45 = vld [vmem:[%s8736_s3 + $0x138] sm:$0xff] }
 0x276   : > { %v6641_v49 = vpack.c.bf16 %v1213_v48, %v1209_v44  ;;  %1885 = vperm.xlu0 %5265, %v1666_v42   ;;  %1890 = vperm.xlu1 %5266, %v1667_v45  }
 0x277   : > { %8944 = vst [vmem:[#allocation19_spill] sm:$0xff] %v6639_v47  ;;  %3852 = vmatmul.mubr.bf16.gmra.mrb[144].mxu0 %v6543_v54 }
 0x278   : > { %8945 = vst [vmem:[#allocation20_spill] sm:$0xff] %v6641_v49  ;;  %3195 = vmatprep.mubr.bf16.mxu1 %v6641_v49  ;;  %3861 = vmatprep.mubr.bf16.mxu0 %v6570_v6 }
 0x279   : > { %3196 = vmatmul.mubr.bf16.gmra.mrb[36].mxu1 %v6639_v47 }
 0x27a   : > { %v1217_v50 = vpop.f32.mrb[40].mxu0  ;;  %1895 = vperm.xlu0 %5265, %v1668_v58   ;;  %1900 = vperm.xlu1 %5266, %v1669_v0  }
 0x27b   : > { %v1219_v52 = vpop.f32.mrb[41].mxu0 }
 0x27c   : > { %v1221_v55 = vpop.f32.mrb[42].mxu0 }
 0x27d   : > { %v6653_v60 = vpack.c.bf16 %v1221_v55, %v1217_v50  ;;  %v1223_v61 = vpop.f32.mrb[43].mxu0  ;;  %v5410_v55 = vld [vmem:[%s8735_s2 + $0x354] ss:$28 sps:$4 sm:$0xff]  }
 0x27e   : > { %v6655_v62 = vpack.c.bf16 %v1223_v61, %v1219_v52  ;;  %v5408_v52 = vld [vmem:[%s8735_s2 + $0x350] ss:$28 sps:$4 sm:$0xff]   ;;  %3456 = vmatprep.subr.bf16.mxu1 %v5410_v55  ;;  %1905 = vperm.xlu0 %5265, %v1670_v7   ;;  %v1676_v55 = vld [vmem:[%s8736_s3 + $0x180] sm:$0xff] }
 0x27f   : > { %8946 = vst [vmem:[#allocation21_spill] sm:$0xff] %v6653_v60  ;;  %3862 = vmatmul.mubr.bf16.gmra.mrb[148].mxu0 %v6568_v4  ;;  %3457 = vmatpush1.bf16.msra.mxu1 %v5408_v52 }
 0x280   : > { %8947 = vst [vmem:[#allocation22_spill] sm:$0xff] %v6655_v62  ;;  %3205 = vmatprep.mubr.bf16.mxu1 %v6655_v62  ;;  %3871 = vmatprep.mubr.bf16.mxu0 %v6587_v17 }
 0x281   : > { %3206 = vmatmul.mubr.bf16.gmra.mrb[40].mxu1 %v6653_v60  ;;  %4132 = vmatprep.subr.bf16.mxu1 %v8739_v53 }
 0x282   : > { %v1227_v1 = vpop.f32.mrb[44].mxu0  ;;  %1910 = vperm.xlu1 %5266, %v1671_v14  }
 0x283   : > { %v1229_v3 = vpop.f32.mrb[45].mxu0 }
 0x284   : > { %v1231_v5 = vpop.f32.mrb[46].mxu0 }
 0x285   : > { %v6673_v9 = vpack.c.bf16 %v1231_v5, %v1227_v1  ;;  %v1233_v11 = vpop.f32.mrb[47].mxu0 }
 0x286   : > { %v6675_v12 = vpack.c.bf16 %v1233_v11, %v1229_v3  ;;  %1920 = vperm.xlu1 %5266, %v1673_v30   ;;  %v1680_v30 = vld [vmem:[%s8736_s3 + $0x1a0] sm:$0xff] }
 0x287   : > { %8948 = vst [vmem:[#allocation23_spill] sm:$0xff] %v6673_v9  ;;  %3872 = vmatmul.mubr.bf16.gmra.mrb[152].mxu0 %v6585_v15 }
 0x288   : > { %8949 = vst [vmem:[#allocation24_spill] sm:$0xff] %v6675_v12  ;;  %3215 = vmatprep.mubr.bf16.mxu1 %v6675_v12  ;;  %3881 = vmatprep.mubr.bf16.mxu0 %v6607_v29 }
 0x289   : > { %3216 = vmatmul.mubr.bf16.gmra.mrb[44].mxu1 %v6673_v9 }
 0x28a   : > { %v1237_v13 = vpop.f32.mrb[48].mxu0 }
 0x28b   : > { %v1239_v16 = vpop.f32.mrb[49].mxu0 }
 0x28c   : > { %v1241_v18 = vpop.f32.mrb[50].mxu0 }
 0x28d   : > { %v6687_v20 = vpack.c.bf16 %v1241_v18, %v1237_v13  ;;  %v1243_v21 = vpop.f32.mrb[51].mxu0 }
 0x28e   : > { %v6689_v22 = vpack.c.bf16 %v1243_v21, %v1239_v16 }
 0x28f   : > { %8950 = vst [vmem:[#allocation25_spill] sm:$0xff] %v6687_v20  ;;  %3882 = vmatmul.mubr.bf16.gmra.mrb[156].mxu0 %v6605_v27 }
 0x290   : > { %8951 = vst [vmem:[#allocation26_spill] sm:$0xff] %v6689_v22  ;;  %3225 = vmatprep.mubr.bf16.mxu1 %v6689_v22  ;;  %3891 = vmatprep.mubr.bf16.mxu0 %v6621_v37 }
 0x291   : > { %3226 = vmatmul.mubr.bf16.gmra.mrb[48].mxu1 %v6687_v20 }
 0x292   : > { %v1247_v24 = vpop.f32.mrb[52].mxu0 }
 0x293   : > { %v1249_v31 = vpop.f32.mrb[53].mxu0 }
 0x294   : > { %v1251_v32 = vpop.f32.mrb[54].mxu0 }
 0x295   : > { %v6707_v34 = vpack.c.bf16 %v1251_v32, %v1247_v24  ;;  %v1253_v36 = vpop.f32.mrb[55].mxu0  ;;  %v1672_v24 = vld [vmem:[%s8736_s3 + $0x160] sm:$0xff] }
 0x296   : > { %v6709_v39 = vpack.c.bf16 %v1253_v36, %v1249_v31  ;;  %1915 = vperm.xlu0 %5265, %v1672_v24  }
 0x297   : > { %8952 = vst [vmem:[#allocation27_spill] sm:$0xff] %v6707_v34  ;;  %3892 = vmatmul.mubr.bf16.gmra.mrb[160].mxu0 %v6619_v35 }
 0x298   : > { %8953 = vst [vmem:[#allocation28_spill] sm:$0xff] %v6709_v39  ;;  %3235 = vmatprep.mubr.bf16.mxu1 %v6709_v39  ;;  %3901 = vmatprep.mubr.bf16.mxu0 %v6641_v49 }
 0x299   : > { %3236 = vmatmul.mubr.bf16.gmra.mrb[52].mxu1 %v6707_v34 }
 0x29a   : > { %v1257_v41 = vpop.f32.mrb[56].mxu0 }
 0x29b   : > { %v1259_v43 = vpop.f32.mrb[57].mxu0 }
 0x29c   : > { %v1261_v44 = vpop.f32.mrb[58].mxu0 }
 0x29d   : > { %v6721_v46 = vpack.c.bf16 %v1261_v44, %v1257_v41  ;;  %v1263_v48 = vpop.f32.mrb[59].mxu0  ;;  %v1674_v41 = vld [vmem:[%s8736_s3 + $0x170] sm:$0xff]  ;;  %v1675_v44 = vld [vmem:[%s8736_s3 + $0x178] sm:$0xff] }
 0x29e   : > { %v6723_v50 = vpack.c.bf16 %v1263_v48, %v1259_v43  ;;  %1925 = vperm.xlu0 %5265, %v1674_v41   ;;  %1930 = vperm.xlu1 %5266, %v1675_v44   ;;  %v1681_v41 = vld [vmem:[%s8736_s3 + $0x1a8] sm:$0xff] }
 0x29f   : > { %8954 = vst [vmem:[#allocation29_spill] sm:$0xff] %v6721_v46  ;;  %3902 = vmatmul.mubr.bf16.gmra.mrb[164].mxu0 %v6639_v47 }
 0x2a0   : > { %8955 = vst [vmem:[#allocation30_spill] sm:$0xff] %v6723_v50  ;;  %3245 = vmatprep.mubr.bf16.mxu1 %v6723_v50  ;;  %3911 = vmatprep.mubr.bf16.mxu0 %v6655_v62 }
 0x2a1   : > { %3246 = vmatmul.mubr.bf16.gmra.mrb[56].mxu1 %v6721_v46 }
 0x2a2   : > { %v1267_v51 = vpop.f32.mrb[60].mxu0  ;;  %1935 = vperm.xlu0 %5265, %v1676_v55  }
 0x2a3   : > { %v1269_v61 = vpop.f32.mrb[61].mxu0 }
 0x2a4   : > { %v1271_v63 = vpop.f32.mrb[62].mxu0 }
 0x2a5   : > { %v6741_v1 = vpack.c.bf16 %v1271_v63, %v1267_v51  ;;  %v1273_v2 = vpop.f32.mrb[63].mxu0  ;;  %v1677_v63 = vld [vmem:[%s8736_s3 + $0x188] sm:$0xff] }
 0x2a6   : > { %v6743_v3 = vpack.c.bf16 %v1273_v2, %v1269_v61  ;;  %1940 = vperm.xlu1 %5266, %v1677_v63  }
 0x2a7   : > { %8956 = vst [vmem:[#allocation31_spill] sm:$0xff] %v6741_v1  ;;  %3912 = vmatmul.mubr.bf16.gmra.mrb[168].mxu0 %v6653_v60 }
 0x2a8   : > { %8957 = vst [vmem:[#allocation32_spill] sm:$0xff] %v6743_v3  ;;  %3255 = vmatprep.mubr.bf16.mxu1 %v6743_v3  ;;  %3921 = vmatprep.mubr.bf16.mxu0 %v6675_v12 }
 0x2a9   : > { %3256 = vmatmul.mubr.bf16.gmra.mrb[60].mxu1 %v6741_v1 }
 0x2aa   : > { %v1277_v5 = vpop.f32.mrb[64].mxu0 }
 0x2ab   : > { %v1279_v11 = vpop.f32.mrb[65].mxu0 }
 0x2ac   : > { %v1281_v13 = vpop.f32.mrb[66].mxu0 }
 0x2ad   : > { %v6756_v16 = vpack.c.bf16 %v1281_v13, %v1277_v5  ;;  %v1283_v18 = vpop.f32.mrb[67].mxu0 }
 0x2ae   : > { %v6758_v19 = vpack.c.bf16 %v1283_v18, %v1279_v11  ;;  %v1678_v11 = vld [vmem:[%s8736_s3 + $0x190] sm:$0xff]  ;;  %v1679_v18 = vld [vmem:[%s8736_s3 + $0x198] sm:$0xff] }
 0x2af   : > { %8958 = vst [vmem:[#allocation33_spill] sm:$0xff] %v6756_v16  ;;  %3922 = vmatmul.mubr.bf16.gmra.mrb[172].mxu0 %v6673_v9  ;;  %1945 = vperm.xlu0 %5265, %v1678_v11  }
 0x2b0   : > { %8959 = vst [vmem:[#allocation34_spill] sm:$0xff] %v6758_v19  ;;  %3265 = vmatprep.mubr.bf16.mxu1 %v6758_v19  ;;  %3931 = vmatprep.mubr.bf16.mxu0 %v6689_v22 }
 0x2b1   : > { %3266 = vmatmul.mubr.bf16.gmra.mrb[64].mxu1 %v6756_v16  ;;  %1950 = vperm.xlu1 %5266, %v1679_v18  }
 0x2b2   : > { %v1287_v21 = vpop.f32.mrb[68].mxu0 }
 0x2b3   : > { %v1289_v26 = vpop.f32.mrb[69].mxu0  ;;  %1955 = vperm.xlu0 %5265, %v1680_v30  }
 0x2b4   : > { %v1291_v28 = vpop.f32.mrb[70].mxu0 }
 0x2b5   : > { %v6770_v31 = vpack.c.bf16 %v1291_v28, %v1287_v21  ;;  %v1293_v32 = vpop.f32.mrb[71].mxu0  ;;  %1960 = vperm.xlu1 %5266, %v1681_v41   ;;  %v1686_v41 = vld [vmem:[%s8736_s3 + $0x1d0] sm:$0xff] }
 0x2b6   : > { %v6772_v33 = vpack.c.bf16 %v1293_v32, %v1289_v26 }
 0x2b7   : > { %8960 = vst [vmem:[#allocation35_spill] sm:$0xff] %v6770_v31  ;;  %3932 = vmatmul.mubr.bf16.gmra.mrb[176].mxu0 %v6687_v20 }
 0x2b8   : > { %8961 = vst [vmem:[#allocation36_spill] sm:$0xff] %v6772_v33  ;;  %3275 = vmatprep.mubr.bf16.mxu1 %v6772_v33  ;;  %3941 = vmatprep.mubr.bf16.mxu0 %v6709_v39 }
 0x2b9   : > { %3276 = vmatmul.mubr.bf16.gmra.mrb[68].mxu1 %v6770_v31 }
 0x2ba   : > { %v1297_v36 = vpop.f32.mrb[72].mxu0 }
 0x2bb   : > { %v1299_v42 = vpop.f32.mrb[73].mxu0 }
 0x2bc   : > { %v1301_v43 = vpop.f32.mrb[74].mxu0 }
 0x2bd   : > { %v6784_v45 = vpack.c.bf16 %v1301_v43, %v1297_v36  ;;  %v1303_v48 = vpop.f32.mrb[75].mxu0 }
 0x2be   : > { %v6786_v51 = vpack.c.bf16 %v1303_v48, %v1299_v42 }
 0x2bf   : > { %8962 = vst [vmem:[#allocation37_spill] sm:$0xff] %v6784_v45  ;;  %3942 = vmatmul.mubr.bf16.gmra.mrb[180].mxu0 %v6707_v34 }
 0x2c0   : > { %8963 = vst [vmem:[#allocation38_spill] sm:$0xff] %v6786_v51  ;;  %3285 = vmatprep.mubr.bf16.mxu1 %v6786_v51  ;;  %3951 = vmatprep.mubr.bf16.mxu0 %v6723_v50 }
 0x2c1   : > { %3286 = vmatmul.mubr.bf16.gmra.mrb[72].mxu1 %v6784_v45 }
 0x2c2   : > { %v1307_v52 = vpop.f32.mrb[76].mxu0 }
 0x2c3   : > { %v1309_v58 = vpop.f32.mrb[77].mxu0 }
 0x2c4   : > { %v1311_v61 = vpop.f32.mrb[78].mxu0 }
 0x2c5   : > { %v6798_v0 = vpack.c.bf16 %v1311_v61, %v1307_v52  ;;  %v1313_v2 = vpop.f32.mrb[79].mxu0  ;;  %v1682_v52 = vld [vmem:[%s8736_s3 + $0x1b0] sm:$0xff]  ;;  %v1683_v61 = vld [vmem:[%s8736_s3 + $0x1b8] sm:$0xff] }
 0x2c6   : > { %v6800_v5 = vpack.c.bf16 %v1313_v2, %v1309_v58  ;;  %1965 = vperm.xlu0 %5265, %v1682_v52   ;;  %1970 = vperm.xlu1 %5266, %v1683_v61   ;;  %v1687_v52 = vld [vmem:[%s8736_s3 + $0x1d8] sm:$0xff] }
 0x2c7   : > { %8964 = vst [vmem:[#allocation39_spill] sm:$0xff] %v6798_v0  ;;  %3952 = vmatmul.mubr.bf16.gmra.mrb[184].mxu0 %v6721_v46 }
 0x2c8   : > { %8965 = vst [vmem:[#allocation40_spill] sm:$0xff] %v6800_v5  ;;  %3295 = vmatprep.mubr.bf16.mxu1 %v6800_v5  ;;  %3961 = vmatprep.mubr.bf16.mxu0 %v6743_v3 }
 0x2c9   : > { %3296 = vmatmul.mubr.bf16.gmra.mrb[76].mxu1 %v6798_v0 }
 0x2ca   : > { %v1317_v7 = vpop.f32.mrb[80].mxu0 }
 0x2cb   : > { %v1319_v13 = vpop.f32.mrb[81].mxu0 }
 0x2cc   : > { %v1321_v14 = vpop.f32.mrb[82].mxu0 }
 0x2cd   : > { %v6812_v21 = vpack.c.bf16 %v1321_v14, %v1317_v7  ;;  %v1323_v24 = vpop.f32.mrb[83].mxu0 }
 0x2ce   : > { %v6814_v26 = vpack.c.bf16 %v1323_v24, %v1319_v13  ;;  %v1684_v13 = vld [vmem:[%s8736_s3 + $0x1c0] sm:$0xff]  ;;  %v1685_v24 = vld [vmem:[%s8736_s3 + $0x1c8] sm:$0xff] }
 0x2cf   : > { %8966 = vst [vmem:[#allocation41_spill] sm:$0xff] %v6812_v21  ;;  %3962 = vmatmul.mubr.bf16.gmra.mrb[188].mxu0 %v6741_v1  ;;  %1975 = vperm.xlu0 %5265, %v1684_v13   ;;  %v1688_v13 = vld [vmem:[%s8736_s3 + $0x1e0] sm:$0xff] }
 0x2d0   : > { %8967 = vst [vmem:[#allocation42_spill] sm:$0xff] %v6814_v26  ;;  %3305 = vmatprep.mubr.bf16.mxu1 %v6814_v26  ;;  %3971 = vmatprep.mubr.bf16.mxu0 %v6758_v19 }
 0x2d1   : > { %3306 = vmatmul.mubr.bf16.gmra.mrb[80].mxu1 %v6812_v21  ;;  %1980 = vperm.xlu1 %5266, %v1685_v24   ;;  %v1689_v24 = vld [vmem:[%s8736_s3 + $0x1e8] sm:$0xff] }
 0x2d2   : > { %v1327_v28 = vpop.f32.mrb[84].mxu0 }
 0x2d3   : > { %v1329_v32 = vpop.f32.mrb[85].mxu0  ;;  %1985 = vperm.xlu0 %5265, %v1686_v41  }
 0x2d4   : > { %v1331_v36 = vpop.f32.mrb[86].mxu0 }
 0x2d5   : > { %v6826_v42 = vpack.c.bf16 %v1331_v36, %v1327_v28  ;;  %v1333_v43 = vpop.f32.mrb[87].mxu0  ;;  %1990 = vperm.xlu1 %5266, %v1687_v52  }
 0x2d6   : > { %v6828_v44 = vpack.c.bf16 %v1333_v43, %v1329_v32 }
 0x2d7   : > { %8968 = vst [vmem:[#allocation43_spill] sm:$0xff] %v6826_v42  ;;  %3972 = vmatmul.mubr.bf16.gmra.mrb[192].mxu0 %v6756_v16  ;;  %1995 = vperm.xlu0 %5265, %v1688_v13   ;;  %v1690_v13 = vld [vmem:[%s8736_s3 + $0x1f0] sm:$0xff] }
 0x2d8   : > { %8969 = vst [vmem:[#allocation44_spill] sm:$0xff] %v6828_v44  ;;  %3315 = vmatprep.mubr.bf16.mxu1 %v6828_v44  ;;  %3981 = vmatprep.mubr.bf16.mxu0 %v6772_v33 }
 0x2d9   : > { %3316 = vmatmul.mubr.bf16.gmra.mrb[84].mxu1 %v6826_v42  ;;  %2000 = vperm.xlu1 %5266, %v1689_v24   ;;  %v1691_v24 = vld [vmem:[%s8736_s3 + $0x1f8] sm:$0xff] }
 0x2da   : > { %v1337_v48 = vpop.f32.mrb[88].mxu0 }
 0x2db   : > { %v1339_v55 = vpop.f32.mrb[89].mxu0  ;;  %2005 = vperm.xlu0 %5265, %v1690_v13  }
 0x2dc   : > { %v1341_v58 = vpop.f32.mrb[90].mxu0 }
 0x2dd   : > { %v6840_v63 = vpack.c.bf16 %v1341_v58, %v1337_v48  ;;  %v1343_v2 = vpop.f32.mrb[91].mxu0  ;;  %2010 = vperm.xlu1 %5266, %v1691_v24  }
 0x2de   : > { %v6842_v7 = vpack.c.bf16 %v1343_v2, %v1339_v55  ;;  %v2014_v2 = vlaneseq }
 0x2df   : > { %8970 = vst [vmem:[#allocation45_spill] sm:$0xff] %v6840_v63  ;;  %3982 = vmatmul.mubr.bf16.gmra.mrb[196].mxu0 %v6770_v31 }
 0x2e0   : > { %8971 = vst [vmem:[#allocation46_spill] sm:$0xff] %v6842_v7  ;;  %3325 = vmatprep.mubr.bf16.mxu1 %v6842_v7  ;;  %3991 = vmatprep.mubr.bf16.mxu0 %v6786_v51  ;;  %v6884_v41 = vshrl.u32 %v2014_v2, 7  ;;  %v6898_v2 = vld [vmem:[%s8737_s4] sm:$0x7f] }
 0x2e1   : > { %3326 = vmatmul.mubr.bf16.gmra.mrb[88].mxu1 %v6840_v63 }
 0x2e2   : > { %v1347_v11 = vpop.f32.mrb[92].mxu0  ;;  %8977 = vst [vmem:[#allocation52_spill] sm:$0xff] %v6884_v41  ;;  %v2032_v22 = vsub.s32 4, %v6884_v41 }
 0x2e3   : > { %v1349_v14 = vpop.f32.mrb[93].mxu0 }
 0x2e4   : > { %v1351_v18 = vpop.f32.mrb[94].mxu0 }
 0x2e5   : > { %v6854_v28 = vpack.c.bf16 %v1351_v18, %v1347_v11  ;;  %v1353_v30 = vpop.f32.mrb[95].mxu0 }
 0x2e6   : > { %v6856_v32 = vpack.c.bf16 %v1353_v30, %v1349_v14 }
 0x2e7   : > { %8972 = vst [vmem:[#allocation47_spill] sm:$0xff] %v6854_v28  ;;  %3992 = vmatmul.mubr.bf16.gmra.mrb[200].mxu0 %v6784_v45 }
 0x2e8   : > { %8973 = vst [vmem:[#allocation48_spill] sm:$0xff] %v6856_v32  ;;  %3335 = vmatprep.mubr.bf16.mxu1 %v6856_v32  ;;  %4001 = vmatprep.mubr.bf16.mxu0 %v6800_v5 }
 0x2e9   : > { %3336 = vmatmul.mubr.bf16.gmra.mrb[92].mxu1 %v6854_v28 }
 0x2ea   : > { %v1357_v36 = vpop.f32.mrb[96].mxu0 }
 0x2eb   : > { %v1359_v43 = vpop.f32.mrb[97].mxu0 }
 0x2ec   : > { %v1361_v48 = vpop.f32.mrb[98].mxu0 }
 0x2ed   : > { %v6868_v55 = vpack.c.bf16 %v1361_v48, %v1357_v36  ;;  %v1363_v58 = vpop.f32.mrb[99].mxu0  ;;  %v2016_v48 = vsub.s32 0, %v6884_v41 }
 0x2ee   : > { %v6870_v61 = vpack.c.bf16 %v1363_v58, %v1359_v43  ;;  %v6893_v58 = vpop.permute.xlu0 %1695 }
 0x2ef   : > { %8974 = vst [vmem:[#allocation49_spill] sm:$0xff] %v6868_v55  ;;  %4002 = vmatmul.mubr.bf16.gmra.mrb[204].mxu0 %v6798_v0  ;;  %8979 = vst [vmem:[#allocation54_spill] sm:$0xff] %v6893_v58 }
 0x2f0   : > { %8975 = vst [vmem:[#allocation50_spill] sm:$0xff] %v6870_v61  ;;  %3345 = vmatprep.mubr.bf16.mxu1 %v6870_v61  ;;  %4011 = vmatprep.mubr.bf16.mxu0 %v6814_v26 }
 0x2f1   : > { %3346 = vmatmul.mubr.bf16.gmra.mrb[96].mxu1 %v6868_v55 }
 0x2f2   : > { %v1367_v11 = vpop.f32.mrb[100].mxu0  ;;  %v6921_v13 = vpop.permute.xlu0 %1700 }
 0x2f3   : > { %v1369_v14 = vpop.f32.mrb[101].mxu0  ;;  %8982 = vst [vmem:[#allocation57_spill] sm:$0xff] %v6921_v13 }
 0x2f4   : > { %v1371_v18 = vpop.f32.mrb[102].mxu0 }
 0x2f5   : > { %v6882_v30 = vpack.c.bf16 %v1371_v18, %v1367_v11  ;;  %v1373_v36 = vpop.f32.mrb[103].mxu0  ;;  %v2020_v11 = vsub.s32 1, %v6884_v41 }
 0x2f6   : > { %v6886_v43 = vpack.c.bf16 %v1373_v36, %v1369_v14 }
 0x2f7   : > { %8976 = vst [vmem:[#allocation51_spill] sm:$0xff] %v6882_v30  ;;  %4012 = vmatmul.mubr.bf16.gmra.mrb[208].mxu0 %v6812_v21  ;;  %v6915_v26 = vrot.slane %v6898_v2, %v2020_v11  ;;  %v6928_v11 = vpop.permute.xlu1 %1705 }
 0x2f8   : > { %8978 = vst [vmem:[#allocation53_spill] sm:$0xff] %v6886_v43  ;;  %3355 = vmatprep.mubr.bf16.mxu1 %v6886_v43  ;;  %4021 = vmatprep.mubr.bf16.mxu0 %v6828_v44  ;;  %v6910_v44 = vrot.slane %v6898_v2, %v2016_v48  ;;  %8983 = vst [vmem:[#allocation58_spill] sm:$0xff] %v6928_v11 }
 0x2f9   : > { %3356 = vmatmul.mubr.bf16.gmra.mrb[100].mxu1 %v6882_v30 }
 0x2fa   : > { %v1377_v52 = vpop.f32.mrb[104].mxu0  ;;  %v2049_v48 = vmul.f32 %v6910_v44, %v6893_v58 }
 0x2fb   : > { %v1379_v14 = vpop.f32.mrb[105].mxu0 }
 0x2fc   : > { %v1381_v18 = vpop.f32.mrb[106].mxu0 }
 0x2fd   : > { %v6907_v36 = vpack.c.bf16 %v1381_v18, %v1377_v52  ;;  %v1383_v53 = vpop.f32.mrb[107].mxu0  ;;  %v2056_v18 = vmul.f32 %v6910_v44, %v6921_v13 }
 0x2fe   : > { %v6912_v21 = vpack.c.bf16 %v1383_v53, %v1379_v14  ;;  %v2050_v53 = vmul.f32 %v6915_v26, %v6893_v58 }
 0x2ff   : > { %8980 = vst [vmem:[#allocation55_spill] sm:$0xff] %v6907_v36  ;;  %4022 = vmatmul.mubr.bf16.gmra.mrb[212].mxu0 %v6826_v42  ;;  %v2057_v42 = vmul.f32 %v6915_v26, %v6921_v13 }
 0x300   : > { %8981 = vst [vmem:[#allocation56_spill] sm:$0xff] %v6912_v21  ;;  %3365 = vmatprep.mubr.bf16.mxu1 %v6912_v21  ;;  %4031 = vmatprep.mubr.bf16.mxu0 %v6842_v7 }
 0x301   : > { %3366 = vmatmul.mubr.bf16.gmra.mrb[104].mxu1 %v6907_v36 }
 0x302   : > { %v1387_v52 = vpop.f32.mrb[108].mxu0 }
 0x303   : > { %v1389_v14 = vpop.f32.mrb[109].mxu0 }
 0x304   : > { %v1391_v24 = vpop.f32.mrb[110].mxu0  ;;  %v3107_v7 = vpop.f32.mrb[0].mxu1 }
 0x305   : > { %v6939_v0 = vpack.c.bf16 %v1391_v24, %v1387_v52  ;;  %v3108_v5 = vadd.f32 %v3107_v7, %v2049_v48  ;;  %v1393_v45 = vpop.f32.mrb[111].mxu0  ;;  %v3109_v51 = vpop.f32.mrb[1].mxu1 }
 0x306   : > { %v6941_v31 = vpack.c.bf16 %v1393_v45, %v1389_v14  ;;  %v3110_v33 = vadd.f32 %v3109_v51, %v2050_v53  ;;  %v3111_v16 = vpop.f32.mrb[2].mxu1  ;;  %v6948_v52 = vpop.permute.xlu1 %1710  ;;  %v2063_v45 = vmul.f32 %v6910_v44, %v6928_v11  ;;  %v2064_v51 = vmul.f32 %v6915_v26, %v6928_v11 }
 0x307   : > { %4421 = vst [vmem:[%s6935_s24] sm:$0xff] %v3108_v5  ;;  %v3112_v19 = vadd.f32 %v3111_v16, %v2056_v18  ;;  %v3113_v1 = vpop.f32.mrb[3].mxu1  ;;  %4032 = vmatmul.mubr.bf16.gmra.mrb[216].mxu0 %v6840_v63  ;;  %8985 = vst [vmem:[#allocation60_spill] sm:$0xff] %v6948_v52 }
 0x308   : > { %8984 = vst [vmem:[#allocation59_spill] sm:$0xff] %v6941_v31  ;;  %4422 = vst [vmem:[%s6935_s24 + $0x8] sm:$0xff] %v3110_v33  ;;  %v3114_v3 = vadd.f32 %v3113_v1, %v2057_v42  ;;  %3375 = vmatprep.mubr.bf16.mxu1 %v6941_v31  ;;  %4041 = vmatprep.mubr.bf16.mxu0 %v6856_v32  ;;  %v2070_v1 = vmul.f32 %v6910_v44, %v6948_v52  ;;  %v6965_v32 = vpop.permute.xlu0 %1715 }
 0x309   : > { %4429 = vst [vmem:[%s6935_s24 + $0x38] sm:$0xff] %v3112_v19  ;;  %3376 = vmatmul.mubr.bf16.gmra.mrb[108].mxu1 %v6939_v0  ;;  %v2071_v19 = vmul.f32 %v6915_v26, %v6948_v52 }
 0x30a   : > { %4430 = vst [vmem:[%s6935_s24 + $0x40] sm:$0xff] %v3114_v3  ;;  %v1397_v16 = vpop.f32.mrb[112].mxu0 }
 0x30b   : > { %v1399_v33 = vpop.f32.mrb[113].mxu0 }
 0x30c   : > { %v1401_v5 = vpop.f32.mrb[114].mxu0  ;;  %v3117_v42 = vpop.f32.mrb[4].mxu1 }
 0x30d   : > { %v6961_v7 = vpack.c.bf16 %v1401_v5, %v1397_v16  ;;  %v3118_v48 = vadd.f32 %v3117_v42, %v2063_v45  ;;  %v1403_v3 = vpop.f32.mrb[115].mxu0  ;;  %v3119_v53 = vpop.f32.mrb[5].mxu1  ;;  %v2077_v16 = vmul.f32 %v6910_v44, %v6965_v32 }
 0x30e   : > { %v6963_v14 = vpack.c.bf16 %v1403_v3, %v1399_v33  ;;  %v3120_v18 = vadd.f32 %v3119_v53, %v2064_v51  ;;  %v3121_v24 = vpop.f32.mrb[6].mxu1  ;;  %v6972_v45 = vpop.permute.xlu1 %1720  ;;  %v2078_v33 = vmul.f32 %v6915_v26, %v6965_v32 }
 0x30f   : > { %4436 = vst [vmem:[%s6935_s24 + $0x70] sm:$0xff] %v3118_v48  ;;  %v3122_v63 = vadd.f32 %v3121_v24, %v2070_v1  ;;  %v3123_v46 = vpop.f32.mrb[7].mxu1  ;;  %4042 = vmatmul.mubr.bf16.gmra.mrb[220].mxu0 %v6854_v28 }
 0x310   : > { %8986 = vst [vmem:[#allocation61_spill] sm:$0xff] %v6963_v14  ;;  %4437 = vst [vmem:[%s6935_s24 + $0x78] sm:$0xff] %v3120_v18  ;;  %v3124_v50 = vadd.f32 %v3123_v46, %v2071_v19  ;;  %3385 = vmatprep.mubr.bf16.mxu1 %v6963_v14  ;;  %4051 = vmatprep.mubr.bf16.mxu0 %v6870_v61  ;;  %v2084_v46 = vmul.f32 %v6910_v44, %v6972_v45  ;;  %v6989_v61 = vpop.permute.xlu0 %1725 }
 0x311   : > { %4443 = vst [vmem:[%s6935_s24 + $0xa8] sm:$0xff] %v3122_v63  ;;  %3386 = vmatmul.mubr.bf16.gmra.mrb[112].mxu1 %v6961_v7  ;;  %v2085_v63 = vmul.f32 %v6915_v26, %v6972_v45 }
 0x312   : > { %4444 = vst [vmem:[%s6935_s24 + $0xb0] sm:$0xff] %v3124_v50  ;;  %v1407_v51 = vpop.f32.mrb[116].mxu0 }
 0x313   : > { %v1409_v1 = vpop.f32.mrb[117].mxu0 }
 0x314   : > { %v1411_v5 = vpop.f32.mrb[118].mxu0  ;;  %v3127_v42 = vpop.f32.mrb[8].mxu1 }
 0x315   : > { %v6985_v19 = vpack.c.bf16 %v1411_v5, %v1407_v51  ;;  %v3128_v48 = vadd.f32 %v3127_v42, %v2077_v16  ;;  %v1413_v50 = vpop.f32.mrb[119].mxu0  ;;  %v3129_v3 = vpop.f32.mrb[9].mxu1  ;;  %v2091_v51 = vmul.f32 %v6910_v44, %v6989_v61 }
 0x316   : > { %v6987_v53 = vpack.c.bf16 %v1413_v50, %v1409_v1  ;;  %v3130_v18 = vadd.f32 %v3129_v3, %v2078_v33  ;;  %v3131_v24 = vpop.f32.mrb[10].mxu1  ;;  %v6996_v16 = vpop.permute.xlu1 %1730  ;;  %v2092_v1 = vmul.f32 %v6915_v26, %v6989_v61 }
 0x317   : > { %4450 = vst [vmem:[%s6935_s24 + $0xe0] sm:$0xff] %v3128_v48  ;;  %v3132_v28 = vadd.f32 %v3131_v24, %v2084_v46  ;;  %v3133_v34 = vpop.f32.mrb[11].mxu1  ;;  %4052 = vmatmul.mubr.bf16.gmra.mrb[224].mxu0 %v6868_v55 }
 0x318   : > { %4451 = vst [vmem:[%s6935_s24 + $0xe8] sm:$0xff] %v3130_v18  ;;  %v3134_v39 = vadd.f32 %v3133_v34, %v2085_v63  ;;  %3395 = vmatprep.mubr.bf16.mxu1 %v6987_v53  ;;  %4061 = vmatprep.mubr.bf16.mxu0 %v6886_v43  ;;  %v2098_v34 = vmul.f32 %v6910_v44, %v6996_v16  ;;  %v7013_v43 = vpop.permute.xlu0 %1735 }
 0x319   : > { %4457 = vst [vmem:[%s6935_s24 + $0x118] sm:$0xff] %v3132_v28  ;;  %3396 = vmatmul.mubr.bf16.gmra.mrb[116].mxu1 %v6985_v19  ;;  %v2099_v28 = vmul.f32 %v6915_v26, %v6996_v16 }
 0x31a   : > { %4458 = vst [vmem:[%s6935_s24 + $0x120] sm:$0xff] %v3134_v39  ;;  %v1417_v33 = vpop.f32.mrb[120].mxu0 }
 0x31b   : > { %v1419_v46 = vpop.f32.mrb[121].mxu0 }
 0x31c   : > { %v1421_v5 = vpop.f32.mrb[122].mxu0  ;;  %v3137_v42 = vpop.f32.mrb[12].mxu1 }
 0x31d   : > { %v7009_v63 = vpack.c.bf16 %v1421_v5, %v1417_v33  ;;  %v3138_v48 = vadd.f32 %v3137_v42, %v2091_v51  ;;  %v1423_v50 = vpop.f32.mrb[123].mxu0  ;;  %v3139_v39 = vpop.f32.mrb[13].mxu1  ;;  %v2106_v5 = vmul.f32 %v6915_v26, %v7013_v43 }
 0x31e   : > { %v7011_v3 = vpack.c.bf16 %v1423_v50, %v1419_v46  ;;  %v3140_v18 = vadd.f32 %v3139_v39, %v2092_v1  ;;  %v3141_v24 = vpop.f32.mrb[14].mxu1  ;;  %v7021_v51 = vpop.permute.xlu1 %1740  ;;  %v2036_v1 = vsub.s32 5, %v6884_v41  ;;  %v2105_v46 = vmul.f32 %v6910_v44, %v7013_v43 }
 0x31f   : > { %4464 = vst [vmem:[%s6935_s24 + $0x150] sm:$0xff] %v3138_v48  ;;  %v3142_v55 = vadd.f32 %v3141_v24, %v2098_v34  ;;  %v3143_v20 = vpop.f32.mrb[15].mxu1  ;;  %4062 = vmatmul.mubr.bf16.gmra.mrb[228].mxu0 %v6882_v30  ;;  %v2112_v42 = vmul.f32 %v6910_v44, %v7021_v51  ;;  %v2113_v50 = vmul.f32 %v6915_v26, %v7021_v51  ;;  %v7045_v9 = vpop.permute.xlu0 %1745 }
 0x320   : > { %4465 = vst [vmem:[%s6935_s24 + $0x158] sm:$0xff] %v3140_v18  ;;  %v3144_v33 = vadd.f32 %v3143_v20, %v2099_v28  ;;  %3405 = vmatprep.mubr.bf16.mxu1 %v7011_v3  ;;  %4071 = vmatprep.mubr.bf16.mxu0 %v6912_v21  ;;  %v7034_v28 = vrot.slane %v6898_v2, %v2032_v22 }
 0x321   : > { %4471 = vst [vmem:[%s6935_s24 + $0x188] sm:$0xff] %v3142_v55  ;;  %3406 = vmatmul.mubr.bf16.gmra.mrb[120].mxu1 %v7009_v63  ;;  %v7039_v39 = vrot.slane %v6898_v2, %v2036_v1 }
 0x322   : > { %4472 = vst [vmem:[%s6935_s24 + $0x190] sm:$0xff] %v3144_v33  ;;  %v1427_v34 = vpop.f32.mrb[124].mxu0  ;;  %v2053_v2 = vmul.f32 %v7034_v28, %v6893_v58 }
 0x323   : > { %v1429_v20 = vpop.f32.mrb[125].mxu0 }
 0x324   : > { %v1431_v48 = vpop.f32.mrb[126].mxu0  ;;  %v3147_v55 = vpop.f32.mrb[16].mxu1 }
 0x325   : > { %v7041_v18 = vpack.c.bf16 %v1431_v48, %v1427_v34  ;;  %v3148_v24 = vadd.f32 %v3147_v55, %v2105_v46  ;;  %v1433_v33 = vpop.f32.mrb[127].mxu0  ;;  %v3149_v21 = vpop.f32.mrb[17].mxu1  ;;  %v2119_v34 = vmul.f32 %v6910_v44, %v7045_v9 }
 0x326   : > { %v7043_v41 = vpack.c.bf16 %v1433_v33, %v1429_v20  ;;  %v3150_v30 = vadd.f32 %v3149_v21, %v2106_v5  ;;  %v3151_v22 = vpop.f32.mrb[18].mxu1  ;;  %v2054_v21 = vmul.f32 %v7039_v39, %v6893_v58  ;;  %v7056_v46 = vpop.permute.xlu1 %1750  ;;  %v2120_v5 = vmul.f32 %v6915_v26, %v7045_v9 }
 0x327   : > { %4478 = vst [vmem:[%s6935_s24 + $0x1c0] sm:$0xff] %v3148_v24  ;;  %v3152_v12 = vadd.f32 %v3151_v22, %v2112_v42  ;;  %v3153_v60 = vpop.f32.mrb[19].mxu1  ;;  %4072 = vmatmul.mubr.bf16.gmra.mrb[232].mxu0 %v6907_v36  ;;  %v2126_v48 = vmul.f32 %v6910_v44, %v7056_v46  ;;  %v2127_v33 = vmul.f32 %v6915_v26, %v7056_v46  ;;  %v7076_v58 = vpop.permute.xlu0 %1755 }
 0x328   : > { %4479 = vst [vmem:[%s6935_s24 + $0x1c8] sm:$0xff] %v3150_v30  ;;  %v3154_v1 = vadd.f32 %v3153_v60, %v2113_v50  ;;  %3415 = vmatprep.mubr.bf16.mxu1 %v7043_v41  ;;  %4081 = vmatprep.mubr.bf16.mxu0 %v6941_v31  ;;  %v2060_v30 = vmul.f32 %v7034_v28, %v6921_v13 }
 0x329   : > { %4485 = vst [vmem:[%s6935_s24 + $0x1f8] sm:$0xff] %v3152_v12  ;;  %3416 = vmatmul.mubr.bf16.gmra.mrb[124].mxu1 %v7041_v18  ;;  %v2061_v12 = vmul.f32 %v7039_v39, %v6921_v13 }
 0x32a   : > { %4486 = vst [vmem:[%s6935_s24 + $0x200] sm:$0xff] %v3154_v1  ;;  %3458 = vmatprep.mubr.bf16.mxu1 %v6421_v59  ;;  %v3813_v60 = vpop.f32.mrb[128].mxu0 }
 0x32b   : > { %v3814_v20 = vadd.f32 %v3813_v60, %v2053_v2  ;;  %v3815_v42 = vpop.f32.mrb[129].mxu0 }
 0x32c   : > { %v3816_v55 = vadd.f32 %v3815_v42, %v2054_v21  ;;  %v3157_v50 = vpop.f32.mrb[20].mxu1  ;;  %v3817_v24 = vpop.f32.mrb[130].mxu0  ;;  %v5411_v21 = vld [vmem:[%s8735_s2 + $0x18] ss:$28 sps:$4 sm:$0xff]  }
 0x32d   : > { %4425 = vst [vmem:[%s6935_s24 + $0x20] sm:$0xff] %v3814_v20  ;;  %v3158_v22 = vadd.f32 %v3157_v50, %v2119_v34  ;;  %v3818_v1 = vadd.f32 %v3817_v24, %v2060_v30  ;;  %v3159_v59 = vpop.f32.mrb[21].mxu1  ;;  %v3819_v13 = vpop.f32.mrb[131].mxu0  ;;  %v2067_v30 = vmul.f32 %v7034_v28, %v6928_v11  ;;  %v5412_v50 = vld [vmem:[%s8735_s2 + $0x50] ss:$28 sps:$4 sm:$0xff]  }
 0x32e   : > { %4426 = vst [vmem:[%s6935_s24 + $0x28] sm:$0xff] %v3816_v55  ;;  %v3160_v2 = vadd.f32 %v3159_v59, %v2120_v5  ;;  %v3820_v60 = vadd.f32 %v3819_v13, %v2061_v12  ;;  %v3161_v31 = vpop.f32.mrb[22].mxu1  ;;  %v2068_v13 = vmul.f32 %v7039_v39, %v6928_v11  ;;  %v7091_v5 = vpop.permute.xlu1 %1760  ;;  %v2074_v12 = vmul.f32 %v7034_v28, %v6948_v52 }
 0x32f   : > { %4492 = vst [vmem:[%s6935_s24 + $0x230] sm:$0xff] %v3158_v22  ;;  %4433 = vst [vmem:[%s6935_s24 + $0x58] sm:$0xff] %v3818_v1  ;;  %v3162_v34 = vadd.f32 %v3161_v31, %v2126_v48  ;;  %v3163_v20 = vpop.f32.mrb[23].mxu1  ;;  %4082 = vmatmul.mubr.bf16.gmra.mrb[236].mxu0 %v6939_v0  ;;  %v2133_v31 = vmul.f32 %v6910_v44, %v7076_v58  ;;  %v2134_v48 = vmul.f32 %v6915_v26, %v7076_v58  ;;  %v8987_v1 = vmov 0  }
 0x330   : > { %4493 = vst [vmem:[%s6935_s24 + $0x238] sm:$0xff] %v3160_v2  ;;  %4434 = vst [vmem:[%s6935_s24 + $0x60] sm:$0xff] %v3820_v60  ;;  %v3164_v59 = vadd.f32 %v3163_v20, %v2127_v33  ;;  %4091 = vmatprep.mubr.bf16.mxu0 %v6963_v14  ;;  %v2075_v55 = vmul.f32 %v7039_v39, %v6948_v52  ;;  %v2140_v22 = vmul.f32 %v6910_v44, %v7091_v5  ;;  %v7115_v14 = vpop.permute.xlu0 %1765 }
 0x331   : > { %4499 = vst [vmem:[%s6935_s24 + $0x268] sm:$0xff] %v3162_v34  ;;  %3459 = vmatmul.mubr.bf16.vlgmr.msra.gmra.mrb[128].mxu1 %v6419_v57  ;;  %v2141_v34 = vmul.f32 %v6915_v26, %v7091_v5 }
 0x332   : > { %4500 = vst [vmem:[%s6935_s24 + $0x270] sm:$0xff] %v3164_v59  ;;  %3468 = vmatprep.mubr.bf16.mxu1 %v6452_v10  ;;  %v3823_v42 = vpop.f32.mrb[132].mxu0  ;;  %4133 = vmatpush1.bf16.msra.mxu1 %v5411_v21 }
 0x333   : > { %v3824_v24 = vadd.f32 %v3823_v42, %v2067_v30  ;;  %v3825_v33 = vpop.f32.mrb[133].mxu0  ;;  %4134 = vmatprep.subr.bf16.mxu1 %v8987_v1 }
 0x334   : > { %v3826_v2 = vadd.f32 %v3825_v33, %v2068_v13  ;;  %v3167_v60 = vpop.f32.mrb[24].mxu1  ;;  %v3827_v21 = vpop.f32.mrb[134].mxu0  ;;  %v5413_v13 = vld [vmem:[%s8735_s2 + $0x88] ss:$28 sps:$4 sm:$0xff]   ;;  %v2148_v33 = vmul.f32 %v6915_v26, %v7115_v14 }
 0x335   : > { %4440 = vst [vmem:[%s6935_s24 + $0x90] sm:$0xff] %v3824_v24  ;;  %v3168_v20 = vadd.f32 %v3167_v60, %v2133_v31  ;;  %v3828_v59 = vadd.f32 %v3827_v21, %v2074_v12  ;;  %v3169_v10 = vpop.f32.mrb[25].mxu1  ;;  %v3829_v30 = vpop.f32.mrb[135].mxu0  ;;  %v2088_v24 = vmul.f32 %v7034_v28, %v6972_v45 }
 0x336   : > { %4441 = vst [vmem:[%s6935_s24 + $0x98] sm:$0xff] %v3826_v2  ;;  %v3170_v42 = vadd.f32 %v3169_v10, %v2134_v48  ;;  %v3830_v57 = vadd.f32 %v3829_v30, %v2075_v55  ;;  %v3171_v52 = vpop.f32.mrb[26].mxu1  ;;  %4135 = vmatpush1.bf16.msra.mxu1 %v5412_v50  ;;  %v2081_v10 = vmul.f32 %v7034_v28, %v6965_v32  ;;  %v7131_v50 = vpop.permute.xlu1 %1770  ;;  %v5414_v2 = vld [vmem:[%s8735_s2 + $0xc0] ss:$28 sps:$4 sm:$0xff]  }
 0x337   : > { %4506 = vst [vmem:[%s6935_s24 + $0x2a0] sm:$0xff] %v3168_v20  ;;  %4447 = vst [vmem:[%s6935_s24 + $0xc8] sm:$0xff] %v3828_v59  ;;  %v3172_v31 = vadd.f32 %v3171_v52, %v2140_v22  ;;  %v3173_v12 = vpop.f32.mrb[27].mxu1  ;;  %4092 = vmatmul.mubr.bf16.gmra.mrb[240].mxu0 %v6961_v7  ;;  %4136 = vmatprep.subr.bf16.mxu1 %v8987_v1  ;;  %v2082_v55 = vmul.f32 %v7039_v39, %v6965_v32 }
 0x338   : > { %4507 = vst [vmem:[%s6935_s24 + $0x2a8] sm:$0xff] %v3170_v42  ;;  %4448 = vst [vmem:[%s6935_s24 + $0xd0] sm:$0xff] %v3830_v57  ;;  %v3174_v48 = vadd.f32 %v3173_v12, %v2141_v34  ;;  %4101 = vmatprep.mubr.bf16.mxu0 %v6987_v53  ;;  %v2147_v52 = vmul.f32 %v6910_v44, %v7115_v14  ;;  %v2089_v22 = vmul.f32 %v7039_v39, %v6972_v45 }
 0x339   : > { %4513 = vst [vmem:[%s6935_s24 + $0x2d8] sm:$0xff] %v3172_v31  ;;  %3469 = vmatmul.mubr.bf16.gmra.mrb[132].mxu1 %v6450_v8  ;;  %v2154_v34 = vmul.f32 %v6910_v44, %v7131_v50  ;;  %v2155_v42 = vmul.f32 %v6915_v26, %v7131_v50  ;;  %v7155_v8 = vpop.permute.xlu0 %1775 }
 0x33a   : > { %4514 = vst [vmem:[%s6935_s24 + $0x2e0] sm:$0xff] %v3174_v48  ;;  %3478 = vmatprep.mubr.bf16.mxu1 %v6483_v25  ;;  %v3833_v57 = vpop.f32.mrb[136].mxu0  ;;  %4137 = vmatpush1.bf16.msra.mxu1 %v5413_v13 }
 0x33b   : > { %v3834_v60 = vadd.f32 %v3833_v57, %v2081_v10  ;;  %v3835_v21 = vpop.f32.mrb[137].mxu0  ;;  %4138 = vmatprep.subr.bf16.mxu1 %v8987_v1 }
 0x33c   : > { %v3836_v20 = vadd.f32 %v3835_v21, %v2082_v55  ;;  %v3177_v59 = vpop.f32.mrb[28].mxu1  ;;  %v3837_v30 = vpop.f32.mrb[138].mxu0  ;;  %v5415_v55 = vld [vmem:[%s8735_s2 + $0xf8] ss:$28 sps:$4 sm:$0xff]   ;;  %v2102_v21 = vmul.f32 %v7034_v28, %v6996_v16 }
 0x33d   : > { %4454 = vst [vmem:[%s6935_s24 + $0x100] sm:$0xff] %v3834_v60  ;;  %v3178_v13 = vadd.f32 %v3177_v59, %v2147_v52  ;;  %v3838_v31 = vadd.f32 %v3837_v30, %v2088_v24  ;;  %v3179_v12 = vpop.f32.mrb[29].mxu1  ;;  %v3839_v10 = vpop.f32.mrb[139].mxu0  ;;  %v2103_v59 = vmul.f32 %v7039_v39, %v6996_v16  ;;  %v5416_v30 = vld [vmem:[%s8735_s2 + $0x130] ss:$28 sps:$4 sm:$0xff]  }
 0x33e   : > { %4455 = vst [vmem:[%s6935_s24 + $0x108] sm:$0xff] %v3836_v20  ;;  %v3180_v48 = vadd.f32 %v3179_v12, %v2148_v33  ;;  %v3840_v57 = vadd.f32 %v3839_v10, %v2089_v22  ;;  %v3181_v25 = vpop.f32.mrb[30].mxu1  ;;  %4139 = vmatpush1.bf16.msra.mxu1 %v5414_v2  ;;  %v2095_v33 = vmul.f32 %v7034_v28, %v6989_v61  ;;  %v7171_v60 = vpop.permute.xlu1 %1780 }
 0x33f   : > { %4520 = vst [vmem:[%s6935_s24 + $0x310] sm:$0xff] %v3178_v13  ;;  %4461 = vst [vmem:[%s6935_s24 + $0x138] sm:$0xff] %v3838_v31  ;;  %v3182_v52 = vadd.f32 %v3181_v25, %v2154_v34  ;;  %v3183_v24 = vpop.f32.mrb[31].mxu1  ;;  %4102 = vmatmul.mubr.bf16.gmra.mrb[244].mxu0 %v6985_v19  ;;  %4140 = vmatprep.subr.bf16.mxu1 %v8987_v1  ;;  %v2096_v2 = vmul.f32 %v7039_v39, %v6989_v61 }
 0x340   : > { %4521 = vst [vmem:[%s6935_s24 + $0x318] sm:$0xff] %v3180_v48  ;;  %4462 = vst [vmem:[%s6935_s24 + $0x140] sm:$0xff] %v3840_v57  ;;  %v3184_v22 = vadd.f32 %v3183_v24, %v2155_v42  ;;  %4111 = vmatprep.mubr.bf16.mxu0 %v7011_v3  ;;  %v2161_v25 = vmul.f32 %v6910_v44, %v7155_v8  ;;  %v2162_v20 = vmul.f32 %v6915_v26, %v7155_v8 }
 0x341   : > { %4527 = vst [vmem:[%s6935_s24 + $0x348] sm:$0xff] %v3182_v52  ;;  %3479 = vmatmul.mubr.bf16.gmra.mrb[136].mxu1 %v6481_v23  ;;  %v2168_v31 = vmul.f32 %v6910_v44, %v7171_v60  ;;  %v2169_v57 = vmul.f32 %v6915_v26, %v7171_v60  ;;  %v7195_v23 = vpop.permute.xlu0 %1785 }
 0x342   : > { %4528 = vst [vmem:[%s6935_s24 + $0x350] sm:$0xff] %v3184_v22  ;;  %3488 = vmatprep.mubr.bf16.mxu1 %v6514_v40  ;;  %v3843_v34 = vpop.f32.mrb[140].mxu0  ;;  %4141 = vmatpush1.bf16.msra.mxu1 %v5415_v55 }
 0x343   : > { %v3844_v42 = vadd.f32 %v3843_v34, %v2095_v33  ;;  %v3845_v13 = vpop.f32.mrb[141].mxu0  ;;  %4142 = vmatprep.subr.bf16.mxu1 %v8987_v1 }
 0x344   : > { %v3846_v12 = vadd.f32 %v3845_v13, %v2096_v2  ;;  %v3187_v10 = vpop.f32.mrb[32].mxu1  ;;  %v3847_v48 = vpop.f32.mrb[142].mxu0  ;;  %v5417_v2 = vld [vmem:[%s8735_s2 + $0x168] ss:$28 sps:$4 sm:$0xff]   ;;  %v2116_v13 = vmul.f32 %v7034_v28, %v7021_v51 }
 0x345   : > { %4468 = vst [vmem:[%s6935_s24 + $0x170] sm:$0xff] %v3844_v42  ;;  %v3188_v55 = vadd.f32 %v3187_v10, %v2161_v25  ;;  %v3848_v52 = vadd.f32 %v3847_v48, %v2102_v21  ;;  %v3189_v24 = vpop.f32.mrb[33].mxu1  ;;  %v3849_v33 = vpop.f32.mrb[143].mxu0  ;;  %v2117_v10 = vmul.f32 %v7039_v39, %v7021_v51  ;;  %v5418_v48 = vld [vmem:[%s8735_s2 + $0x1a0] ss:$28 sps:$4 sm:$0xff]  }
 0x346   : > { %4469 = vst [vmem:[%s6935_s24 + $0x178] sm:$0xff] %v3846_v12  ;;  %v3190_v22 = vadd.f32 %v3189_v24, %v2162_v20  ;;  %v3850_v34 = vadd.f32 %v3849_v33, %v2103_v59  ;;  %v3191_v40 = vpop.f32.mrb[34].mxu1  ;;  %4143 = vmatpush1.bf16.msra.mxu1 %v5416_v30  ;;  %v2109_v20 = vmul.f32 %v7034_v28, %v7013_v43  ;;  %v7211_v42 = vpop.permute.xlu1 %1790 }
 0x347   : > { %4534 = vst [vmem:[%s6935_s24 + $0x380] sm:$0xff] %v3188_v55  ;;  %4475 = vst [vmem:[%s6935_s24 + $0x1a8] sm:$0xff] %v3848_v52  ;;  %v3192_v25 = vadd.f32 %v3191_v40, %v2168_v31  ;;  %v3193_v21 = vpop.f32.mrb[35].mxu1  ;;  %4112 = vmatmul.mubr.bf16.gmra.mrb[248].mxu0 %v7009_v63  ;;  %4144 = vmatprep.subr.bf16.mxu1 %v8987_v1  ;;  %v2110_v30 = vmul.f32 %v7039_v39, %v7013_v43 }
 0x348   : > { %4535 = vst [vmem:[%s6935_s24 + $0x388] sm:$0xff] %v3190_v22  ;;  %4476 = vst [vmem:[%s6935_s24 + $0x1b0] sm:$0xff] %v3850_v34  ;;  %v3194_v59 = vadd.f32 %v3193_v21, %v2169_v57  ;;  %4121 = vmatprep.mubr.bf16.mxu0 %v7043_v41  ;;  %v2175_v40 = vmul.f32 %v6910_v44, %v7195_v23  ;;  %v2176_v12 = vmul.f32 %v6915_v26, %v7195_v23 }
 0x349   : > { %4541 = vst [vmem:[%s6935_s24 + $0x3b8] sm:$0xff] %v3192_v25  ;;  %3489 = vmatmul.mubr.bf16.gmra.mrb[140].mxu1 %v6512_v38  ;;  %v2182_v52 = vmul.f32 %v6910_v44, %v7211_v42  ;;  %v2183_v34 = vmul.f32 %v6915_v26, %v7211_v42 }
 0x34a   : > { %4542 = vst [vmem:[%s6935_s24 + $0x3c0] sm:$0xff] %v3194_v59  ;;  %3498 = vmatprep.mubr.bf16.mxu1 %v6545_v56  ;;  %v3853_v31 = vpop.f32.mrb[144].mxu0  ;;  %4145 = vmatpush1.bf16.msra.mxu1 %v5417_v2 }
 0x34b   : > { %v3854_v57 = vadd.f32 %v3853_v31, %v2109_v20  ;;  %v3855_v55 = vpop.f32.mrb[145].mxu0  ;;  %4146 = vmatprep.subr.bf16.mxu1 %v8987_v1 }
 0x34c   : > { %v3856_v24 = vadd.f32 %v3855_v55, %v2110_v30  ;;  %v3197_v33 = vpop.f32.mrb[36].mxu1  ;;  %v3857_v22 = vpop.f32.mrb[146].mxu0  ;;  %v5419_v55 = vld [vmem:[%s8735_s2 + $0x1d8] ss:$28 sps:$4 sm:$0xff]  }
 0x34d   : > { %4482 = vst [vmem:[%s6935_s24 + $0x1e0] sm:$0xff] %v3854_v57  ;;  %v3198_v2 = vadd.f32 %v3197_v33, %v2175_v40  ;;  %v3858_v25 = vadd.f32 %v3857_v22, %v2116_v13  ;;  %v3199_v21 = vpop.f32.mrb[37].mxu1  ;;  %v3859_v20 = vpop.f32.mrb[147].mxu0  ;;  %v2131_v22 = vmul.f32 %v7039_v39, %v7056_v46 }
 0x34e   : > { %4483 = vst [vmem:[%s6935_s24 + $0x1e8] sm:$0xff] %v3856_v24  ;;  %v3200_v59 = vadd.f32 %v3199_v21, %v2176_v12  ;;  %v3860_v31 = vadd.f32 %v3859_v20, %v2117_v10  ;;  %v3201_v56 = vpop.f32.mrb[38].mxu1  ;;  %v7235_v30 = vpop.permute.xlu0 %1795  ;;  %4147 = vmatpush1.bf16.msra.mxu1 %v5418_v48  ;;  %v2123_v12 = vmul.f32 %v7034_v28, %v7045_v9 }
 0x34f   : > { %4548 = vst [vmem:[%s6935_s24 + $0x3f0] sm:$0xff] %v3198_v2  ;;  %4489 = vst [vmem:[%s6935_s24 + $0x218] sm:$0xff] %v3858_v25  ;;  %v3202_v40 = vadd.f32 %v3201_v56, %v2182_v52  ;;  %v3203_v13 = vpop.f32.mrb[39].mxu1  ;;  %4122 = vmatmul.mubr.bf16.gmra.mrb[252].mxu0 %v7041_v18  ;;  %4148 = vmatprep.subr.bf16.mxu1 %v8987_v1  ;;  %v2124_v48 = vmul.f32 %v7039_v39, %v7045_v9  ;;  %v7250_v57 = vpop.permute.xlu1 %1800 }
 0x350   : > { %4549 = vst [vmem:[%s6935_s24 + $0x3f8] sm:$0xff] %v3200_v59  ;;  %4490 = vst [vmem:[%s6935_s24 + $0x220] sm:$0xff] %v3860_v31  ;;  %v3204_v10 = vadd.f32 %v3203_v13, %v2183_v34  ;;  %v2189_v56 = vmul.f32 %v6910_v44, %v7235_v30  ;;  %v2130_v52 = vmul.f32 %v7034_v28, %v7056_v46  ;;  %v5420_v34 = vld [vmem:[%s8735_s2 + $0x210] ss:$28 sps:$4 sm:$0xff]  }
 0x351   : > { %4555 = vst [vmem:[%s6935_s24 + $0x428] sm:$0xff] %v3202_v40  ;;  %3499 = vmatmul.mubr.bf16.gmra.mrb[144].mxu1 %v6543_v54  ;;  %v2190_v33 = vmul.f32 %v6915_v26, %v7235_v30  ;;  %v2196_v21 = vmul.f32 %v6910_v44, %v7250_v57  ;;  %v2197_v40 = vmul.f32 %v6915_v26, %v7250_v57 }
 0x352   : > { %4556 = vst [vmem:[%s6935_s24 + $0x430] sm:$0xff] %v3204_v10  ;;  %3508 = vmatprep.mubr.bf16.mxu1 %v6570_v6  ;;  %v3863_v24 = vpop.f32.mrb[148].mxu0  ;;  %4149 = vmatpush1.bf16.msra.mxu1 %v5419_v55 }
 0x353   : > { %v3864_v2 = vadd.f32 %v3863_v24, %v2123_v12  ;;  %v3865_v25 = vpop.f32.mrb[149].mxu0  ;;  %4150 = vmatprep.subr.bf16.mxu1 %v8987_v1 }
 0x354   : > { %v3866_v20 = vadd.f32 %v3865_v25, %v2124_v48  ;;  %v3207_v59 = vpop.f32.mrb[40].mxu1  ;;  %v3867_v31 = vpop.f32.mrb[150].mxu0  ;;  %v5421_v25 = vld [vmem:[%s8735_s2 + $0x248] ss:$28 sps:$4 sm:$0xff]  }
 0x355   : > { %4496 = vst [vmem:[%s6935_s24 + $0x250] sm:$0xff] %v3864_v2  ;;  %v3208_v55 = vadd.f32 %v3207_v59, %v2189_v56  ;;  %v3868_v13 = vadd.f32 %v3867_v31, %v2130_v52  ;;  %v3209_v10 = vpop.f32.mrb[41].mxu1  ;;  %v3869_v12 = vpop.f32.mrb[151].mxu0  ;;  %v2137_v2 = vmul.f32 %v7034_v28, %v7076_v58  ;;  %v2145_v59 = vmul.f32 %v7039_v39, %v7091_v5 }
 0x356   : > { %4497 = vst [vmem:[%s6935_s24 + $0x258] sm:$0xff] %v3866_v20  ;;  %v3210_v24 = vadd.f32 %v3209_v10, %v2190_v33  ;;  %v3870_v6 = vadd.f32 %v3869_v12, %v2131_v22  ;;  %v3211_v54 = vpop.f32.mrb[42].mxu1  ;;  %v7274_v48 = vpop.permute.xlu0 %1805  ;;  %4151 = vmatpush1.bf16.msra.mxu1 %v5420_v34  ;;  %v2138_v22 = vmul.f32 %v7039_v39, %v7076_v58 }
 0x357   : > { %8988 = vst [vmem:[#allocation62_spill] sm:$0xff] %v7274_v48  ;;  %4562 = vst [vmem:[%s6935_s24 + $0x460] sm:$0xff] %v3208_v55  ;;  %v3212_v56 = vadd.f32 %v3211_v54, %v2196_v21  ;;  %v3213_v52 = vpop.f32.mrb[43].mxu1  ;;  %4152 = vmatprep.subr.bf16.mxu1 %v8987_v1  ;;  %v7288_v34 = vpop.permute.xlu1 %1810  ;;  %v2203_v54 = vmul.f32 %v6910_v44, %v7274_v48  ;;  %v2144_v21 = vmul.f32 %v7034_v28, %v7091_v5 }
 0x358   : > { %4503 = vst [vmem:[%s6935_s24 + $0x288] sm:$0xff] %v3868_v13  ;;  %4563 = vst [vmem:[%s6935_s24 + $0x468] sm:$0xff] %v3210_v24  ;;  %v3214_v33 = vadd.f32 %v3213_v52, %v2197_v40  ;;  %v2204_v20 = vmul.f32 %v6915_v26, %v7274_v48  ;;  %v2210_v55 = vmul.f32 %v6910_v44, %v7288_v34 }
 0x359   : > { %4504 = vst [vmem:[%s6935_s24 + $0x290] sm:$0xff] %v3870_v6  ;;  %8989 = vst [vmem:[#allocation63_spill] sm:$0xff] %v7288_v34  ;;  %3509 = vmatmul.mubr.bf16.gmra.mrb[148].mxu1 %v6568_v4  ;;  %v2211_v24 = vmul.f32 %v6915_v26, %v7288_v34 }
 0x35a   : > { %4569 = vst [vmem:[%s6935_s24 + $0x498] sm:$0xff] %v3212_v56  ;;  %4570 = vst [vmem:[%s6935_s24 + $0x4a0] sm:$0xff] %v3214_v33  ;;  %3518 = vmatprep.mubr.bf16.mxu1 %v6587_v17  ;;  %v3873_v6 = vpop.f32.mrb[152].mxu0  ;;  %4153 = vmatpush1.bf16.msra.mxu1 %v5421_v25  ;;  %v7309_v4 = vpop.permute.xlu0 %1815 }
 0x35b   : > { %v3874_v31 = vadd.f32 %v3873_v6, %v2137_v2  ;;  %v3875_v40 = vpop.f32.mrb[153].mxu0  ;;  %4154 = vmatprep.subr.bf16.mxu1 %v8987_v1  ;;  %8990 = vst [vmem:[#allocation64_spill] sm:$0xff] %v7309_v4 }
 0x35c   : > { %v3876_v13 = vadd.f32 %v3875_v40, %v2138_v22  ;;  %v3217_v10 = vpop.f32.mrb[44].mxu1  ;;  %v3877_v12 = vpop.f32.mrb[154].mxu0 }
 0x35d   : > { %4510 = vst [vmem:[%s6935_s24 + $0x2c0] sm:$0xff] %v3874_v31  ;;  %v3218_v56 = vadd.f32 %v3217_v10, %v2203_v54  ;;  %v3878_v25 = vadd.f32 %v3877_v12, %v2144_v21  ;;  %v3219_v52 = vpop.f32.mrb[45].mxu1  ;;  %v3879_v2 = vpop.f32.mrb[155].mxu0  ;;  %v2151_v31 = vmul.f32 %v7034_v28, %v7115_v14  ;;  %v2152_v21 = vmul.f32 %v7039_v39, %v7115_v14 }
 0x35e   : > { %4511 = vst [vmem:[%s6935_s24 + $0x2c8] sm:$0xff] %v3876_v13  ;;  %v3220_v33 = vadd.f32 %v3219_v52, %v2204_v20  ;;  %v3880_v6 = vadd.f32 %v3879_v2, %v2145_v59  ;;  %v3221_v17 = vpop.f32.mrb[46].mxu1  ;;  %v7319_v13 = vpop.permute.xlu1 %1820  ;;  %v2217_v20 = vmul.f32 %v6910_v44, %v7309_v4  ;;  %v2159_v10 = vmul.f32 %v7039_v39, %v7131_v50 }
 0x35f   : > { %4576 = vst [vmem:[%s6935_s24 + $0x4d0] sm:$0xff] %v3218_v56  ;;  %4517 = vst [vmem:[%s6935_s24 + $0x2f8] sm:$0xff] %v3878_v25  ;;  %v3222_v22 = vadd.f32 %v3221_v17, %v2210_v55  ;;  %v3223_v40 = vpop.f32.mrb[47].mxu1  ;;  %v2158_v17 = vmul.f32 %v7034_v28, %v7131_v50  ;;  %v2218_v55 = vmul.f32 %v6915_v26, %v7309_v4 }
 0x360   : > { %4577 = vst [vmem:[%s6935_s24 + $0x4d8] sm:$0xff] %v3220_v33  ;;  %4518 = vst [vmem:[%s6935_s24 + $0x300] sm:$0xff] %v3880_v6  ;;  %v3224_v54 = vadd.f32 %v3223_v40, %v2211_v24  ;;  %v2224_v56 = vmul.f32 %v6910_v44, %v7319_v13  ;;  %v2225_v33 = vmul.f32 %v6915_v26, %v7319_v13 }
 0x361   : > { %8991 = vst [vmem:[#allocation65_spill] sm:$0xff] %v7319_v13  ;;  %4583 = vst [vmem:[%s6935_s24 + $0x508] sm:$0xff] %v3222_v22  ;;  %3519 = vmatmul.mubr.bf16.gmra.mrb[152].mxu1 %v6585_v15 }
 0x362   : > { %4584 = vst [vmem:[%s6935_s24 + $0x510] sm:$0xff] %v3224_v54  ;;  %3528 = vmatprep.mubr.bf16.mxu1 %v6607_v29  ;;  %v3883_v59 = vpop.f32.mrb[156].mxu0  ;;  %v7342_v29 = vpop.permute.xlu0 %1825 }
 0x363   : > { %v3884_v12 = vadd.f32 %v3883_v59, %v2151_v31  ;;  %v3885_v24 = vpop.f32.mrb[157].mxu0  ;;  %v5422_v31 = vld [vmem:[%s8735_s2 + $0x280] ss:$28 sps:$4 sm:$0xff]  }
 0x364   : > { %v3886_v25 = vadd.f32 %v3885_v24, %v2152_v21  ;;  %v3227_v52 = vpop.f32.mrb[48].mxu1  ;;  %v3887_v2 = vpop.f32.mrb[158].mxu0  ;;  %4155 = vmatpush1.bf16.msra.mxu1 %v5422_v31 }
 0x365   : > { %4524 = vst [vmem:[%s6935_s24 + $0x330] sm:$0xff] %v3884_v12  ;;  %v3228_v6 = vadd.f32 %v3227_v52, %v2217_v20  ;;  %v3888_v22 = vadd.f32 %v3887_v2, %v2158_v17  ;;  %v3229_v40 = vpop.f32.mrb[49].mxu1  ;;  %v3889_v54 = vpop.f32.mrb[159].mxu0  ;;  %v2165_v17 = vmul.f32 %v7034_v28, %v7155_v8  ;;  %4156 = vmatprep.subr.bf16.mxu1 %v8987_v1 }
 0x366   : > { %4525 = vst [vmem:[%s6935_s24 + $0x338] sm:$0xff] %v3886_v25  ;;  %v3230_v59 = vadd.f32 %v3229_v40, %v2218_v55  ;;  %v3890_v21 = vadd.f32 %v3889_v54, %v2159_v10  ;;  %v3231_v24 = vpop.f32.mrb[50].mxu1  ;;  %v2166_v55 = vmul.f32 %v7039_v39, %v7155_v8  ;;  %v7352_v25 = vpop.permute.xlu1 %1830  ;;  %v2231_v10 = vmul.f32 %v6910_v44, %v7342_v29 }
 0x367   : > { %4590 = vst [vmem:[%s6935_s24 + $0x540] sm:$0xff] %v3228_v6  ;;  %4531 = vst [vmem:[%s6935_s24 + $0x368] sm:$0xff] %v3888_v22  ;;  %v3232_v20 = vadd.f32 %v3231_v24, %v2224_v56  ;;  %v3233_v12 = vpop.f32.mrb[51].mxu1  ;;  %v2172_v56 = vmul.f32 %v7034_v28, %v7171_v60  ;;  %v2173_v6 = vmul.f32 %v7039_v39, %v7171_v60  ;;  %v7373_v15 = vpop.permute.xlu0 %1835 }
 0x368   : > { %4591 = vst [vmem:[%s6935_s24 + $0x548] sm:$0xff] %v3230_v59  ;;  %4532 = vst [vmem:[%s6935_s24 + $0x370] sm:$0xff] %v3890_v21  ;;  %v3234_v52 = vadd.f32 %v3233_v12, %v2225_v33  ;;  %v2232_v33 = vmul.f32 %v6915_v26, %v7342_v29  ;;  %v2238_v54 = vmul.f32 %v6910_v44, %v7352_v25 }
 0x369   : > { %8992 = vst [vmem:[#allocation66_spill] sm:$0xff] %v7352_v25  ;;  %4597 = vst [vmem:[%s6935_s24 + $0x578] sm:$0xff] %v3232_v20  ;;  %3529 = vmatmul.mubr.bf16.gmra.mrb[156].mxu1 %v6605_v27  ;;  %v2239_v24 = vmul.f32 %v6915_v26, %v7352_v25 }
 0x36a   : > { %4598 = vst [vmem:[%s6935_s24 + $0x580] sm:$0xff] %v3234_v52  ;;  %3538 = vmatprep.mubr.bf16.mxu1 %v6621_v37  ;;  %v3893_v2 = vpop.f32.mrb[160].mxu0  ;;  %8993 = vst [vmem:[#allocation67_spill] sm:$0xff] %v7373_v15 }
 0x36b   : > { %v3894_v22 = vadd.f32 %v3893_v2, %v2165_v17  ;;  %v3895_v40 = vpop.f32.mrb[161].mxu0 }
 0x36c   : > { %v3896_v31 = vadd.f32 %v3895_v40, %v2166_v55  ;;  %v3237_v59 = vpop.f32.mrb[52].mxu1  ;;  %v3897_v21 = vpop.f32.mrb[162].mxu0 }
 0x36d   : > { %4538 = vst [vmem:[%s6935_s24 + $0x3a0] sm:$0xff] %v3894_v22  ;;  %v3238_v20 = vadd.f32 %v3237_v59, %v2231_v10  ;;  %v3898_v12 = vadd.f32 %v3897_v21, %v2172_v56  ;;  %v3239_v52 = vpop.f32.mrb[53].mxu1  ;;  %v3899_v37 = vpop.f32.mrb[163].mxu0  ;;  %v2179_v22 = vmul.f32 %v7034_v28, %v7195_v23  ;;  %v2180_v56 = vmul.f32 %v7039_v39, %v7195_v23 }
 0x36e   : > { %4539 = vst [vmem:[%s6935_s24 + $0x3a8] sm:$0xff] %v3896_v31  ;;  %v3240_v17 = vadd.f32 %v3239_v52, %v2232_v33  ;;  %v3900_v2 = vadd.f32 %v3899_v37, %v2173_v6  ;;  %v3241_v27 = vpop.f32.mrb[54].mxu1  ;;  %v7383_v31 = vpop.permute.xlu1 %1840  ;;  %v2245_v37 = vmul.f32 %v6910_v44, %v7373_v15  ;;  %v2246_v6 = vmul.f32 %v6915_v26, %v7373_v15 }
 0x36f   : > { %4604 = vst [vmem:[%s6935_s24 + $0x5b0] sm:$0xff] %v3238_v20  ;;  %4545 = vst [vmem:[%s6935_s24 + $0x3d8] sm:$0xff] %v3898_v12  ;;  %v3242_v55 = vadd.f32 %v3241_v27, %v2238_v54  ;;  %v3243_v40 = vpop.f32.mrb[55].mxu1  ;;  %v2186_v27 = vmul.f32 %v7034_v28, %v7211_v42  ;;  %v2187_v54 = vmul.f32 %v7039_v39, %v7211_v42 }
 0x370   : > { %4605 = vst [vmem:[%s6935_s24 + $0x5b8] sm:$0xff] %v3240_v17  ;;  %4546 = vst [vmem:[%s6935_s24 + $0x3e0] sm:$0xff] %v3900_v2  ;;  %v3244_v10 = vadd.f32 %v3243_v40, %v2239_v24  ;;  %v2252_v24 = vmul.f32 %v6910_v44, %v7383_v31  ;;  %v2253_v17 = vmul.f32 %v6915_v26, %v7383_v31 }
 0x371   : > { %8994 = vst [vmem:[#allocation68_spill] sm:$0xff] %v7383_v31  ;;  %4611 = vst [vmem:[%s6935_s24 + $0x5e8] sm:$0xff] %v3242_v55  ;;  %3539 = vmatmul.mubr.bf16.gmra.mrb[160].mxu1 %v6619_v35 }
 0x372   : > { %4612 = vst [vmem:[%s6935_s24 + $0x5f0] sm:$0xff] %v3244_v10  ;;  %3548 = vmatprep.mubr.bf16.mxu1 %v6641_v49  ;;  %v3903_v33 = vpop.f32.mrb[164].mxu0  ;;  %v7406_v49 = vpop.permute.xlu0 %1845 }
 0x373   : > { %v3904_v59 = vadd.f32 %v3903_v33, %v2179_v22  ;;  %v3905_v21 = vpop.f32.mrb[165].mxu0  ;;  %v5423_v22 = vld [vmem:[%s8735_s2 + $0x2b8] ss:$28 sps:$4 sm:$0xff]   ;;  %8995 = vst [vmem:[#allocation69_spill] sm:$0xff] %v7406_v49 }
 0x374   : > { %v3906_v20 = vadd.f32 %v3905_v21, %v2180_v56  ;;  %v3247_v12 = vpop.f32.mrb[56].mxu1  ;;  %v3907_v52 = vpop.f32.mrb[166].mxu0  ;;  %4157 = vmatpush1.bf16.msra.mxu1 %v5423_v22 }
 0x375   : > { %4552 = vst [vmem:[%s6935_s24 + $0x410] sm:$0xff] %v3904_v59  ;;  %v3248_v2 = vadd.f32 %v3247_v12, %v2245_v37  ;;  %v3908_v55 = vadd.f32 %v3907_v52, %v2186_v27  ;;  %v3249_v40 = vpop.f32.mrb[57].mxu1  ;;  %v3909_v10 = vpop.f32.mrb[167].mxu0  ;;  %v2193_v27 = vmul.f32 %v7034_v28, %v7235_v30  ;;  %4158 = vmatprep.subr.bf16.mxu1 %v8987_v1 }
 0x376   : > { %4553 = vst [vmem:[%s6935_s24 + $0x418] sm:$0xff] %v3906_v20  ;;  %v3250_v33 = vadd.f32 %v3249_v40, %v2246_v6  ;;  %v3910_v56 = vadd.f32 %v3909_v10, %v2187_v54  ;;  %v3251_v21 = vpop.f32.mrb[58].mxu1  ;;  %v2194_v6 = vmul.f32 %v7039_v39, %v7235_v30  ;;  %v7416_v20 = vpop.permute.xlu1 %1850  ;;  %v2259_v54 = vmul.f32 %v6910_v44, %v7406_v49 }
 0x377   : > { %4618 = vst [vmem:[%s6935_s24 + $0x620] sm:$0xff] %v3248_v2  ;;  %4559 = vst [vmem:[%s6935_s24 + $0x448] sm:$0xff] %v3908_v55  ;;  %v3252_v37 = vadd.f32 %v3251_v21, %v2252_v24  ;;  %v3253_v59 = vpop.f32.mrb[59].mxu1  ;;  %v2200_v24 = vmul.f32 %v7034_v28, %v7250_v57  ;;  %v2201_v2 = vmul.f32 %v7039_v39, %v7250_v57  ;;  %v7437_v35 = vpop.permute.xlu0 %1855 }
 0x378   : > { %4619 = vst [vmem:[%s6935_s24 + $0x628] sm:$0xff] %v3250_v33  ;;  %4560 = vst [vmem:[%s6935_s24 + $0x450] sm:$0xff] %v3910_v56  ;;  %v3254_v12 = vadd.f32 %v3253_v59, %v2253_v17  ;;  %v2260_v17 = vmul.f32 %v6915_v26, %v7406_v49  ;;  %v2266_v10 = vmul.f32 %v6910_v44, %v7416_v20 }
 0x379   : > { %8996 = vst [vmem:[#allocation70_spill] sm:$0xff] %v7416_v20  ;;  %4625 = vst [vmem:[%s6935_s24 + $0x658] sm:$0xff] %v3252_v37  ;;  %3549 = vmatmul.mubr.bf16.gmra.mrb[164].mxu1 %v6639_v47  ;;  %v2267_v21 = vmul.f32 %v6915_v26, %v7416_v20 }
 0x37a   : > { %4626 = vst [vmem:[%s6935_s24 + $0x660] sm:$0xff] %v3254_v12  ;;  %3558 = vmatprep.mubr.bf16.mxu1 %v6655_v62  ;;  %v3913_v52 = vpop.f32.mrb[168].mxu0  ;;  %8997 = vst [vmem:[#allocation71_spill] sm:$0xff] %v7437_v35 }
 0x37b   : > { %v3914_v55 = vadd.f32 %v3913_v52, %v2193_v27  ;;  %v3915_v40 = vpop.f32.mrb[169].mxu0 }
 0x37c   : > { %v3916_v22 = vadd.f32 %v3915_v40, %v2194_v6  ;;  %v3257_v33 = vpop.f32.mrb[60].mxu1  ;;  %v3917_v56 = vpop.f32.mrb[170].mxu0 }
 0x37d   : > { %4566 = vst [vmem:[%s6935_s24 + $0x480] sm:$0xff] %v3914_v55  ;;  %v3258_v37 = vadd.f32 %v3257_v33, %v2259_v54  ;;  %v3918_v59 = vadd.f32 %v3917_v56, %v2200_v24  ;;  %v3259_v12 = vpop.f32.mrb[61].mxu1  ;;  %v3919_v62 = vpop.f32.mrb[171].mxu0  ;;  %v2207_v55 = vmul.f32 %v7034_v28, %v7274_v48  ;;  %v2208_v24 = vmul.f32 %v7039_v39, %v7274_v48 }
 0x37e   : > { %4567 = vst [vmem:[%s6935_s24 + $0x488] sm:$0xff] %v3916_v22  ;;  %v3260_v27 = vadd.f32 %v3259_v12, %v2260_v17  ;;  %v3920_v52 = vadd.f32 %v3919_v62, %v2201_v2  ;;  %v3261_v47 = vpop.f32.mrb[62].mxu1  ;;  %v7447_v22 = vpop.permute.xlu1 %1860  ;;  %v8999_v62 = vld [vmem:[#allocation21_spill] sm:$0xff]  ;;  %v2273_v17 = vmul.f32 %v6910_v44, %v7437_v35  ;;  %v9000_v2 = vld [vmem:[#allocation24_spill] sm:$0xff]  ;;  %v2274_v33 = vmul.f32 %v6915_v26, %v7437_v35 }
 0x37f   : > { %4632 = vst [vmem:[%s6935_s24 + $0x690] sm:$0xff] %v3258_v37  ;;  %4573 = vst [vmem:[%s6935_s24 + $0x4b8] sm:$0xff] %v3918_v59  ;;  %v3262_v6 = vadd.f32 %v3261_v47, %v2266_v10  ;;  %v3263_v40 = vpop.f32.mrb[63].mxu1  ;;  %v2214_v47 = vmul.f32 %v7034_v28, %v7288_v34  ;;  %v2215_v56 = vmul.f32 %v7039_v39, %v7288_v34  ;;  %v7470_v34 = vpop.permute.xlu0 %1865 }
 0x380   : > { %4633 = vst [vmem:[%s6935_s24 + $0x698] sm:$0xff] %v3260_v27  ;;  %4574 = vst [vmem:[%s6935_s24 + $0x4c0] sm:$0xff] %v3920_v52  ;;  %v3264_v54 = vadd.f32 %v3263_v40, %v2267_v21  ;;  %v2280_v59 = vmul.f32 %v6910_v44, %v7447_v22 }
 0x381   : > { %8998 = vst [vmem:[#allocation72_spill] sm:$0xff] %v7447_v22  ;;  %4639 = vst [vmem:[%s6935_s24 + $0x6c8] sm:$0xff] %v3262_v6  ;;  %3559 = vmatmul.mubr.bf16.gmra.mrb[168].mxu1 %v8999_v62  ;;  %v2281_v6 = vmul.f32 %v6915_v26, %v7447_v22 }
 0x382   : > { %4640 = vst [vmem:[%s6935_s24 + $0x6d0] sm:$0xff] %v3264_v54  ;;  %3568 = vmatprep.mubr.bf16.mxu1 %v9000_v2  ;;  %v3923_v10 = vpop.f32.mrb[172].mxu0  ;;  %9001 = vst [vmem:[#allocation73_spill] sm:$0xff] %v7470_v34 }
 0x383   : > { %v3924_v21 = vadd.f32 %v3923_v10, %v2207_v55  ;;  %v3925_v37 = vpop.f32.mrb[173].mxu0  ;;  %v5424_v55 = vld [vmem:[%s8735_s2 + $0x2f0] ss:$28 sps:$4 sm:$0xff]   ;;  %v7501_v48 = vpop.permute.xlu0 %1875 }
 0x384   : > { %v3926_v12 = vadd.f32 %v3925_v37, %v2208_v24  ;;  %v3267_v27 = vpop.f32.mrb[64].mxu1  ;;  %v3927_v52 = vpop.f32.mrb[174].mxu0  ;;  %4159 = vmatpush1.bf16.msra.mxu1 %v5424_v55  ;;  %9005 = vst [vmem:[#allocation75_spill] sm:$0xff] %v7501_v48 }
 0x385   : > { %4580 = vst [vmem:[%s6935_s24 + $0x4f0] sm:$0xff] %v3924_v21  ;;  %v3268_v40 = vadd.f32 %v3267_v27, %v2273_v17  ;;  %v3928_v54 = vadd.f32 %v3927_v52, %v2214_v47  ;;  %v3269_v2 = vpop.f32.mrb[65].mxu1  ;;  %v3929_v62 = vpop.f32.mrb[175].mxu0  ;;  %v2221_v47 = vmul.f32 %v7034_v28, %v7309_v4  ;;  %4160 = vmatprep.subr.bf16.mxu1 %v8987_v1 }
 0x386   : > { %4581 = vst [vmem:[%s6935_s24 + $0x4f8] sm:$0xff] %v3926_v12  ;;  %v3270_v10 = vadd.f32 %v3269_v2, %v2274_v33  ;;  %v3930_v24 = vadd.f32 %v3929_v62, %v2215_v56  ;;  %v3271_v37 = vpop.f32.mrb[66].mxu1  ;;  %v2222_v2 = vmul.f32 %v7039_v39, %v7309_v4  ;;  %v7480_v33 = vpop.permute.xlu1 %1870  ;;  %v9003_v62 = vld [vmem:[#allocation23_spill] sm:$0xff]  ;;  %v2287_v56 = vmul.f32 %v6910_v44, %v7470_v34  ;;  %v9004_v12 = vld [vmem:[#allocation26_spill] sm:$0xff] }
 0x387   : > { %4646 = vst [vmem:[%s6935_s24 + $0x700] sm:$0xff] %v3268_v40  ;;  %4587 = vst [vmem:[%s6935_s24 + $0x528] sm:$0xff] %v3928_v54  ;;  %v3272_v17 = vadd.f32 %v3271_v37, %v2280_v59  ;;  %v3273_v21 = vpop.f32.mrb[67].mxu1  ;;  %v2228_v59 = vmul.f32 %v7034_v28, %v7319_v13  ;;  %v2229_v40 = vmul.f32 %v7039_v39, %v7319_v13 }
 0x388   : > { %4647 = vst [vmem:[%s6935_s24 + $0x708] sm:$0xff] %v3270_v10  ;;  %4588 = vst [vmem:[%s6935_s24 + $0x530] sm:$0xff] %v3930_v24  ;;  %v3274_v27 = vadd.f32 %v3273_v21, %v2281_v6  ;;  %v2288_v6 = vmul.f32 %v6915_v26, %v7470_v34  ;;  %v2294_v10 = vmul.f32 %v6910_v44, %v7480_v33 }
 0x389   : > { %9002 = vst [vmem:[#allocation74_spill] sm:$0xff] %v7480_v33  ;;  %4653 = vst [vmem:[%s6935_s24 + $0x738] sm:$0xff] %v3272_v17  ;;  %3569 = vmatmul.mubr.bf16.gmra.mrb[172].mxu1 %v9003_v62  ;;  %v2295_v21 = vmul.f32 %v6915_v26, %v7480_v33 }
 0x38a   : > { %4654 = vst [vmem:[%s6935_s24 + $0x740] sm:$0xff] %v3274_v27  ;;  %3578 = vmatprep.mubr.bf16.mxu1 %v9004_v12  ;;  %v3933_v52 = vpop.f32.mrb[176].mxu0 }
 0x38b   : > { %v3934_v54 = vadd.f32 %v3933_v52, %v2221_v47  ;;  %v3935_v55 = vpop.f32.mrb[177].mxu0 }
 0x38c   : > { %v3936_v24 = vadd.f32 %v3935_v55, %v2222_v2  ;;  %v3277_v37 = vpop.f32.mrb[68].mxu1  ;;  %v3937_v17 = vpop.f32.mrb[178].mxu0 }
 0x38d   : > { %4594 = vst [vmem:[%s6935_s24 + $0x560] sm:$0xff] %v3934_v54  ;;  %v3278_v27 = vadd.f32 %v3277_v37, %v2287_v56  ;;  %v3938_v12 = vadd.f32 %v3937_v17, %v2228_v59  ;;  %v3279_v62 = vpop.f32.mrb[69].mxu1  ;;  %v3939_v13 = vpop.f32.mrb[179].mxu0  ;;  %v2235_v54 = vmul.f32 %v7034_v28, %v7342_v29  ;;  %v2236_v59 = vmul.f32 %v7039_v39, %v7342_v29 }
 0x38e   : > { %4595 = vst [vmem:[%s6935_s24 + $0x568] sm:$0xff] %v3936_v24  ;;  %v3280_v47 = vadd.f32 %v3279_v62, %v2288_v6  ;;  %v3940_v52 = vadd.f32 %v3939_v13, %v2229_v40  ;;  %v3281_v4 = vpop.f32.mrb[70].mxu1  ;;  %v7511_v24 = vpop.permute.xlu1 %1880  ;;  %v9007_v13 = vld [vmem:[#allocation25_spill] sm:$0xff]  ;;  %v2301_v62 = vmul.f32 %v6910_v44, %v7501_v48  ;;  %v2302_v40 = vmul.f32 %v6915_v26, %v7501_v48 }
 0x38f   : > { %4660 = vst [vmem:[%s6935_s24 + $0x770] sm:$0xff] %v3278_v27  ;;  %4601 = vst [vmem:[%s6935_s24 + $0x598] sm:$0xff] %v3938_v12  ;;  %v3282_v2 = vadd.f32 %v3281_v4, %v2294_v10  ;;  %v3283_v55 = vpop.f32.mrb[71].mxu1  ;;  %v2242_v4 = vmul.f32 %v7034_v28, %v7352_v25  ;;  %v9008_v12 = vld [vmem:[#allocation28_spill] sm:$0xff]  ;;  %v2243_v10 = vmul.f32 %v7039_v39, %v7352_v25  ;;  %v7534_v25 = vpop.permute.xlu0 %1885 }
 0x390   : > { %4661 = vst [vmem:[%s6935_s24 + $0x778] sm:$0xff] %v3280_v47  ;;  %4602 = vst [vmem:[%s6935_s24 + $0x5a0] sm:$0xff] %v3940_v52  ;;  %v3284_v56 = vadd.f32 %v3283_v55, %v2295_v21  ;;  %v2308_v21 = vmul.f32 %v6910_v44, %v7511_v24 }
 0x391   : > { %9006 = vst [vmem:[#allocation76_spill] sm:$0xff] %v7511_v24  ;;  %4667 = vst [vmem:[%s6935_s24 + $0x7a8] sm:$0xff] %v3282_v2  ;;  %3579 = vmatmul.mubr.bf16.gmra.mrb[176].mxu1 %v9007_v13  ;;  %v2309_v2 = vmul.f32 %v6915_v26, %v7511_v24 }
 0x392   : > { %4668 = vst [vmem:[%s6935_s24 + $0x7b0] sm:$0xff] %v3284_v56  ;;  %3588 = vmatprep.mubr.bf16.mxu1 %v9008_v12  ;;  %v3943_v6 = vpop.f32.mrb[180].mxu0  ;;  %9009 = vst [vmem:[#allocation77_spill] sm:$0xff] %v7534_v25 }
 0x393   : > { %v3944_v37 = vadd.f32 %v3943_v6, %v2235_v54  ;;  %v3945_v17 = vpop.f32.mrb[181].mxu0  ;;  %v5425_v54 = vld [vmem:[%s8735_s2 + $0x328] ss:$28 sps:$4 sm:$0xff]  }
 0x394   : > { %v3946_v27 = vadd.f32 %v3945_v17, %v2236_v59  ;;  %v3287_v47 = vpop.f32.mrb[72].mxu1  ;;  %v3947_v52 = vpop.f32.mrb[182].mxu0  ;;  %4161 = vmatpush1.bf16.msra.mxu1 %v5425_v54 }
 0x395   : > { %4608 = vst [vmem:[%s6935_s24 + $0x5d0] sm:$0xff] %v3944_v37  ;;  %v3288_v55 = vadd.f32 %v3287_v47, %v2301_v62  ;;  %v3948_v56 = vadd.f32 %v3947_v52, %v2242_v4  ;;  %v3289_v12 = vpop.f32.mrb[73].mxu1  ;;  %v3949_v13 = vpop.f32.mrb[183].mxu0  ;;  %v2249_v4 = vmul.f32 %v7034_v28, %v7373_v15  ;;  %4162 = vmatprep.subr.bf16.mxu1 %v8987_v1 }
 0x396   : > { %4609 = vst [vmem:[%s6935_s24 + $0x5d8] sm:$0xff] %v3946_v27  ;;  %v3290_v6 = vadd.f32 %v3289_v12, %v2302_v40  ;;  %v3950_v59 = vadd.f32 %v3949_v13, %v2243_v10  ;;  %v3291_v17 = vpop.f32.mrb[74].mxu1  ;;  %v2250_v12 = vmul.f32 %v7039_v39, %v7373_v15  ;;  %v7544_v40 = vpop.permute.xlu1 %1890  ;;  %v9011_v13 = vld [vmem:[#allocation27_spill] sm:$0xff]  ;;  %v2315_v10 = vmul.f32 %v6910_v44, %v7534_v25  ;;  %v9012_v27 = vld [vmem:[#allocation30_spill] sm:$0xff] }
 0x397   : > { %4674 = vst [vmem:[%s6935_s24 + $0x7e0] sm:$0xff] %v3288_v55  ;;  %4615 = vst [vmem:[%s6935_s24 + $0x608] sm:$0xff] %v3948_v56  ;;  %v3292_v62 = vadd.f32 %v3291_v17, %v2308_v21  ;;  %v3293_v37 = vpop.f32.mrb[75].mxu1  ;;  %v2256_v21 = vmul.f32 %v7034_v28, %v7383_v31  ;;  %v2257_v1 = vmul.f32 %v7039_v39, %v7383_v31  ;;  %v7565_v15 = vpop.permute.xlu0 %1895 }
 0x398   : > { %4675 = vst [vmem:[%s6935_s24 + $0x7e8] sm:$0xff] %v3290_v6  ;;  %4616 = vst [vmem:[%s6935_s24 + $0x610] sm:$0xff] %v3950_v59  ;;  %v3294_v47 = vadd.f32 %v3293_v37, %v2309_v2  ;;  %v2316_v2 = vmul.f32 %v6915_v26, %v7534_v25  ;;  %v2322_v54 = vmul.f32 %v6910_v44, %v7544_v40 }
 0x399   : > { %9010 = vst [vmem:[#allocation78_spill] sm:$0xff] %v7544_v40  ;;  %4681 = vst [vmem:[%s6935_s24 + $0x818] sm:$0xff] %v3292_v62  ;;  %3589 = vmatmul.mubr.bf16.gmra.mrb[180].mxu1 %v9011_v13  ;;  %v2323_v62 = vmul.f32 %v6915_v26, %v7544_v40 }
 0x39a   : > { %4682 = vst [vmem:[%s6935_s24 + $0x820] sm:$0xff] %v3294_v47  ;;  %3598 = vmatprep.mubr.bf16.mxu1 %v9012_v27  ;;  %v3953_v52 = vpop.f32.mrb[184].mxu0  ;;  %9013 = vst [vmem:[#allocation79_spill] sm:$0xff] %v7565_v15 }
 0x39b   : > { %v3954_v55 = vadd.f32 %v3953_v52, %v2249_v4  ;;  %v3955_v56 = vpop.f32.mrb[185].mxu0 }
 0x39c   : > { %v3956_v6 = vadd.f32 %v3955_v56, %v2250_v12  ;;  %v3297_v59 = vpop.f32.mrb[76].mxu1  ;;  %v3957_v17 = vpop.f32.mrb[186].mxu0 }
 0x39d   : > { %4622 = vst [vmem:[%s6935_s24 + $0x640] sm:$0xff] %v3954_v55  ;;  %v3298_v37 = vadd.f32 %v3297_v59, %v2315_v10  ;;  %v3958_v47 = vadd.f32 %v3957_v17, %v2256_v21  ;;  %v3299_v27 = vpop.f32.mrb[77].mxu1  ;;  %v3959_v13 = vpop.f32.mrb[187].mxu0  ;;  %v2263_v55 = vmul.f32 %v7034_v28, %v7406_v49  ;;  %v2264_v21 = vmul.f32 %v7039_v39, %v7406_v49 }
 0x39e   : > { %4623 = vst [vmem:[%s6935_s24 + $0x648] sm:$0xff] %v3956_v6  ;;  %v3300_v4 = vadd.f32 %v3299_v27, %v2316_v2  ;;  %v3960_v52 = vadd.f32 %v3959_v13, %v2257_v1  ;;  %v3301_v31 = vpop.f32.mrb[78].mxu1  ;;  %v7575_v6 = vpop.permute.xlu1 %1900  ;;  %v9015_v13 = vld [vmem:[#allocation29_spill] sm:$0xff]  ;;  %v2329_v27 = vmul.f32 %v6910_v44, %v7565_v15  ;;  %v9016_v2 = vld [vmem:[#allocation32_spill] sm:$0xff]  ;;  %v2271_v59 = vmul.f32 %v7039_v39, %v7416_v20 }
 0x39f   : > { %4688 = vst [vmem:[%s6935_s24 + $0x850] sm:$0xff] %v3298_v37  ;;  %4629 = vst [vmem:[%s6935_s24 + $0x678] sm:$0xff] %v3958_v47  ;;  %v3302_v12 = vadd.f32 %v3301_v31, %v2322_v54  ;;  %v3303_v56 = vpop.f32.mrb[79].mxu1  ;;  %v2270_v31 = vmul.f32 %v7034_v28, %v7416_v20  ;;  %v2330_v54 = vmul.f32 %v6915_v26, %v7565_v15  ;;  %v7598_v20 = vpop.permute.xlu0 %1905 }
 0x3a0   : > { %4689 = vst [vmem:[%s6935_s24 + $0x858] sm:$0xff] %v3300_v4  ;;  %4630 = vst [vmem:[%s6935_s24 + $0x680] sm:$0xff] %v3960_v52  ;;  %v3304_v10 = vadd.f32 %v3303_v56, %v2323_v62  ;;  %v2336_v37 = vmul.f32 %v6910_v44, %v7575_v6 }
 0x3a1   : > { %9014 = vst [vmem:[#allocation80_spill] sm:$0xff] %v7575_v6  ;;  %4695 = vst [vmem:[%s6935_s24 + $0x888] sm:$0xff] %v3302_v12  ;;  %3599 = vmatmul.mubr.bf16.gmra.mrb[184].mxu1 %v9015_v13  ;;  %v2337_v12 = vmul.f32 %v6915_v26, %v7575_v6 }
 0x3a2   : > { %4696 = vst [vmem:[%s6935_s24 + $0x890] sm:$0xff] %v3304_v10  ;;  %3608 = vmatprep.mubr.bf16.mxu1 %v9016_v2  ;;  %v3963_v1 = vpop.f32.mrb[188].mxu0  ;;  %9017 = vst [vmem:[#allocation81_spill] sm:$0xff] %v7598_v20 }
 0x3a3   : > { %v3964_v17 = vadd.f32 %v3963_v1, %v2263_v55  ;;  %v3965_v62 = vpop.f32.mrb[189].mxu0  ;;  %v5426_v55 = vld [vmem:[%s8735_s2 + $0x360] ss:$28 sps:$4 sm:$0xff]   ;;  %v7628_v49 = vpop.permute.xlu0 %1915 }
 0x3a4   : > { %v3966_v47 = vadd.f32 %v3965_v62, %v2264_v21  ;;  %v3307_v4 = vpop.f32.mrb[80].mxu1  ;;  %v3967_v52 = vpop.f32.mrb[190].mxu0  ;;  %4163 = vmatpush1.bf16.msra.mxu1 %v5426_v55  ;;  %9021 = vst [vmem:[#allocation83_spill] sm:$0xff] %v7628_v49 }
 0x3a5   : > { %4636 = vst [vmem:[%s6935_s24 + $0x6b0] sm:$0xff] %v3964_v17  ;;  %v3308_v56 = vadd.f32 %v3307_v4, %v2329_v27  ;;  %v3968_v10 = vadd.f32 %v3967_v52, %v2270_v31  ;;  %v3309_v2 = vpop.f32.mrb[81].mxu1  ;;  %v3969_v13 = vpop.f32.mrb[191].mxu0  ;;  %v2277_v31 = vmul.f32 %v7034_v28, %v7437_v35 }
 0x3a6   : > { %4637 = vst [vmem:[%s6935_s24 + $0x6b8] sm:$0xff] %v3966_v47  ;;  %v3310_v21 = vadd.f32 %v3309_v2, %v2330_v54  ;;  %v3970_v1 = vadd.f32 %v3969_v13, %v2271_v59  ;;  %v3311_v62 = vpop.f32.mrb[82].mxu1  ;;  %v2278_v47 = vmul.f32 %v7039_v39, %v7437_v35  ;;  %v7608_v2 = vpop.permute.xlu1 %1910  ;;  %v9019_v13 = vld [vmem:[#allocation31_spill] sm:$0xff]  ;;  %v2343_v54 = vmul.f32 %v6910_v44, %v7598_v20 }
 0x3a7   : > { %4702 = vst [vmem:[%s6935_s24 + $0x8c0] sm:$0xff] %v3308_v56  ;;  %4643 = vst [vmem:[%s6935_s24 + $0x6e8] sm:$0xff] %v3968_v10  ;;  %v3312_v27 = vadd.f32 %v3311_v62, %v2336_v37  ;;  %v3313_v17 = vpop.f32.mrb[83].mxu1  ;;  %v2284_v59 = vmul.f32 %v7034_v28, %v7447_v22  ;;  %v9020_v37 = vld [vmem:[#allocation34_spill] sm:$0xff]  ;;  %v2285_v56 = vmul.f32 %v7039_v39, %v7447_v22 }
 0x3a8   : > { %4703 = vst [vmem:[%s6935_s24 + $0x8c8] sm:$0xff] %v3310_v21  ;;  %4644 = vst [vmem:[%s6935_s24 + $0x6f0] sm:$0xff] %v3970_v1  ;;  %v3314_v4 = vadd.f32 %v3313_v17, %v2337_v12  ;;  %v2344_v12 = vmul.f32 %v6915_v26, %v7598_v20  ;;  %v2350_v21 = vmul.f32 %v6910_v44, %v7608_v2 }
 0x3a9   : > { %9018 = vst [vmem:[#allocation82_spill] sm:$0xff] %v7608_v2  ;;  %4709 = vst [vmem:[%s6935_s24 + $0x8f8] sm:$0xff] %v3312_v27  ;;  %3609 = vmatmul.mubr.bf16.gmra.mrb[188].mxu1 %v9019_v13  ;;  %v2351_v17 = vmul.f32 %v6915_v26, %v7608_v2 }
 0x3aa   : > { %4710 = vst [vmem:[%s6935_s24 + $0x900] sm:$0xff] %v3314_v4  ;;  %3618 = vmatprep.mubr.bf16.mxu1 %v9020_v37  ;;  %v3973_v52 = vpop.f32.mrb[192].mxu0 }
 0x3ab   : > { %v3974_v10 = vadd.f32 %v3973_v52, %v2277_v31  ;;  %v3975_v55 = vpop.f32.mrb[193].mxu0 }
 0x3ac   : > { %v3976_v1 = vadd.f32 %v3975_v55, %v2278_v47  ;;  %v3317_v62 = vpop.f32.mrb[84].mxu1  ;;  %v3977_v27 = vpop.f32.mrb[194].mxu0 }
 0x3ad   : > { %4650 = vst [vmem:[%s6935_s24 + $0x720] sm:$0xff] %v3974_v10  ;;  %v3318_v4 = vadd.f32 %v3317_v62, %v2343_v54  ;;  %v3978_v37 = vadd.f32 %v3977_v27, %v2284_v59  ;;  %v3319_v13 = vpop.f32.mrb[85].mxu1  ;;  %v3979_v22 = vpop.f32.mrb[195].mxu0  ;;  %v2291_v10 = vmul.f32 %v7034_v28, %v7470_v34  ;;  %v2292_v59 = vmul.f32 %v7039_v39, %v7470_v34 }
 0x3ae   : > { %4651 = vst [vmem:[%s6935_s24 + $0x728] sm:$0xff] %v3976_v1  ;;  %v3320_v31 = vadd.f32 %v3319_v13, %v2344_v12  ;;  %v3980_v52 = vadd.f32 %v3979_v22, %v2285_v56  ;;  %v3321_v35 = vpop.f32.mrb[86].mxu1  ;;  %v7638_v1 = vpop.permute.xlu1 %1920  ;;  %v9023_v22 = vld [vmem:[#allocation33_spill] sm:$0xff]  ;;  %v2357_v13 = vmul.f32 %v6910_v44, %v7628_v49  ;;  %v2358_v56 = vmul.f32 %v6915_v26, %v7628_v49 }
 0x3af   : > { %4716 = vst [vmem:[%s6935_s24 + $0x930] sm:$0xff] %v3318_v4  ;;  %4657 = vst [vmem:[%s6935_s24 + $0x758] sm:$0xff] %v3978_v37  ;;  %v3322_v47 = vadd.f32 %v3321_v35, %v2350_v21  ;;  %v3323_v55 = vpop.f32.mrb[87].mxu1  ;;  %v2298_v35 = vmul.f32 %v7034_v28, %v7480_v33  ;;  %v9024_v37 = vld [vmem:[#allocation36_spill] sm:$0xff]  ;;  %v2299_v21 = vmul.f32 %v7039_v39, %v7480_v33  ;;  %v7658_v34 = vpop.permute.xlu0 %1925 }
 0x3b0   : > { %4717 = vst [vmem:[%s6935_s24 + $0x938] sm:$0xff] %v3320_v31  ;;  %4658 = vst [vmem:[%s6935_s24 + $0x760] sm:$0xff] %v3980_v52  ;;  %v3324_v54 = vadd.f32 %v3323_v55, %v2351_v17  ;;  %v2364_v17 = vmul.f32 %v6910_v44, %v7638_v1 }
 0x3b1   : > { %9022 = vst [vmem:[#allocation84_spill] sm:$0xff] %v7638_v1  ;;  %4723 = vst [vmem:[%s6935_s24 + $0x968] sm:$0xff] %v3322_v47  ;;  %3619 = vmatmul.mubr.bf16.gmra.mrb[192].mxu1 %v9023_v22  ;;  %v2365_v47 = vmul.f32 %v6915_v26, %v7638_v1 }
 0x3b2   : > { %4724 = vst [vmem:[%s6935_s24 + $0x970] sm:$0xff] %v3324_v54  ;;  %3628 = vmatprep.mubr.bf16.mxu1 %v9024_v37  ;;  %v3983_v12 = vpop.f32.mrb[196].mxu0  ;;  %9025 = vst [vmem:[#allocation85_spill] sm:$0xff] %v7658_v34 }
 0x3b3   : > { %v3984_v62 = vadd.f32 %v3983_v12, %v2291_v10  ;;  %v3985_v27 = vpop.f32.mrb[197].mxu0 }
 0x3b4   : > { %v3986_v4 = vadd.f32 %v3985_v27, %v2292_v59  ;;  %v3327_v31 = vpop.f32.mrb[88].mxu1  ;;  %v3987_v52 = vpop.f32.mrb[198].mxu0 }
 0x3b5   : > { %4664 = vst [vmem:[%s6935_s24 + $0x790] sm:$0xff] %v3984_v62  ;;  %v3328_v55 = vadd.f32 %v3327_v31, %v2357_v13  ;;  %v3988_v54 = vadd.f32 %v3987_v52, %v2298_v35  ;;  %v3329_v37 = vpop.f32.mrb[89].mxu1  ;;  %v3989_v22 = vpop.f32.mrb[199].mxu0  ;;  %v2305_v62 = vmul.f32 %v7034_v28, %v7501_v48  ;;  %v2306_v35 = vmul.f32 %v7039_v39, %v7501_v48 }
 0x3b6   : > { %4665 = vst [vmem:[%s6935_s24 + $0x798] sm:$0xff] %v3986_v4  ;;  %v3330_v10 = vadd.f32 %v3329_v37, %v2358_v56  ;;  %v3990_v12 = vadd.f32 %v3989_v22, %v2299_v21  ;;  %v3331_v33 = vpop.f32.mrb[90].mxu1  ;;  %v7668_v4 = vpop.permute.xlu1 %1930  ;;  %v9027_v22 = vld [vmem:[#allocation35_spill] sm:$0xff]  ;;  %v2371_v37 = vmul.f32 %v6910_v44, %v7658_v34  ;;  %v9028_v56 = vld [vmem:[#allocation38_spill] sm:$0xff]  ;;  %v2313_v31 = vmul.f32 %v7039_v39, %v7511_v24 }
 0x3b7   : > { %4730 = vst [vmem:[%s6935_s24 + $0x9a0] sm:$0xff] %v3328_v55  ;;  %4671 = vst [vmem:[%s6935_s24 + $0x7c8] sm:$0xff] %v3988_v54  ;;  %v3332_v59 = vadd.f32 %v3331_v33, %v2364_v17  ;;  %v3333_v27 = vpop.f32.mrb[91].mxu1  ;;  %v2312_v33 = vmul.f32 %v7034_v28, %v7511_v24  ;;  %v2372_v17 = vmul.f32 %v6915_v26, %v7658_v34  ;;  %v7688_v48 = vpop.permute.xlu0 %1935 }
 0x3b8   : > { %4731 = vst [vmem:[%s6935_s24 + $0x9a8] sm:$0xff] %v3330_v10  ;;  %4672 = vst [vmem:[%s6935_s24 + $0x7d0] sm:$0xff] %v3990_v12  ;;  %v3334_v13 = vadd.f32 %v3333_v27, %v2365_v47  ;;  %v2378_v55 = vmul.f32 %v6910_v44, %v7668_v4 }
 0x3b9   : > { %9026 = vst [vmem:[#allocation86_spill] sm:$0xff] %v7668_v4  ;;  %4737 = vst [vmem:[%s6935_s24 + $0x9d8] sm:$0xff] %v3332_v59  ;;  %3629 = vmatmul.mubr.bf16.gmra.mrb[196].mxu1 %v9027_v22  ;;  %v2379_v59 = vmul.f32 %v6915_v26, %v7668_v4 }
 0x3ba   : > { %4738 = vst [vmem:[%s6935_s24 + $0x9e0] sm:$0xff] %v3334_v13  ;;  %3638 = vmatprep.mubr.bf16.mxu1 %v9028_v56  ;;  %v3993_v21 = vpop.f32.mrb[200].mxu0  ;;  %9029 = vst [vmem:[#allocation87_spill] sm:$0xff] %v7688_v48 }
 0x3bb   : > { %v3994_v52 = vadd.f32 %v3993_v21, %v2305_v62  ;;  %v3995_v47 = vpop.f32.mrb[201].mxu0 }
 0x3bc   : > { %v3996_v54 = vadd.f32 %v3995_v47, %v2306_v35  ;;  %v3337_v10 = vpop.f32.mrb[92].mxu1  ;;  %v3997_v12 = vpop.f32.mrb[202].mxu0 }
 0x3bd   : > { %4678 = vst [vmem:[%s6935_s24 + $0x800] sm:$0xff] %v3994_v52  ;;  %v3338_v27 = vadd.f32 %v3337_v10, %v2371_v37  ;;  %v3998_v13 = vadd.f32 %v3997_v12, %v2312_v33  ;;  %v3339_v56 = vpop.f32.mrb[93].mxu1  ;;  %v3999_v22 = vpop.f32.mrb[203].mxu0  ;;  %v2319_v52 = vmul.f32 %v7034_v28, %v7534_v25  ;;  %v2320_v33 = vmul.f32 %v7039_v39, %v7534_v25 }
 0x3be   : > { %4679 = vst [vmem:[%s6935_s24 + $0x808] sm:$0xff] %v3996_v54  ;;  %v3340_v62 = vadd.f32 %v3339_v56, %v2372_v17  ;;  %v4000_v21 = vadd.f32 %v3999_v22, %v2313_v31  ;;  %v3341_v24 = vpop.f32.mrb[94].mxu1  ;;  %v7698_v54 = vpop.permute.xlu1 %1940  ;;  %v9031_v22 = vld [vmem:[#allocation37_spill] sm:$0xff]  ;;  %v2385_v56 = vmul.f32 %v6910_v44, %v7688_v48  ;;  %v9032_v17 = vld [vmem:[#allocation40_spill] sm:$0xff]  ;;  %v2327_v10 = vmul.f32 %v7039_v39, %v7544_v40 }
 0x3bf   : > { %4744 = vst [vmem:[%s6935_s24 + $0xa10] sm:$0xff] %v3338_v27  ;;  %4685 = vst [vmem:[%s6935_s24 + $0x838] sm:$0xff] %v3998_v13  ;;  %v3342_v35 = vadd.f32 %v3341_v24, %v2378_v55  ;;  %v3343_v47 = vpop.f32.mrb[95].mxu1  ;;  %v2326_v24 = vmul.f32 %v7034_v28, %v7544_v40  ;;  %v2386_v55 = vmul.f32 %v6915_v26, %v7688_v48  ;;  %v7718_v25 = vpop.permute.xlu0 %1945 }
 0x3c0   : > { %4745 = vst [vmem:[%s6935_s24 + $0xa18] sm:$0xff] %v3340_v62  ;;  %4686 = vst [vmem:[%s6935_s24 + $0x840] sm:$0xff] %v4000_v21  ;;  %v3344_v37 = vadd.f32 %v3343_v47, %v2379_v59  ;;  %v2392_v27 = vmul.f32 %v6910_v44, %v7698_v54 }
 0x3c1   : > { %9030 = vst [vmem:[#allocation88_spill] sm:$0xff] %v7698_v54  ;;  %4751 = vst [vmem:[%s6935_s24 + $0xa48] sm:$0xff] %v3342_v35  ;;  %3639 = vmatmul.mubr.bf16.gmra.mrb[200].mxu1 %v9031_v22  ;;  %v2393_v35 = vmul.f32 %v6915_v26, %v7698_v54 }
 0x3c2   : > { %4752 = vst [vmem:[%s6935_s24 + $0xa50] sm:$0xff] %v3344_v37  ;;  %3648 = vmatprep.mubr.bf16.mxu1 %v9032_v17  ;;  %v4003_v31 = vpop.f32.mrb[204].mxu0  ;;  %9033 = vst [vmem:[#allocation89_spill] sm:$0xff] %v7718_v25 }
 0x3c3   : > { %v4004_v12 = vadd.f32 %v4003_v31, %v2319_v52  ;;  %v4005_v59 = vpop.f32.mrb[205].mxu0 }
 0x3c4   : > { %v4006_v13 = vadd.f32 %v4005_v59, %v2320_v33  ;;  %v3347_v62 = vpop.f32.mrb[96].mxu1  ;;  %v4007_v21 = vpop.f32.mrb[206].mxu0 }
 0x3c5   : > { %4692 = vst [vmem:[%s6935_s24 + $0x870] sm:$0xff] %v4004_v12  ;;  %v3348_v47 = vadd.f32 %v3347_v62, %v2385_v56  ;;  %v4008_v37 = vadd.f32 %v4007_v21, %v2326_v24  ;;  %v3349_v17 = vpop.f32.mrb[97].mxu1  ;;  %v4009_v22 = vpop.f32.mrb[207].mxu0  ;;  %v2333_v12 = vmul.f32 %v7034_v28, %v7565_v15  ;;  %v2334_v24 = vmul.f32 %v7039_v39, %v7565_v15 }
 0x3c6   : > { %4693 = vst [vmem:[%s6935_s24 + $0x878] sm:$0xff] %v4006_v13  ;;  %v3350_v52 = vadd.f32 %v3349_v17, %v2386_v55  ;;  %v4010_v31 = vadd.f32 %v4009_v22, %v2327_v10  ;;  %v3351_v40 = vpop.f32.mrb[98].mxu1  ;;  %v7728_v13 = vpop.permute.xlu1 %1950  ;;  %v9035_v22 = vld [vmem:[#allocation39_spill] sm:$0xff]  ;;  %v2399_v17 = vmul.f32 %v6910_v44, %v7718_v25  ;;  %v9036_v55 = vld [vmem:[#allocation42_spill] sm:$0xff]  ;;  %v2341_v62 = vmul.f32 %v7039_v39, %v7575_v6 }
 0x3c7   : > { %4758 = vst [vmem:[%s6935_s24 + $0xa80] sm:$0xff] %v3348_v47  ;;  %4699 = vst [vmem:[%s6935_s24 + $0x8a8] sm:$0xff] %v4008_v37  ;;  %v3352_v33 = vadd.f32 %v3351_v40, %v2392_v27  ;;  %v3353_v59 = vpop.f32.mrb[99].mxu1  ;;  %v2340_v40 = vmul.f32 %v7034_v28, %v7575_v6  ;;  %v2400_v27 = vmul.f32 %v6915_v26, %v7718_v25  ;;  %v7748_v15 = vpop.permute.xlu0 %1955 }
 0x3c8   : > { %4759 = vst [vmem:[%s6935_s24 + $0xa88] sm:$0xff] %v3350_v52  ;;  %4700 = vst [vmem:[%s6935_s24 + $0x8b0] sm:$0xff] %v4010_v31  ;;  %v3354_v56 = vadd.f32 %v3353_v59, %v2393_v35  ;;  %v2406_v47 = vmul.f32 %v6910_v44, %v7728_v13 }
 0x3c9   : > { %9034 = vst [vmem:[#allocation90_spill] sm:$0xff] %v7728_v13  ;;  %4765 = vst [vmem:[%s6935_s24 + $0xab8] sm:$0xff] %v3352_v33  ;;  %3649 = vmatmul.mubr.bf16.gmra.mrb[204].mxu1 %v9035_v22  ;;  %v2407_v33 = vmul.f32 %v6915_v26, %v7728_v13 }
 0x3ca   : > { %4766 = vst [vmem:[%s6935_s24 + $0xac0] sm:$0xff] %v3354_v56  ;;  %3658 = vmatprep.mubr.bf16.mxu1 %v9036_v55  ;;  %v4013_v10 = vpop.f32.mrb[208].mxu0  ;;  %9037 = vst [vmem:[#allocation91_spill] sm:$0xff] %v7748_v15 }
 0x3cb   : > { %v4014_v21 = vadd.f32 %v4013_v10, %v2333_v12  ;;  %v4015_v35 = vpop.f32.mrb[209].mxu0 }
 0x3cc   : > { %v4016_v37 = vadd.f32 %v4015_v35, %v2334_v24  ;;  %v3357_v52 = vpop.f32.mrb[100].mxu1  ;;  %v4017_v31 = vpop.f32.mrb[210].mxu0 }
 0x3cd   : > { %4706 = vst [vmem:[%s6935_s24 + $0x8e0] sm:$0xff] %v4014_v21  ;;  %v3358_v59 = vadd.f32 %v3357_v52, %v2399_v17  ;;  %v4018_v56 = vadd.f32 %v4017_v31, %v2340_v40  ;;  %v3359_v55 = vpop.f32.mrb[101].mxu1  ;;  %v4019_v22 = vpop.f32.mrb[211].mxu0  ;;  %v2347_v21 = vmul.f32 %v7034_v28, %v7598_v20  ;;  %v2348_v40 = vmul.f32 %v7039_v39, %v7598_v20 }
 0x3ce   : > { %4707 = vst [vmem:[%s6935_s24 + $0x8e8] sm:$0xff] %v4016_v37  ;;  %v3360_v12 = vadd.f32 %v3359_v55, %v2400_v27  ;;  %v4020_v10 = vadd.f32 %v4019_v22, %v2341_v62  ;;  %v3361_v6 = vpop.f32.mrb[102].mxu1  ;;  %v7758_v37 = vpop.permute.xlu1 %1960  ;;  %v9039_v22 = vld [vmem:[#allocation41_spill] sm:$0xff]  ;;  %v2413_v55 = vmul.f32 %v6910_v44, %v7748_v15  ;;  %v9040_v27 = vld [vmem:[#allocation44_spill] sm:$0xff]  ;;  %v2355_v52 = vmul.f32 %v7039_v39, %v7608_v2 }
 0x3cf   : > { %4772 = vst [vmem:[%s6935_s24 + $0xaf0] sm:$0xff] %v3358_v59  ;;  %4713 = vst [vmem:[%s6935_s24 + $0x918] sm:$0xff] %v4018_v56  ;;  %v3362_v24 = vadd.f32 %v3361_v6, %v2406_v47  ;;  %v3363_v35 = vpop.f32.mrb[103].mxu1  ;;  %v2354_v6 = vmul.f32 %v7034_v28, %v7608_v2  ;;  %v2414_v47 = vmul.f32 %v6915_v26, %v7748_v15  ;;  %v7778_v20 = vpop.permute.xlu0 %1965 }
 0x3d0   : > { %4773 = vst [vmem:[%s6935_s24 + $0xaf8] sm:$0xff] %v3360_v12  ;;  %4714 = vst [vmem:[%s6935_s24 + $0x920] sm:$0xff] %v4020_v10  ;;  %v3364_v17 = vadd.f32 %v3363_v35, %v2407_v33  ;;  %v2420_v59 = vmul.f32 %v6910_v44, %v7758_v37 }
 0x3d1   : > { %9038 = vst [vmem:[#allocation92_spill] sm:$0xff] %v7758_v37  ;;  %4779 = vst [vmem:[%s6935_s24 + $0xb28] sm:$0xff] %v3362_v24  ;;  %3659 = vmatmul.mubr.bf16.gmra.mrb[208].mxu1 %v9039_v22  ;;  %v2421_v24 = vmul.f32 %v6915_v26, %v7758_v37 }
 0x3d2   : > { %4780 = vst [vmem:[%s6935_s24 + $0xb30] sm:$0xff] %v3364_v17  ;;  %3668 = vmatprep.mubr.bf16.mxu1 %v9040_v27  ;;  %v4023_v62 = vpop.f32.mrb[212].mxu0 }
 0x3d3   : > { %v4024_v31 = vadd.f32 %v4023_v62, %v2347_v21  ;;  %v4025_v33 = vpop.f32.mrb[213].mxu0 }
 0x3d4   : > { %v4026_v56 = vadd.f32 %v4025_v33, %v2348_v40  ;;  %v3367_v12 = vpop.f32.mrb[104].mxu1  ;;  %v4027_v10 = vpop.f32.mrb[214].mxu0 }
 0x3d5   : > { %4720 = vst [vmem:[%s6935_s24 + $0x950] sm:$0xff] %v4024_v31  ;;  %v3368_v35 = vadd.f32 %v3367_v12, %v2413_v55  ;;  %v4028_v17 = vadd.f32 %v4027_v10, %v2354_v6  ;;  %v3369_v27 = vpop.f32.mrb[105].mxu1  ;;  %v4029_v22 = vpop.f32.mrb[215].mxu0  ;;  %v2361_v31 = vmul.f32 %v7034_v28, %v7628_v49  ;;  %v2362_v6 = vmul.f32 %v7039_v39, %v7628_v49 }
 0x3d6   : > { %4721 = vst [vmem:[%s6935_s24 + $0x958] sm:$0xff] %v4026_v56  ;;  %v3370_v21 = vadd.f32 %v3369_v27, %v2414_v47  ;;  %v4030_v62 = vadd.f32 %v4029_v22, %v2355_v52  ;;  %v3371_v2 = vpop.f32.mrb[106].mxu1  ;;  %v7788_v56 = vpop.permute.xlu1 %1970  ;;  %v9041_v22 = vld [vmem:[#allocation43_spill] sm:$0xff]  ;;  %v2427_v27 = vmul.f32 %v6910_v44, %v7778_v20  ;;  %v9042_v47 = vld [vmem:[#allocation46_spill] sm:$0xff]  ;;  %v2369_v12 = vmul.f32 %v7039_v39, %v7638_v1 }
 0x3d7   : > { %4786 = vst [vmem:[%s6935_s24 + $0xb60] sm:$0xff] %v3368_v35  ;;  %4727 = vst [vmem:[%s6935_s24 + $0x988] sm:$0xff] %v4028_v17  ;;  %v3372_v40 = vadd.f32 %v3371_v2, %v2420_v59  ;;  %v3373_v33 = vpop.f32.mrb[107].mxu1  ;;  %v2368_v2 = vmul.f32 %v7034_v28, %v7638_v1  ;;  %v2428_v59 = vmul.f32 %v6915_v26, %v7778_v20  ;;  %v7808_v49 = vpop.permute.xlu0 %1975 }
 0x3d8   : > { %4787 = vst [vmem:[%s6935_s24 + $0xb68] sm:$0xff] %v3370_v21  ;;  %4728 = vst [vmem:[%s6935_s24 + $0x990] sm:$0xff] %v4030_v62  ;;  %v3374_v55 = vadd.f32 %v3373_v33, %v2421_v24  ;;  %v2434_v35 = vmul.f32 %v6910_v44, %v7788_v56 }
 0x3d9   : > { %4793 = vst [vmem:[%s6935_s24 + $0xb98] sm:$0xff] %v3372_v40  ;;  %3669 = vmatmul.mubr.bf16.gmra.mrb[212].mxu1 %v9041_v22  ;;  %v2435_v40 = vmul.f32 %v6915_v26, %v7788_v56 }
 0x3da   : > { %4794 = vst [vmem:[%s6935_s24 + $0xba0] sm:$0xff] %v3374_v55  ;;  %3678 = vmatprep.mubr.bf16.mxu1 %v9042_v47  ;;  %v4033_v52 = vpop.f32.mrb[216].mxu0 }
 0x3db   : > { %v4034_v10 = vadd.f32 %v4033_v52, %v2361_v31  ;;  %v4035_v24 = vpop.f32.mrb[217].mxu0 }
 0x3dc   : > { %v4036_v17 = vadd.f32 %v4035_v24, %v2362_v6  ;;  %v3377_v21 = vpop.f32.mrb[108].mxu1  ;;  %v4037_v62 = vpop.f32.mrb[218].mxu0 }
 0x3dd   : > { %4734 = vst [vmem:[%s6935_s24 + $0x9c0] sm:$0xff] %v4034_v10  ;;  %v3378_v33 = vadd.f32 %v3377_v21, %v2427_v27  ;;  %v4038_v55 = vadd.f32 %v4037_v62, %v2368_v2  ;;  %v3379_v47 = vpop.f32.mrb[109].mxu1  ;;  %v4039_v22 = vpop.f32.mrb[219].mxu0  ;;  %v2375_v10 = vmul.f32 %v7034_v28, %v7658_v34  ;;  %v2376_v2 = vmul.f32 %v7039_v39, %v7658_v34 }
 0x3de   : > { %4735 = vst [vmem:[%s6935_s24 + $0x9c8] sm:$0xff] %v4036_v17  ;;  %v3380_v31 = vadd.f32 %v3379_v47, %v2428_v59  ;;  %v4040_v52 = vadd.f32 %v4039_v22, %v2369_v12  ;;  %v3381_v1 = vpop.f32.mrb[110].mxu1  ;;  %v7818_v17 = vpop.permute.xlu1 %1980  ;;  %v9043_v22 = vld [vmem:[#allocation45_spill] sm:$0xff]  ;;  %v2441_v47 = vmul.f32 %v6910_v44, %v7808_v49  ;;  %v9044_v59 = vld [vmem:[#allocation48_spill] sm:$0xff]  ;;  %v2383_v21 = vmul.f32 %v7039_v39, %v7668_v4 }
 0x3df   : > { %4800 = vst [vmem:[%s6935_s24 + $0xbd0] sm:$0xff] %v3378_v33  ;;  %4741 = vst [vmem:[%s6935_s24 + $0x9f8] sm:$0xff] %v4038_v55  ;;  %v3382_v6 = vadd.f32 %v3381_v1, %v2434_v35  ;;  %v3383_v24 = vpop.f32.mrb[111].mxu1  ;;  %v2382_v1 = vmul.f32 %v7034_v28, %v7668_v4  ;;  %v2442_v35 = vmul.f32 %v6915_v26, %v7808_v49  ;;  %v7838_v34 = vpop.permute.xlu0 %1985 }
 0x3e0   : > { %4801 = vst [vmem:[%s6935_s24 + $0xbd8] sm:$0xff] %v3380_v31  ;;  %4742 = vst [vmem:[%s6935_s24 + $0xa00] sm:$0xff] %v4040_v52  ;;  %v3384_v27 = vadd.f32 %v3383_v24, %v2435_v40  ;;  %v2448_v33 = vmul.f32 %v6910_v44, %v7818_v17 }
 0x3e1   : > { %4807 = vst [vmem:[%s6935_s24 + $0xc08] sm:$0xff] %v3382_v6  ;;  %3679 = vmatmul.mubr.bf16.gmra.mrb[216].mxu1 %v9043_v22  ;;  %v2449_v6 = vmul.f32 %v6915_v26, %v7818_v17 }
 0x3e2   : > { %4808 = vst [vmem:[%s6935_s24 + $0xc10] sm:$0xff] %v3384_v27  ;;  %3688 = vmatprep.mubr.bf16.mxu1 %v9044_v59  ;;  %v4043_v12 = vpop.f32.mrb[220].mxu0 }
 0x3e3   : > { %v4044_v62 = vadd.f32 %v4043_v12, %v2375_v10  ;;  %v4045_v40 = vpop.f32.mrb[221].mxu0 }
 0x3e4   : > { %v4046_v55 = vadd.f32 %v4045_v40, %v2376_v2  ;;  %v3387_v31 = vpop.f32.mrb[112].mxu1  ;;  %v4047_v52 = vpop.f32.mrb[222].mxu0 }
 0x3e5   : > { %4748 = vst [vmem:[%s6935_s24 + $0xa30] sm:$0xff] %v4044_v62  ;;  %v3388_v24 = vadd.f32 %v3387_v31, %v2441_v47  ;;  %v4048_v27 = vadd.f32 %v4047_v52, %v2382_v1  ;;  %v3389_v59 = vpop.f32.mrb[113].mxu1  ;;  %v4049_v22 = vpop.f32.mrb[223].mxu0  ;;  %v2389_v62 = vmul.f32 %v7034_v28, %v7688_v48  ;;  %v2390_v1 = vmul.f32 %v7039_v39, %v7688_v48 }
 0x3e6   : > { %4749 = vst [vmem:[%s6935_s24 + $0xa38] sm:$0xff] %v4046_v55  ;;  %v3390_v10 = vadd.f32 %v3389_v59, %v2442_v35  ;;  %v4050_v12 = vadd.f32 %v4049_v22, %v2383_v21  ;;  %v3391_v4 = vpop.f32.mrb[114].mxu1  ;;  %v7848_v55 = vpop.permute.xlu1 %1990  ;;  %v9045_v22 = vld [vmem:[#allocation47_spill] sm:$0xff]  ;;  %v2455_v59 = vmul.f32 %v6910_v44, %v7838_v34  ;;  %v9046_v35 = vld [vmem:[#allocation50_spill] sm:$0xff]  ;;  %v2397_v31 = vmul.f32 %v7039_v39, %v7698_v54 }
 0x3e7   : > { %4814 = vst [vmem:[%s6935_s24 + $0xc40] sm:$0xff] %v3388_v24  ;;  %4755 = vst [vmem:[%s6935_s24 + $0xa68] sm:$0xff] %v4048_v27  ;;  %v3392_v2 = vadd.f32 %v3391_v4, %v2448_v33  ;;  %v3393_v40 = vpop.f32.mrb[115].mxu1  ;;  %v2396_v4 = vmul.f32 %v7034_v28, %v7698_v54  ;;  %v2456_v33 = vmul.f32 %v6915_v26, %v7838_v34  ;;  %v7868_v48 = vpop.permute.xlu0 %1995 }
 0x3e8   : > { %4815 = vst [vmem:[%s6935_s24 + $0xc48] sm:$0xff] %v3390_v10  ;;  %4756 = vst [vmem:[%s6935_s24 + $0xa70] sm:$0xff] %v4050_v12  ;;  %v3394_v47 = vadd.f32 %v3393_v40, %v2449_v6  ;;  %v2462_v24 = vmul.f32 %v6910_v44, %v7848_v55 }
 0x3e9   : > { %4821 = vst [vmem:[%s6935_s24 + $0xc78] sm:$0xff] %v3392_v2  ;;  %3689 = vmatmul.mubr.bf16.gmra.mrb[220].mxu1 %v9045_v22  ;;  %v2463_v2 = vmul.f32 %v6915_v26, %v7848_v55  ;;  %9047 = vst [vmem:[#allocation93_spill] sm:$0xff] %v7868_v48 }
 0x3ea   : > { %4822 = vst [vmem:[%s6935_s24 + $0xc80] sm:$0xff] %v3394_v47  ;;  %3698 = vmatprep.mubr.bf16.mxu1 %v9046_v35  ;;  %v4053_v21 = vpop.f32.mrb[224].mxu0 }
 0x3eb   : > { %v4054_v52 = vadd.f32 %v4053_v21, %v2389_v62  ;;  %v4055_v6 = vpop.f32.mrb[225].mxu0 }
 0x3ec   : > { %v4056_v27 = vadd.f32 %v4055_v6, %v2390_v1  ;;  %v3397_v10 = vpop.f32.mrb[116].mxu1  ;;  %v4057_v12 = vpop.f32.mrb[226].mxu0 }
 0x3ed   : > { %4762 = vst [vmem:[%s6935_s24 + $0xaa0] sm:$0xff] %v4054_v52  ;;  %v3398_v40 = vadd.f32 %v3397_v10, %v2455_v59  ;;  %v4058_v47 = vadd.f32 %v4057_v12, %v2396_v4  ;;  %v3399_v35 = vpop.f32.mrb[117].mxu1  ;;  %v4059_v22 = vpop.f32.mrb[227].mxu0  ;;  %v2403_v52 = vmul.f32 %v7034_v28, %v7718_v25  ;;  %v2404_v4 = vmul.f32 %v7039_v39, %v7718_v25 }
 0x3ee   : > { %4763 = vst [vmem:[%s6935_s24 + $0xaa8] sm:$0xff] %v4056_v27  ;;  %v3400_v62 = vadd.f32 %v3399_v35, %v2456_v33  ;;  %v4060_v21 = vadd.f32 %v4059_v22, %v2397_v31  ;;  %v3401_v54 = vpop.f32.mrb[118].mxu1  ;;  %v7878_v27 = vpop.permute.xlu1 %2000  ;;  %v9048_v22 = vld [vmem:[#allocation49_spill] sm:$0xff]  ;;  %v2469_v35 = vmul.f32 %v6910_v44, %v7868_v48  ;;  %v2411_v10 = vmul.f32 %v7039_v39, %v7728_v13 }
 0x3ef   : > { %4828 = vst [vmem:[%s6935_s24 + $0xcb0] sm:$0xff] %v3398_v40  ;;  %4769 = vst [vmem:[%s6935_s24 + $0xad8] sm:$0xff] %v4058_v47  ;;  %v3402_v1 = vadd.f32 %v3401_v54, %v2462_v24  ;;  %v3403_v6 = vpop.f32.mrb[119].mxu1  ;;  %v2410_v54 = vmul.f32 %v7034_v28, %v7728_v13  ;;  %v9049_v33 = vld [vmem:[#allocation53_spill] sm:$0xff]  ;;  %v2470_v24 = vmul.f32 %v6915_v26, %v7868_v48  ;;  %v7898_v25 = vpop.permute.xlu0 %2005 }
 0x3f0   : > { %4829 = vst [vmem:[%s6935_s24 + $0xcb8] sm:$0xff] %v3400_v62  ;;  %4770 = vst [vmem:[%s6935_s24 + $0xae0] sm:$0xff] %v4060_v21  ;;  %v3404_v59 = vadd.f32 %v3403_v6, %v2463_v2  ;;  %v2476_v40 = vmul.f32 %v6910_v44, %v7878_v27 }
 0x3f1   : > { %4835 = vst [vmem:[%s6935_s24 + $0xce8] sm:$0xff] %v3402_v1  ;;  %3699 = vmatmul.mubr.bf16.gmra.mrb[224].mxu1 %v9048_v22  ;;  %v2477_v1 = vmul.f32 %v6915_v26, %v7878_v27 }
 0x3f2   : > { %4836 = vst [vmem:[%s6935_s24 + $0xcf0] sm:$0xff] %v3404_v59  ;;  %3708 = vmatprep.mubr.bf16.mxu1 %v9049_v33  ;;  %v4063_v31 = vpop.f32.mrb[228].mxu0 }
 0x3f3   : > { %v4064_v12 = vadd.f32 %v4063_v31, %v2403_v52  ;;  %v4065_v2 = vpop.f32.mrb[229].mxu0 }
 0x3f4   : > { %v4066_v47 = vadd.f32 %v4065_v2, %v2404_v4  ;;  %v3407_v62 = vpop.f32.mrb[120].mxu1  ;;  %v4067_v21 = vpop.f32.mrb[230].mxu0 }
 0x3f5   : > { %4776 = vst [vmem:[%s6935_s24 + $0xb10] sm:$0xff] %v4064_v12  ;;  %v3408_v6 = vadd.f32 %v3407_v62, %v2469_v35  ;;  %v4068_v59 = vadd.f32 %v4067_v21, %v2410_v54  ;;  %v3409_v33 = vpop.f32.mrb[121].mxu1  ;;  %v4069_v22 = vpop.f32.mrb[231].mxu0  ;;  %v2417_v12 = vmul.f32 %v7034_v28, %v7748_v15  ;;  %v2418_v54 = vmul.f32 %v7039_v39, %v7748_v15 }
 0x3f6   : > { %4777 = vst [vmem:[%s6935_s24 + $0xb18] sm:$0xff] %v4066_v47  ;;  %v3410_v52 = vadd.f32 %v3409_v33, %v2470_v24  ;;  %v4070_v31 = vadd.f32 %v4069_v22, %v2411_v10  ;;  %v3411_v13 = vpop.f32.mrb[122].mxu1  ;;  %v7908_v47 = vpop.permute.xlu1 %2010  ;;  %v9050_v22 = vld [vmem:[#allocation51_spill] sm:$0xff]  ;;  %v2483_v33 = vmul.f32 %v6910_v44, %v7898_v25  ;;  %v9051_v24 = vld [vmem:[#allocation52_spill] sm:$0xff]  ;;  %v2484_v21 = vmul.f32 %v6915_v26, %v7898_v25 }
 0x3f7   : > { %4842 = vst [vmem:[%s6935_s24 + $0xd20] sm:$0xff] %v3408_v6  ;;  %4783 = vst [vmem:[%s6935_s24 + $0xb48] sm:$0xff] %v4068_v59  ;;  %v3412_v4 = vadd.f32 %v3411_v13, %v2476_v40  ;;  %v3413_v2 = vpop.f32.mrb[123].mxu1  ;;  %v2424_v13 = vmul.f32 %v7034_v28, %v7758_v37  ;;  %v2024_v10 = vsub.s32 2, %v9051_v24  ;;  %v9052_v40 = vld [vmem:[#allocation56_spill] sm:$0xff]  ;;  %v2028_v6 = vsub.s32 3, %v9051_v24 }
 0x3f8   : > { %4843 = vst [vmem:[%s6935_s24 + $0xd28] sm:$0xff] %v3410_v52  ;;  %4784 = vst [vmem:[%s6935_s24 + $0xb50] sm:$0xff] %v4070_v31  ;;  %v3414_v35 = vadd.f32 %v3413_v2, %v2477_v1  ;;  %v2425_v1 = vmul.f32 %v7039_v39, %v7758_v37  ;;  %v2490_v31 = vmul.f32 %v6910_v44, %v7908_v47 }
 0x3f9   : > { %4849 = vst [vmem:[%s6935_s24 + $0xd58] sm:$0xff] %v3412_v4  ;;  %3709 = vmatmul.mubr.bf16.gmra.mrb[228].mxu1 %v9050_v22 }
 0x3fa   : > { %4850 = vst [vmem:[%s6935_s24 + $0xd60] sm:$0xff] %v3414_v35  ;;  %3718 = vmatprep.mubr.bf16.mxu1 %v9052_v40  ;;  %v4073_v62 = vpop.f32.mrb[232].mxu0  ;;  %v2491_v40 = vmul.f32 %v6915_v26, %v7908_v47 }
 0x3fb   : > { %v4074_v59 = vadd.f32 %v4073_v62, %v2417_v12  ;;  %v4075_v52 = vpop.f32.mrb[233].mxu0  ;;  %v5427_v12 = vld [vmem:[%s8737_s4] sm:$0x7f] }
 0x3fc   : > { %v4076_v4 = vadd.f32 %v4075_v52, %v2418_v54  ;;  %v3417_v2 = vpop.f32.mrb[124].mxu1  ;;  %v4077_v35 = vpop.f32.mrb[234].mxu0  ;;  %v7932_v44 = vrot.slane %v5427_v12, %v2024_v10  ;;  %v7935_v26 = vrot.slane %v5427_v12, %v2028_v6  ;;  %v2432_v10 = vmul.f32 %v7039_v39, %v7778_v20 }
 0x3fd   : > { %4790 = vst [vmem:[%s6935_s24 + $0xb80] sm:$0xff] %v4074_v59  ;;  %v3418_v22 = vadd.f32 %v3417_v2, %v2483_v33  ;;  %v4078_v37 = vadd.f32 %v4077_v35, %v2424_v13  ;;  %v3419_v15 = vpop.f32.mrb[125].mxu1  ;;  %v4079_v24 = vpop.f32.mrb[235].mxu0  ;;  %v2431_v59 = vmul.f32 %v7034_v28, %v7778_v20 }
 0x3fe   : > { %4791 = vst [vmem:[%s6935_s24 + $0xb88] sm:$0xff] %v4076_v4  ;;  %v3420_v54 = vadd.f32 %v3419_v15, %v2484_v21  ;;  %v4080_v62 = vadd.f32 %v4079_v24, %v2425_v1  ;;  %v3421_v52 = vpop.f32.mrb[126].mxu1  ;;  %v9053_v15 = vld [vmem:[#allocation54_spill] sm:$0xff]  ;;  %v2439_v1 = vmul.f32 %v7039_v39, %v7788_v56  ;;  %v9055_v4 = vld [vmem:[#allocation57_spill] sm:$0xff] }
 0x3ff   : > { %4856 = vst [vmem:[%s6935_s24 + $0xd90] sm:$0xff] %v3418_v22  ;;  %4797 = vst [vmem:[%s6935_s24 + $0xbb8] sm:$0xff] %v4078_v37  ;;  %v3422_v33 = vadd.f32 %v3421_v52, %v2490_v31  ;;  %v3423_v13 = vpop.f32.mrb[127].mxu1  ;;  %v2051_v24 = vmul.f32 %v7932_v44, %v9053_v15  ;;  %v2438_v37 = vmul.f32 %v7034_v28, %v7788_v56  ;;  %v9054_v22 = vld [vmem:[#allocation59_spill] sm:$0xff] }
 0x400   : > { %4857 = vst [vmem:[%s6935_s24 + $0xd98] sm:$0xff] %v3420_v54  ;;  %4798 = vst [vmem:[%s6935_s24 + $0xbc0] sm:$0xff] %v4080_v62  ;;  %v3424_v2 = vadd.f32 %v3423_v13, %v2491_v40  ;;  %v2052_v40 = vmul.f32 %v7935_v26, %v9053_v15  ;;  %v2058_v35 = vmul.f32 %v7932_v44, %v9055_v4 }
 0x401   : > { %4863 = vst [vmem:[%s6935_s24 + $0xdc8] sm:$0xff] %v3422_v33  ;;  %3719 = vmatmul.mubr.bf16.gmra.mrb[232].mxu1 %v6907_v36  ;;  %v2059_v52 = vmul.f32 %v7935_v26, %v9055_v4  ;;  %v2445_v36 = vmul.f32 %v7034_v28, %v7808_v49 }
 0x402   : > { %4864 = vst [vmem:[%s6935_s24 + $0xdd0] sm:$0xff] %v3424_v2  ;;  %3728 = vmatprep.mubr.bf16.mxu1 %v9054_v22  ;;  %v4083_v21 = vpop.f32.mrb[236].mxu0 }
 0x403   : > { %v4084_v6 = vadd.f32 %v4083_v21, %v2431_v59  ;;  %v4085_v31 = vpop.f32.mrb[237].mxu0 }
 0x404   : > { %v4086_v12 = vadd.f32 %v4085_v31, %v2432_v10  ;;  %v3460_v54 = vpop.f32.mrb[128].mxu1  ;;  %v4087_v62 = vpop.f32.mrb[238].mxu0 }
 0x405   : > { %4804 = vst [vmem:[%s6935_s24 + $0xbf0] sm:$0xff] %v4084_v6  ;;  %v3461_v33 = vadd.f32 %v3460_v54, %v2051_v24  ;;  %v4088_v13 = vadd.f32 %v4087_v62, %v2438_v37  ;;  %v3462_v2 = vpop.f32.mrb[129].mxu1  ;;  %v4089_v59 = vpop.f32.mrb[239].mxu0  ;;  %v2446_v24 = vmul.f32 %v7039_v39, %v7808_v49  ;;  %v2065_v37 = vmul.f32 %v7932_v44, %v6928_v11  ;;  %v9057_v62 = vld [vmem:[#allocation60_spill] sm:$0xff] }
 0x406   : > { %4805 = vst [vmem:[%s6935_s24 + $0xbf8] sm:$0xff] %v4086_v12  ;;  %v3463_v21 = vadd.f32 %v3462_v2, %v2052_v40  ;;  %v4090_v22 = vadd.f32 %v4089_v59, %v2439_v1  ;;  %v3464_v15 = vpop.f32.mrb[130].mxu1  ;;  %v9056_v40 = vld [vmem:[#allocation61_spill] sm:$0xff]  ;;  %v2073_v59 = vmul.f32 %v7935_v26, %v9057_v62 }
 0x407   : > { %4423 = vst [vmem:[%s6935_s24 + $0x10] sm:$0xff] %v3461_v33  ;;  %4811 = vst [vmem:[%s6935_s24 + $0xc28] sm:$0xff] %v4088_v13  ;;  %v3465_v10 = vadd.f32 %v3464_v15, %v2058_v35  ;;  %v3466_v31 = vpop.f32.mrb[131].mxu1  ;;  %v2452_v15 = vmul.f32 %v7034_v28, %v7818_v17  ;;  %v2453_v35 = vmul.f32 %v7039_v39, %v7818_v17 }
 0x408   : > { %4424 = vst [vmem:[%s6935_s24 + $0x18] sm:$0xff] %v3463_v21  ;;  %4812 = vst [vmem:[%s6935_s24 + $0xc30] sm:$0xff] %v4090_v22  ;;  %v3467_v6 = vadd.f32 %v3466_v31, %v2059_v52  ;;  %v2066_v22 = vmul.f32 %v7935_v26, %v6928_v11  ;;  %v2072_v52 = vmul.f32 %v7932_v44, %v9057_v62 }
 0x409   : > { %4431 = vst [vmem:[%s6935_s24 + $0x48] sm:$0xff] %v3465_v10  ;;  %3729 = vmatmul.mubr.bf16.gmra.mrb[236].mxu1 %v6939_v0  ;;  %v2459_v11 = vmul.f32 %v7034_v28, %v7838_v34 }
 0x40a   : > { %4432 = vst [vmem:[%s6935_s24 + $0x50] sm:$0xff] %v3467_v6  ;;  %3738 = vmatprep.mubr.bf16.mxu1 %v9056_v40  ;;  %v4093_v1 = vpop.f32.mrb[240].mxu0 }
 0x40b   : > { %v4094_v12 = vadd.f32 %v4093_v1, %v2445_v36  ;;  %v4095_v54 = vpop.f32.mrb[241].mxu0 }
 0x40c   : > { %v4096_v33 = vadd.f32 %v4095_v54, %v2446_v24  ;;  %v3470_v13 = vpop.f32.mrb[132].mxu1  ;;  %v4097_v2 = vpop.f32.mrb[242].mxu0 }
 0x40d   : > { %4818 = vst [vmem:[%s6935_s24 + $0xc60] sm:$0xff] %v4094_v12  ;;  %v3471_v21 = vadd.f32 %v3470_v13, %v2065_v37  ;;  %v4098_v10 = vadd.f32 %v4097_v2, %v2452_v15  ;;  %v3472_v31 = vpop.f32.mrb[133].mxu1  ;;  %v4099_v36 = vpop.f32.mrb[243].mxu0  ;;  %v2460_v37 = vmul.f32 %v7039_v39, %v7838_v34  ;;  %v2079_v15 = vmul.f32 %v7932_v44, %v6965_v32 }
 0x40e   : > { %4819 = vst [vmem:[%s6935_s24 + $0xc68] sm:$0xff] %v4096_v33  ;;  %v3473_v6 = vadd.f32 %v3472_v31, %v2066_v22  ;;  %v4100_v1 = vadd.f32 %v4099_v36, %v2453_v35  ;;  %v3474_v40 = vpop.f32.mrb[134].mxu1  ;;  %v2080_v35 = vmul.f32 %v7935_v26, %v6965_v32  ;;  %v2086_v2 = vmul.f32 %v7932_v44, %v6972_v45 }
 0x40f   : > { %4438 = vst [vmem:[%s6935_s24 + $0x80] sm:$0xff] %v3471_v21  ;;  %4825 = vst [vmem:[%s6935_s24 + $0xc98] sm:$0xff] %v4098_v10  ;;  %v3475_v24 = vadd.f32 %v3474_v40, %v2072_v52  ;;  %v3476_v54 = vpop.f32.mrb[135].mxu1  ;;  %v2466_v40 = vmul.f32 %v7034_v28, %v7848_v55  ;;  %v2467_v52 = vmul.f32 %v7039_v39, %v7848_v55 }
 0x410   : > { %4439 = vst [vmem:[%s6935_s24 + $0x88] sm:$0xff] %v3473_v6  ;;  %4826 = vst [vmem:[%s6935_s24 + $0xca0] sm:$0xff] %v4100_v1  ;;  %v3477_v12 = vadd.f32 %v3476_v54, %v2073_v59  ;;  %v2087_v31 = vmul.f32 %v7935_v26, %v6972_v45 }
 0x411   : > { %4445 = vst [vmem:[%s6935_s24 + $0xb8] sm:$0xff] %v3475_v24  ;;  %3739 = vmatmul.mubr.bf16.gmra.mrb[240].mxu1 %v6961_v7 }
 0x412   : > { %4446 = vst [vmem:[%s6935_s24 + $0xc0] sm:$0xff] %v3477_v12  ;;  %3748 = vmatprep.mubr.bf16.mxu1 %v6987_v53  ;;  %v4103_v22 = vpop.f32.mrb[244].mxu0 }
 0x413   : > { %v4104_v33 = vadd.f32 %v4103_v22, %v2459_v11  ;;  %v4105_v13 = vpop.f32.mrb[245].mxu0 }
 0x414   : > { %v4106_v59 = vadd.f32 %v4105_v13, %v2460_v37  ;;  %v3480_v21 = vpop.f32.mrb[136].mxu1  ;;  %v4107_v10 = vpop.f32.mrb[246].mxu0  ;;  %v2473_v13 = vmul.f32 %v7034_v28, %v7868_v48 }
 0x415   : > { %4832 = vst [vmem:[%s6935_s24 + $0xcd0] sm:$0xff] %v4104_v33  ;;  %v3481_v36 = vadd.f32 %v3480_v21, %v2079_v15  ;;  %v4108_v6 = vadd.f32 %v4107_v10, %v2466_v40  ;;  %v3482_v1 = vpop.f32.mrb[137].mxu1  ;;  %v4109_v11 = vpop.f32.mrb[247].mxu0  ;;  %v2474_v15 = vmul.f32 %v7039_v39, %v7868_v48  ;;  %v2093_v40 = vmul.f32 %v7932_v44, %v6989_v61 }
 0x416   : > { %4833 = vst [vmem:[%s6935_s24 + $0xcd8] sm:$0xff] %v4106_v59  ;;  %v3483_v24 = vadd.f32 %v3482_v1, %v2080_v35  ;;  %v4110_v54 = vadd.f32 %v4109_v11, %v2467_v52  ;;  %v3484_v12 = vpop.f32.mrb[138].mxu1  ;;  %v2480_v35 = vmul.f32 %v7034_v28, %v7878_v27  ;;  %v2481_v59 = vmul.f32 %v7039_v39, %v7878_v27 }
 0x417   : > { %4452 = vst [vmem:[%s6935_s24 + $0xf0] sm:$0xff] %v3481_v36  ;;  %4839 = vst [vmem:[%s6935_s24 + $0xd08] sm:$0xff] %v4108_v6  ;;  %v3485_v37 = vadd.f32 %v3484_v12, %v2086_v2  ;;  %v3486_v22 = vpop.f32.mrb[139].mxu1  ;;  %v2094_v2 = vmul.f32 %v7935_v26, %v6989_v61  ;;  %v2101_v11 = vmul.f32 %v7935_v26, %v6996_v16 }
 0x418   : > { %4453 = vst [vmem:[%s6935_s24 + $0xf8] sm:$0xff] %v3483_v24  ;;  %4840 = vst [vmem:[%s6935_s24 + $0xd10] sm:$0xff] %v4110_v54  ;;  %v3487_v33 = vadd.f32 %v3486_v22, %v2087_v31  ;;  %v2100_v31 = vmul.f32 %v7932_v44, %v6996_v16 }
 0x419   : > { %4459 = vst [vmem:[%s6935_s24 + $0x128] sm:$0xff] %v3485_v37  ;;  %3749 = vmatmul.mubr.bf16.gmra.mrb[244].mxu1 %v6985_v19 }
 0x41a   : > { %4460 = vst [vmem:[%s6935_s24 + $0x130] sm:$0xff] %v3487_v33  ;;  %3758 = vmatprep.mubr.bf16.mxu1 %v7011_v3  ;;  %v4113_v52 = vpop.f32.mrb[248].mxu0 }
 0x41b   : > { %v4114_v21 = vadd.f32 %v4113_v52, %v2473_v13  ;;  %v4115_v10 = vpop.f32.mrb[249].mxu0 }
 0x41c   : > { %v4116_v36 = vadd.f32 %v4115_v10, %v2474_v15  ;;  %v3490_v6 = vpop.f32.mrb[140].mxu1  ;;  %v4117_v1 = vpop.f32.mrb[250].mxu0  ;;  %v2487_v10 = vmul.f32 %v7034_v28, %v7898_v25 }
 0x41d   : > { %4846 = vst [vmem:[%s6935_s24 + $0xd40] sm:$0xff] %v4114_v21  ;;  %v3491_v24 = vadd.f32 %v3490_v6, %v2093_v40  ;;  %v4118_v54 = vadd.f32 %v4117_v1, %v2480_v35  ;;  %v3492_v12 = vpop.f32.mrb[141].mxu1  ;;  %v4119_v37 = vpop.f32.mrb[251].mxu0  ;;  %v2488_v40 = vmul.f32 %v7039_v39, %v7898_v25  ;;  %v2107_v35 = vmul.f32 %v7932_v44, %v7013_v43 }
 0x41e   : > { %4847 = vst [vmem:[%s6935_s24 + $0xd48] sm:$0xff] %v4116_v36  ;;  %v3493_v22 = vadd.f32 %v3492_v12, %v2094_v2  ;;  %v4120_v13 = vadd.f32 %v4119_v37, %v2481_v59  ;;  %v3494_v33 = vpop.f32.mrb[142].mxu1  ;;  %v2494_v2 = vmul.f32 %v7034_v28, %v7908_v47  ;;  %v2495_v36 = vmul.f32 %v7039_v39, %v7908_v47 }
 0x41f   : > { %4466 = vst [vmem:[%s6935_s24 + $0x160] sm:$0xff] %v3491_v24  ;;  %4853 = vst [vmem:[%s6935_s24 + $0xd78] sm:$0xff] %v4118_v54  ;;  %v3495_v15 = vadd.f32 %v3494_v33, %v2100_v31  ;;  %v3496_v52 = vpop.f32.mrb[143].mxu1  ;;  %v2108_v31 = vmul.f32 %v7935_v26, %v7013_v43  ;;  %v2115_v12 = vmul.f32 %v7935_v26, %v7021_v51 }
 0x420   : > { %4467 = vst [vmem:[%s6935_s24 + $0x168] sm:$0xff] %v3493_v22  ;;  %4854 = vst [vmem:[%s6935_s24 + $0xd80] sm:$0xff] %v4120_v13  ;;  %v3497_v21 = vadd.f32 %v3496_v52, %v2101_v11  ;;  %v2114_v11 = vmul.f32 %v7932_v44, %v7021_v51 }
 0x421   : > { %4473 = vst [vmem:[%s6935_s24 + $0x198] sm:$0xff] %v3495_v15  ;;  %3759 = vmatmul.mubr.bf16.gmra.mrb[248].mxu1 %v7009_v63 }
 0x422   : > { %4474 = vst [vmem:[%s6935_s24 + $0x1a0] sm:$0xff] %v3497_v21  ;;  %3768 = vmatprep.mubr.bf16.mxu1 %v7043_v41  ;;  %v4123_v59 = vpop.f32.mrb[252].mxu0 }
 0x423   : > { %v4124_v6 = vadd.f32 %v4123_v59, %v2487_v10  ;;  %v4125_v1 = vpop.f32.mrb[253].mxu0  ;;  %v2122_v59 = vmul.f32 %v7935_v26, %v7045_v9 }
 0x424   : > { %v4126_v24 = vadd.f32 %v4125_v1, %v2488_v40  ;;  %v3500_v28 = vpop.f32.mrb[144].mxu1  ;;  %v4127_v54 = vpop.f32.mrb[254].mxu0 }
 0x425   : > { %4860 = vst [vmem:[%s6935_s24 + $0xdb0] sm:$0xff] %v4124_v6  ;;  %v3501_v37 = vadd.f32 %v3500_v28, %v2107_v35  ;;  %v4128_v22 = vadd.f32 %v4127_v54, %v2494_v2  ;;  %v3502_v39 = vpop.f32.mrb[145].mxu1  ;;  %v4129_v13 = vpop.f32.mrb[255].mxu0  ;;  %v2121_v35 = vmul.f32 %v7932_v44, %v7045_v9  ;;  %v9058_v2 = vld [vmem:[#allocation3_spill] sm:$0xff]  ;;  %v2129_v6 = vmul.f32 %v7935_v26, %v7056_v46 }
 0x426   : > { %4861 = vst [vmem:[%s6935_s24 + $0xdb8] sm:$0xff] %v4126_v24  ;;  %v3503_v33 = vadd.f32 %v3502_v39, %v2108_v31  ;;  %v4130_v15 = vadd.f32 %v4129_v13, %v2495_v36  ;;  %v3504_v52 = vpop.f32.mrb[146].mxu1  ;;  %v2128_v31 = vmul.f32 %v7932_v44, %v7056_v46  ;;  %v2135_v39 = vmul.f32 %v7932_v44, %v7076_v58  ;;  %v9060_v13 = vld [vmem:[#allocation5_spill] sm:$0xff] }
 0x427   : > { %4480 = vst [vmem:[%s6935_s24 + $0x1d0] sm:$0xff] %v3501_v37  ;;  %4867 = vst [vmem:[%s6935_s24 + $0xde8] sm:$0xff] %v4128_v22  ;;  %v3505_v10 = vadd.f32 %v3504_v52, %v2114_v11  ;;  %v3506_v21 = vpop.f32.mrb[147].mxu1  ;;  %v9059_v22 = vld [vmem:[#allocation2_spill] sm:$0xff] }
 0x428   : > { %4481 = vst [vmem:[%s6935_s24 + $0x1d8] sm:$0xff] %v3503_v33  ;;  %4868 = vst [vmem:[%s6935_s24 + $0xdf0] sm:$0xff] %v4130_v15  ;;  %v3507_v40 = vadd.f32 %v3506_v21, %v2115_v12  ;;  %v2136_v33 = vmul.f32 %v7935_v26, %v7076_v58  ;;  %v2142_v15 = vmul.f32 %v7932_v44, %v7091_v5 }
 0x429   : > { %4487 = vst [vmem:[%s6935_s24 + $0x208] sm:$0xff] %v3505_v10  ;;  %3769 = vmatmul.mubr.bf16.gmra.mrb[252].mxu1 %v7041_v18  ;;  %v2143_v10 = vmul.f32 %v7935_v26, %v7091_v5 }
 0x42a   : > { %4488 = vst [vmem:[%s6935_s24 + $0x210] sm:$0xff] %v3507_v40  ;;  %4164 = vmatprep.mubr.bf16.mxu1 %v9058_v2 }
 0x42c   : > { %v3510_v36 = vpop.f32.mrb[148].mxu1 }
 0x42d   : > { %v3511_v1 = vadd.f32 %v3510_v36, %v2121_v35  ;;  %v3512_v11 = vpop.f32.mrb[149].mxu1 }
 0x42e   : > { %v3513_v24 = vadd.f32 %v3512_v11, %v2122_v59  ;;  %v3514_v28 = vpop.f32.mrb[150].mxu1  ;;  %v9062_v11 = vld [vmem:[#allocation7_spill] sm:$0xff] }
 0x42f   : > { %4494 = vst [vmem:[%s6935_s24 + $0x240] sm:$0xff] %v3511_v1  ;;  %v3515_v54 = vadd.f32 %v3514_v28, %v2128_v31  ;;  %v3516_v12 = vpop.f32.mrb[151].mxu1  ;;  %v2149_v1 = vmul.f32 %v7932_v44, %v7115_v14  ;;  %v2156_v28 = vmul.f32 %v7932_v44, %v7131_v50 }
 0x430   : > { %4495 = vst [vmem:[%s6935_s24 + $0x248] sm:$0xff] %v3513_v24  ;;  %v3517_v37 = vadd.f32 %v3516_v12, %v2129_v6  ;;  %v9061_v6 = vld [vmem:[#allocation4_spill] sm:$0xff]  ;;  %v2150_v24 = vmul.f32 %v7935_v26, %v7115_v14  ;;  %v2157_v12 = vmul.f32 %v7935_v26, %v7131_v50 }
 0x431   : > { %4501 = vst [vmem:[%s6935_s24 + $0x278] sm:$0xff] %v3515_v54  ;;  %4165 = vmatmul.mubr.bf16.vlgmr.msra.gmra.mrb[0].mxu1 %v9059_v22 }
 0x432   : > { %4502 = vst [vmem:[%s6935_s24 + $0x280] sm:$0xff] %v3517_v37  ;;  %4172 = vmatprep.mubr.bf16.mxu1 %v9060_v13 }
 0x434   : > { %v3520_v52 = vpop.f32.mrb[152].mxu1 }
 0x435   : > { %v3521_v21 = vadd.f32 %v3520_v52, %v2135_v39  ;;  %v3522_v40 = vpop.f32.mrb[153].mxu1 }
 0x436   : > { %v3523_v35 = vadd.f32 %v3522_v40, %v2136_v33  ;;  %v3524_v2 = vpop.f32.mrb[154].mxu1  ;;  %v9064_v40 = vld [vmem:[#allocation8_spill] sm:$0xff] }
 0x437   : > { %4508 = vst [vmem:[%s6935_s24 + $0x2b0] sm:$0xff] %v3521_v21  ;;  %v3525_v59 = vadd.f32 %v3524_v2, %v2142_v15  ;;  %v3526_v31 = vpop.f32.mrb[155].mxu1  ;;  %v2163_v21 = vmul.f32 %v7932_v44, %v7155_v8  ;;  %v2170_v2 = vmul.f32 %v7932_v44, %v7171_v60 }
 0x438   : > { %4509 = vst [vmem:[%s6935_s24 + $0x2b8] sm:$0xff] %v3523_v35  ;;  %v3527_v36 = vadd.f32 %v3526_v31, %v2143_v10  ;;  %v9063_v10 = vld [vmem:[#allocation6_spill] sm:$0xff]  ;;  %v2164_v35 = vmul.f32 %v7935_v26, %v7155_v8  ;;  %v2171_v31 = vmul.f32 %v7935_v26, %v7171_v60 }
 0x439   : > { %4515 = vst [vmem:[%s6935_s24 + $0x2e8] sm:$0xff] %v3525_v59  ;;  %4173 = vmatmul.mubr.bf16.gmra.mrb[4].mxu1 %v9061_v6 }
 0x43a   : > { %4516 = vst [vmem:[%s6935_s24 + $0x2f0] sm:$0xff] %v3527_v36  ;;  %4180 = vmatprep.mubr.bf16.mxu1 %v9062_v11 }
 0x43c   : > { %v3530_v54 = vpop.f32.mrb[156].mxu1 }
 0x43d   : > { %v3531_v37 = vadd.f32 %v3530_v54, %v2149_v1  ;;  %v3532_v22 = vpop.f32.mrb[157].mxu1 }
 0x43e   : > { %v3533_v39 = vadd.f32 %v3532_v22, %v2150_v24  ;;  %v3534_v13 = vpop.f32.mrb[158].mxu1  ;;  %v2178_v22 = vmul.f32 %v7935_v26, %v7195_v23 }
 0x43f   : > { %4522 = vst [vmem:[%s6935_s24 + $0x320] sm:$0xff] %v3531_v37  ;;  %v3535_v33 = vadd.f32 %v3534_v13, %v2156_v28  ;;  %v3536_v15 = vpop.f32.mrb[159].mxu1  ;;  %v9065_v37 = vld [vmem:[#allocation10_spill] sm:$0xff] }
 0x440   : > { %4523 = vst [vmem:[%s6935_s24 + $0x328] sm:$0xff] %v3533_v39  ;;  %v3537_v52 = vadd.f32 %v3536_v15, %v2157_v12  ;;  %v2177_v12 = vmul.f32 %v7932_v44, %v7195_v23  ;;  %v2184_v39 = vmul.f32 %v7932_v44, %v7211_v42 }
 0x441   : > { %4529 = vst [vmem:[%s6935_s24 + $0x358] sm:$0xff] %v3535_v33  ;;  %4181 = vmatmul.mubr.bf16.gmra.mrb[8].mxu1 %v9063_v10  ;;  %v2185_v33 = vmul.f32 %v7935_v26, %v7211_v42 }
 0x442   : > { %4530 = vst [vmem:[%s6935_s24 + $0x360] sm:$0xff] %v3537_v52  ;;  %4188 = vmatprep.mubr.bf16.mxu1 %v9064_v40 }
 0x444   : > { %v3540_v59 = vpop.f32.mrb[160].mxu1 }
 0x445   : > { %v3541_v36 = vadd.f32 %v3540_v59, %v2163_v21  ;;  %v3542_v6 = vpop.f32.mrb[161].mxu1  ;;  %v2191_v59 = vmul.f32 %v7932_v44, %v7235_v30 }
 0x446   : > { %v3543_v1 = vadd.f32 %v3542_v6, %v2164_v35  ;;  %v3544_v11 = vpop.f32.mrb[162].mxu1  ;;  %v2198_v6 = vmul.f32 %v7932_v44, %v7250_v57 }
 0x447   : > { %4536 = vst [vmem:[%s6935_s24 + $0x390] sm:$0xff] %v3541_v36  ;;  %v3545_v24 = vadd.f32 %v3544_v11, %v2170_v2  ;;  %v3546_v28 = vpop.f32.mrb[163].mxu1  ;;  %v9066_v2 = vld [vmem:[#allocation9_spill] sm:$0xff]  ;;  %v2192_v36 = vmul.f32 %v7935_v26, %v7235_v30  ;;  %v2199_v11 = vmul.f32 %v7935_v26, %v7250_v57 }
 0x448   : > { %4537 = vst [vmem:[%s6935_s24 + $0x398] sm:$0xff] %v3543_v1  ;;  %v3547_v54 = vadd.f32 %v3546_v28, %v2171_v31  ;;  %v9067_v31 = vld [vmem:[#allocation12_spill] sm:$0xff] }
 0x449   : > { %4543 = vst [vmem:[%s6935_s24 + $0x3c8] sm:$0xff] %v3545_v24  ;;  %4189 = vmatmul.mubr.bf16.gmra.mrb[12].mxu1 %v6512_v38 }
 0x44a   : > { %4544 = vst [vmem:[%s6935_s24 + $0x3d0] sm:$0xff] %v3547_v54  ;;  %4196 = vmatprep.mubr.bf16.mxu1 %v9065_v37 }
 0x44c   : > { %v3550_v13 = vpop.f32.mrb[164].mxu1 }
 0x44d   : > { %v3551_v15 = vadd.f32 %v3550_v13, %v2177_v12  ;;  %v3552_v38 = vpop.f32.mrb[165].mxu1  ;;  %v9068_v13 = vld [vmem:[#allocation11_spill] sm:$0xff] }
 0x44e   : > { %v3553_v52 = vadd.f32 %v3552_v38, %v2178_v22  ;;  %v3554_v10 = vpop.f32.mrb[166].mxu1  ;;  %v9070_v38 = vld [vmem:[#allocation14_spill] sm:$0xff] }
 0x44f   : > { %4550 = vst [vmem:[%s6935_s24 + $0x400] sm:$0xff] %v3551_v15  ;;  %v3555_v21 = vadd.f32 %v3554_v10, %v2184_v39  ;;  %v3556_v40 = vpop.f32.mrb[167].mxu1  ;;  %v9071_v10 = vld [vmem:[#allocation63_spill] sm:$0xff] }
 0x450   : > { %4551 = vst [vmem:[%s6935_s24 + $0x408] sm:$0xff] %v3553_v52  ;;  %v3557_v35 = vadd.f32 %v3556_v40, %v2185_v33  ;;  %v9069_v33 = vld [vmem:[#allocation62_spill] sm:$0xff] }
 0x451   : > { %4557 = vst [vmem:[%s6935_s24 + $0x438] sm:$0xff] %v3555_v21  ;;  %4197 = vmatmul.mubr.bf16.gmra.mrb[16].mxu1 %v9066_v2  ;;  %v2205_v15 = vmul.f32 %v7932_v44, %v9069_v33  ;;  %v2206_v52 = vmul.f32 %v7935_v26, %v9069_v33  ;;  %v2212_v21 = vmul.f32 %v7932_v44, %v9071_v10 }
 0x452   : > { %4558 = vst [vmem:[%s6935_s24 + $0x440] sm:$0xff] %v3557_v35  ;;  %4204 = vmatprep.mubr.bf16.mxu1 %v9067_v31  ;;  %v2213_v35 = vmul.f32 %v7935_v26, %v9071_v10 }
 0x454   : > { %v3560_v1 = vpop.f32.mrb[168].mxu1 }
 0x455   : > { %v3561_v24 = vadd.f32 %v3560_v1, %v2191_v59  ;;  %v3562_v28 = vpop.f32.mrb[169].mxu1 }
 0x456   : > { %v3563_v54 = vadd.f32 %v3562_v28, %v2192_v36  ;;  %v3564_v12 = vpop.f32.mrb[170].mxu1  ;;  %v9073_v28 = vld [vmem:[#allocation64_spill] sm:$0xff] }
 0x457   : > { %4564 = vst [vmem:[%s6935_s24 + $0x470] sm:$0xff] %v3561_v24  ;;  %v3565_v37 = vadd.f32 %v3564_v12, %v2198_v6  ;;  %v3566_v22 = vpop.f32.mrb[171].mxu1  ;;  %v9072_v24 = vld [vmem:[#allocation13_spill] sm:$0xff]  ;;  %v9074_v12 = vld [vmem:[#allocation16_spill] sm:$0xff] }
 0x458   : > { %4565 = vst [vmem:[%s6935_s24 + $0x478] sm:$0xff] %v3563_v54  ;;  %v3567_v39 = vadd.f32 %v3566_v22, %v2199_v11  ;;  %v2219_v54 = vmul.f32 %v7932_v44, %v9073_v28  ;;  %v9075_v22 = vld [vmem:[#allocation65_spill] sm:$0xff] }
 0x459   : > { %4571 = vst [vmem:[%s6935_s24 + $0x4a8] sm:$0xff] %v3565_v37  ;;  %4205 = vmatmul.mubr.bf16.gmra.mrb[20].mxu1 %v9068_v13  ;;  %v2220_v37 = vmul.f32 %v7935_v26, %v9073_v28 }
 0x45a   : > { %4572 = vst [vmem:[%s6935_s24 + $0x4b0] sm:$0xff] %v3567_v39  ;;  %4212 = vmatprep.mubr.bf16.mxu1 %v9070_v38  ;;  %v2226_v39 = vmul.f32 %v7932_v44, %v9075_v22 }
 0x45c   : > { %v3570_v40 = vpop.f32.mrb[172].mxu1 }
 0x45d   : > { %v3571_v2 = vadd.f32 %v3570_v40, %v2205_v15  ;;  %v3572_v59 = vpop.f32.mrb[173].mxu1  ;;  %v2227_v15 = vmul.f32 %v7935_v26, %v9075_v22 }
 0x45e   : > { %v3573_v31 = vadd.f32 %v3572_v59, %v2206_v52  ;;  %v3574_v36 = vpop.f32.mrb[174].mxu1 }
 0x45f   : > { %4578 = vst [vmem:[%s6935_s24 + $0x4e0] sm:$0xff] %v3571_v2  ;;  %v3575_v6 = vadd.f32 %v3574_v36, %v2212_v21  ;;  %v3576_v1 = vpop.f32.mrb[175].mxu1  ;;  %v2233_v36 = vmul.f32 %v7932_v44, %v7342_v29 }
 0x460   : > { %4579 = vst [vmem:[%s6935_s24 + $0x4e8] sm:$0xff] %v3573_v31  ;;  %v3577_v11 = vadd.f32 %v3576_v1, %v2213_v35  ;;  %v9076_v31 = vld [vmem:[#allocation15_spill] sm:$0xff]  ;;  %v2234_v1 = vmul.f32 %v7935_v26, %v7342_v29 }
 0x461   : > { %4585 = vst [vmem:[%s6935_s24 + $0x518] sm:$0xff] %v3575_v6  ;;  %4213 = vmatmul.mubr.bf16.gmra.mrb[24].mxu1 %v9072_v24  ;;  %v9077_v6 = vld [vmem:[#allocation18_spill] sm:$0xff] }
 0x462   : > { %4586 = vst [vmem:[%s6935_s24 + $0x520] sm:$0xff] %v3577_v11  ;;  %4220 = vmatprep.mubr.bf16.mxu1 %v9074_v12  ;;  %v9078_v11 = vld [vmem:[#allocation66_spill] sm:$0xff] }
 0x463   : > { %v2240_v24 = vmul.f32 %v7932_v44, %v9078_v11  ;;  %v2241_v12 = vmul.f32 %v7935_v26, %v9078_v11 }
 0x464   : > { %v3580_v13 = vpop.f32.mrb[176].mxu1 }
 0x465   : > { %v3581_v38 = vadd.f32 %v3580_v13, %v2219_v54  ;;  %v3582_v52 = vpop.f32.mrb[177].mxu1 }
 0x466   : > { %v3583_v21 = vadd.f32 %v3582_v52, %v2220_v37  ;;  %v3584_v40 = vpop.f32.mrb[178].mxu1 }
 0x467   : > { %4592 = vst [vmem:[%s6935_s24 + $0x550] sm:$0xff] %v3581_v38  ;;  %v3585_v35 = vadd.f32 %v3584_v40, %v2226_v39  ;;  %v3586_v2 = vpop.f32.mrb[179].mxu1  ;;  %v9079_v40 = vld [vmem:[#allocation17_spill] sm:$0xff] }
 0x468   : > { %4593 = vst [vmem:[%s6935_s24 + $0x558] sm:$0xff] %v3583_v21  ;;  %v3587_v59 = vadd.f32 %v3586_v2, %v2227_v15 }
 0x469   : > { %4599 = vst [vmem:[%s6935_s24 + $0x588] sm:$0xff] %v3585_v35  ;;  %4221 = vmatmul.mubr.bf16.gmra.mrb[28].mxu1 %v9076_v31  ;;  %v9080_v35 = vld [vmem:[#allocation67_spill] sm:$0xff] }
 0x46a   : > { %4600 = vst [vmem:[%s6935_s24 + $0x590] sm:$0xff] %v3587_v59  ;;  %4228 = vmatprep.mubr.bf16.mxu1 %v9077_v6  ;;  %v2247_v2 = vmul.f32 %v7932_v44, %v9080_v35  ;;  %v9081_v59 = vld [vmem:[#allocation20_spill] sm:$0xff]  ;;  %v2248_v31 = vmul.f32 %v7935_v26, %v9080_v35 }
 0x46c   : > { %v3590_v54 = vpop.f32.mrb[180].mxu1 }
 0x46d   : > { %v3591_v37 = vadd.f32 %v3590_v54, %v2233_v36  ;;  %v3592_v39 = vpop.f32.mrb[181].mxu1  ;;  %v9082_v36 = vld [vmem:[#allocation68_spill] sm:$0xff] }
 0x46e   : > { %v3593_v13 = vadd.f32 %v3592_v39, %v2234_v1  ;;  %v3594_v15 = vpop.f32.mrb[182].mxu1  ;;  %v2254_v6 = vmul.f32 %v7932_v44, %v9082_v36 }
 0x46f   : > { %4606 = vst [vmem:[%s6935_s24 + $0x5c0] sm:$0xff] %v3591_v37  ;;  %v3595_v38 = vadd.f32 %v3594_v15, %v2240_v24  ;;  %v3596_v52 = vpop.f32.mrb[183].mxu1  ;;  %v2255_v24 = vmul.f32 %v7935_v26, %v9082_v36 }
 0x470   : > { %4607 = vst [vmem:[%s6935_s24 + $0x5c8] sm:$0xff] %v3593_v13  ;;  %v3597_v21 = vadd.f32 %v3596_v52, %v2241_v12  ;;  %v9083_v52 = vld [vmem:[#allocation19_spill] sm:$0xff] }
 0x471   : > { %4613 = vst [vmem:[%s6935_s24 + $0x5f8] sm:$0xff] %v3595_v38  ;;  %4229 = vmatmul.mubr.bf16.gmra.mrb[32].mxu1 %v9079_v40 }
 0x472   : > { %4614 = vst [vmem:[%s6935_s24 + $0x600] sm:$0xff] %v3597_v21  ;;  %4236 = vmatprep.mubr.bf16.mxu1 %v9081_v59  ;;  %v9084_v21 = vld [vmem:[#allocation69_spill] sm:$0xff]  ;;  %v9085_v59 = vld [vmem:[#allocation22_spill] sm:$0xff] }
 0x473   : > { %v2261_v40 = vmul.f32 %v7932_v44, %v9084_v21 }
 0x474   : > { %v3600_v1 = vpop.f32.mrb[184].mxu1 }
 0x475   : > { %v3601_v54 = vadd.f32 %v3600_v1, %v2247_v2  ;;  %v3602_v12 = vpop.f32.mrb[185].mxu1  ;;  %v2262_v2 = vmul.f32 %v7935_v26, %v9084_v21 }
 0x476   : > { %v3603_v37 = vadd.f32 %v3602_v12, %v2248_v31  ;;  %v3604_v39 = vpop.f32.mrb[186].mxu1  ;;  %v9086_v31 = vld [vmem:[#allocation70_spill] sm:$0xff] }
 0x477   : > { %4620 = vst [vmem:[%s6935_s24 + $0x630] sm:$0xff] %v3601_v54  ;;  %v3605_v13 = vadd.f32 %v3604_v39, %v2254_v6  ;;  %v3606_v15 = vpop.f32.mrb[187].mxu1  ;;  %v2268_v6 = vmul.f32 %v7932_v44, %v9086_v31 }
 0x478   : > { %4621 = vst [vmem:[%s6935_s24 + $0x638] sm:$0xff] %v3603_v37  ;;  %v3607_v38 = vadd.f32 %v3606_v15, %v2255_v24  ;;  %v2269_v24 = vmul.f32 %v7935_v26, %v9086_v31  ;;  %v9089_v31 = vld [vmem:[#allocation24_spill] sm:$0xff] }
 0x479   : > { %4627 = vst [vmem:[%s6935_s24 + $0x668] sm:$0xff] %v3605_v13  ;;  %4237 = vmatmul.mubr.bf16.gmra.mrb[36].mxu1 %v9083_v52  ;;  %v9087_v52 = vld [vmem:[#allocation21_spill] sm:$0xff] }
 0x47a   : > { %4628 = vst [vmem:[%s6935_s24 + $0x670] sm:$0xff] %v3607_v38  ;;  %4244 = vmatprep.mubr.bf16.mxu1 %v9085_v59  ;;  %v9088_v59 = vld [vmem:[#allocation71_spill] sm:$0xff] }
 0x47b   : > { %v2275_v21 = vmul.f32 %v7932_v44, %v9088_v59 }
 0x47c   : > { %v3610_v1 = vpop.f32.mrb[188].mxu1 }
 0x47d   : > { %v3611_v54 = vadd.f32 %v3610_v1, %v2261_v40  ;;  %v3612_v12 = vpop.f32.mrb[189].mxu1  ;;  %v2276_v40 = vmul.f32 %v7935_v26, %v9088_v59 }
 0x47e   : > { %v3613_v37 = vadd.f32 %v3612_v12, %v2262_v2  ;;  %v3614_v39 = vpop.f32.mrb[190].mxu1  ;;  %v9090_v2 = vld [vmem:[#allocation72_spill] sm:$0xff] }
 0x47f   : > { %4634 = vst [vmem:[%s6935_s24 + $0x6a0] sm:$0xff] %v3611_v54  ;;  %v3615_v13 = vadd.f32 %v3614_v39, %v2268_v6  ;;  %v3616_v15 = vpop.f32.mrb[191].mxu1  ;;  %v2282_v6 = vmul.f32 %v7932_v44, %v9090_v2 }
 0x480   : > { %4635 = vst [vmem:[%s6935_s24 + $0x6a8] sm:$0xff] %v3613_v37  ;;  %v3617_v38 = vadd.f32 %v3616_v15, %v2269_v24  ;;  %v2283_v24 = vmul.f32 %v7935_v26, %v9090_v2  ;;  %v9093_v2 = vld [vmem:[#allocation26_spill] sm:$0xff] }
 0x481   : > { %4641 = vst [vmem:[%s6935_s24 + $0x6d8] sm:$0xff] %v3615_v13  ;;  %4245 = vmatmul.mubr.bf16.gmra.mrb[40].mxu1 %v9087_v52  ;;  %v9092_v52 = vld [vmem:[#allocation73_spill] sm:$0xff] }
 0x482   : > { %4642 = vst [vmem:[%s6935_s24 + $0x6e0] sm:$0xff] %v3617_v38  ;;  %4252 = vmatprep.mubr.bf16.mxu1 %v9089_v31  ;;  %v9091_v38 = vld [vmem:[#allocation23_spill] sm:$0xff]  ;;  %v2289_v59 = vmul.f32 %v7932_v44, %v9092_v52 }
 0x484   : > { %v3620_v1 = vpop.f32.mrb[192].mxu1 }
 0x485   : > { %v3621_v54 = vadd.f32 %v3620_v1, %v2275_v21  ;;  %v3622_v12 = vpop.f32.mrb[193].mxu1  ;;  %v2290_v21 = vmul.f32 %v7935_v26, %v9092_v52 }
 0x486   : > { %v3623_v37 = vadd.f32 %v3622_v12, %v2276_v40  ;;  %v3624_v39 = vpop.f32.mrb[194].mxu1  ;;  %v9094_v40 = vld [vmem:[#allocation74_spill] sm:$0xff] }
 0x487   : > { %4648 = vst [vmem:[%s6935_s24 + $0x710] sm:$0xff] %v3621_v54  ;;  %v3625_v13 = vadd.f32 %v3624_v39, %v2282_v6  ;;  %v3626_v15 = vpop.f32.mrb[195].mxu1  ;;  %v2296_v6 = vmul.f32 %v7932_v44, %v9094_v40 }
 0x488   : > { %4649 = vst [vmem:[%s6935_s24 + $0x718] sm:$0xff] %v3623_v37  ;;  %v3627_v31 = vadd.f32 %v3626_v15, %v2283_v24  ;;  %v2297_v24 = vmul.f32 %v7935_v26, %v9094_v40  ;;  %v9097_v40 = vld [vmem:[#allocation28_spill] sm:$0xff] }
 0x489   : > { %4655 = vst [vmem:[%s6935_s24 + $0x748] sm:$0xff] %v3625_v13  ;;  %4253 = vmatmul.mubr.bf16.gmra.mrb[44].mxu1 %v9091_v38  ;;  %v9096_v38 = vld [vmem:[#allocation75_spill] sm:$0xff] }
 0x48a   : > { %4656 = vst [vmem:[%s6935_s24 + $0x750] sm:$0xff] %v3627_v31  ;;  %4260 = vmatprep.mubr.bf16.mxu1 %v9093_v2  ;;  %v9095_v31 = vld [vmem:[#allocation25_spill] sm:$0xff]  ;;  %v2303_v52 = vmul.f32 %v7932_v44, %v9096_v38 }
 0x48c   : > { %v3630_v1 = vpop.f32.mrb[196].mxu1 }
 0x48d   : > { %v3631_v54 = vadd.f32 %v3630_v1, %v2289_v59  ;;  %v3632_v12 = vpop.f32.mrb[197].mxu1  ;;  %v2304_v59 = vmul.f32 %v7935_v26, %v9096_v38 }
 0x48e   : > { %v3633_v37 = vadd.f32 %v3632_v12, %v2290_v21  ;;  %v3634_v39 = vpop.f32.mrb[198].mxu1  ;;  %v9098_v21 = vld [vmem:[#allocation76_spill] sm:$0xff] }
 0x48f   : > { %4662 = vst [vmem:[%s6935_s24 + $0x780] sm:$0xff] %v3631_v54  ;;  %v3635_v13 = vadd.f32 %v3634_v39, %v2296_v6  ;;  %v3636_v15 = vpop.f32.mrb[199].mxu1  ;;  %v2310_v6 = vmul.f32 %v7932_v44, %v9098_v21 }
 0x490   : > { %4663 = vst [vmem:[%s6935_s24 + $0x788] sm:$0xff] %v3633_v37  ;;  %v3637_v2 = vadd.f32 %v3636_v15, %v2297_v24  ;;  %v2311_v24 = vmul.f32 %v7935_v26, %v9098_v21  ;;  %v9101_v21 = vld [vmem:[#allocation30_spill] sm:$0xff] }
 0x491   : > { %4669 = vst [vmem:[%s6935_s24 + $0x7b8] sm:$0xff] %v3635_v13  ;;  %4261 = vmatmul.mubr.bf16.gmra.mrb[48].mxu1 %v9095_v31  ;;  %v9100_v31 = vld [vmem:[#allocation77_spill] sm:$0xff] }
 0x492   : > { %4670 = vst [vmem:[%s6935_s24 + $0x7c0] sm:$0xff] %v3637_v2  ;;  %4268 = vmatprep.mubr.bf16.mxu1 %v9097_v40  ;;  %v9099_v2 = vld [vmem:[#allocation27_spill] sm:$0xff]  ;;  %v2317_v38 = vmul.f32 %v7932_v44, %v9100_v31 }
 0x494   : > { %v3640_v1 = vpop.f32.mrb[200].mxu1 }
 0x495   : > { %v3641_v54 = vadd.f32 %v3640_v1, %v2303_v52  ;;  %v3642_v12 = vpop.f32.mrb[201].mxu1  ;;  %v2318_v52 = vmul.f32 %v7935_v26, %v9100_v31 }
 0x496   : > { %v3643_v37 = vadd.f32 %v3642_v12, %v2304_v59  ;;  %v3644_v39 = vpop.f32.mrb[202].mxu1  ;;  %v9102_v59 = vld [vmem:[#allocation78_spill] sm:$0xff] }
 0x497   : > { %4676 = vst [vmem:[%s6935_s24 + $0x7f0] sm:$0xff] %v3641_v54  ;;  %v3645_v13 = vadd.f32 %v3644_v39, %v2310_v6  ;;  %v3646_v15 = vpop.f32.mrb[203].mxu1  ;;  %v2324_v6 = vmul.f32 %v7932_v44, %v9102_v59 }
 0x498   : > { %4677 = vst [vmem:[%s6935_s24 + $0x7f8] sm:$0xff] %v3643_v37  ;;  %v3647_v40 = vadd.f32 %v3646_v15, %v2311_v24  ;;  %v2325_v24 = vmul.f32 %v7935_v26, %v9102_v59  ;;  %v9105_v59 = vld [vmem:[#allocation32_spill] sm:$0xff] }
 0x499   : > { %4683 = vst [vmem:[%s6935_s24 + $0x828] sm:$0xff] %v3645_v13  ;;  %4269 = vmatmul.mubr.bf16.gmra.mrb[52].mxu1 %v9099_v2  ;;  %v9104_v2 = vld [vmem:[#allocation79_spill] sm:$0xff] }
 0x49a   : > { %4684 = vst [vmem:[%s6935_s24 + $0x830] sm:$0xff] %v3647_v40  ;;  %4276 = vmatprep.mubr.bf16.mxu1 %v9101_v21  ;;  %v9103_v40 = vld [vmem:[#allocation29_spill] sm:$0xff]  ;;  %v2331_v31 = vmul.f32 %v7932_v44, %v9104_v2 }
 0x49c   : > { %v3650_v1 = vpop.f32.mrb[204].mxu1 }
 0x49d   : > { %v3651_v54 = vadd.f32 %v3650_v1, %v2317_v38  ;;  %v3652_v12 = vpop.f32.mrb[205].mxu1  ;;  %v2332_v38 = vmul.f32 %v7935_v26, %v9104_v2 }
 0x49e   : > { %v3653_v37 = vadd.f32 %v3652_v12, %v2318_v52  ;;  %v3654_v39 = vpop.f32.mrb[206].mxu1  ;;  %v9106_v52 = vld [vmem:[#allocation80_spill] sm:$0xff] }
 0x49f   : > { %4690 = vst [vmem:[%s6935_s24 + $0x860] sm:$0xff] %v3651_v54  ;;  %v3655_v13 = vadd.f32 %v3654_v39, %v2324_v6  ;;  %v3656_v15 = vpop.f32.mrb[207].mxu1  ;;  %v2338_v6 = vmul.f32 %v7932_v44, %v9106_v52 }
 0x4a0   : > { %4691 = vst [vmem:[%s6935_s24 + $0x868] sm:$0xff] %v3653_v37  ;;  %v3657_v21 = vadd.f32 %v3656_v15, %v2325_v24  ;;  %v2339_v24 = vmul.f32 %v7935_v26, %v9106_v52  ;;  %v9109_v52 = vld [vmem:[#allocation34_spill] sm:$0xff] }
 0x4a1   : > { %4697 = vst [vmem:[%s6935_s24 + $0x898] sm:$0xff] %v3655_v13  ;;  %4277 = vmatmul.mubr.bf16.gmra.mrb[56].mxu1 %v9103_v40  ;;  %v9108_v40 = vld [vmem:[#allocation81_spill] sm:$0xff] }
 0x4a2   : > { %4698 = vst [vmem:[%s6935_s24 + $0x8a0] sm:$0xff] %v3657_v21  ;;  %4284 = vmatprep.mubr.bf16.mxu1 %v9105_v59  ;;  %v9107_v21 = vld [vmem:[#allocation31_spill] sm:$0xff]  ;;  %v2345_v2 = vmul.f32 %v7932_v44, %v9108_v40 }
 0x4a4   : > { %v3660_v1 = vpop.f32.mrb[208].mxu1 }
 0x4a5   : > { %v3661_v54 = vadd.f32 %v3660_v1, %v2331_v31  ;;  %v3662_v12 = vpop.f32.mrb[209].mxu1  ;;  %v2346_v31 = vmul.f32 %v7935_v26, %v9108_v40 }
 0x4a6   : > { %v3663_v37 = vadd.f32 %v3662_v12, %v2332_v38  ;;  %v3664_v39 = vpop.f32.mrb[210].mxu1  ;;  %v9110_v38 = vld [vmem:[#allocation82_spill] sm:$0xff] }
 0x4a7   : > { %4704 = vst [vmem:[%s6935_s24 + $0x8d0] sm:$0xff] %v3661_v54  ;;  %v3665_v13 = vadd.f32 %v3664_v39, %v2338_v6  ;;  %v3666_v15 = vpop.f32.mrb[211].mxu1  ;;  %v2352_v6 = vmul.f32 %v7932_v44, %v9110_v38 }
 0x4a8   : > { %4705 = vst [vmem:[%s6935_s24 + $0x8d8] sm:$0xff] %v3663_v37  ;;  %v3667_v59 = vadd.f32 %v3666_v15, %v2339_v24  ;;  %v2353_v24 = vmul.f32 %v7935_v26, %v9110_v38  ;;  %v9113_v38 = vld [vmem:[#allocation36_spill] sm:$0xff] }
 0x4a9   : > { %4711 = vst [vmem:[%s6935_s24 + $0x908] sm:$0xff] %v3665_v13  ;;  %4285 = vmatmul.mubr.bf16.gmra.mrb[60].mxu1 %v9107_v21  ;;  %v9112_v21 = vld [vmem:[#allocation83_spill] sm:$0xff] }
 0x4aa   : > { %4712 = vst [vmem:[%s6935_s24 + $0x910] sm:$0xff] %v3667_v59  ;;  %4292 = vmatprep.mubr.bf16.mxu1 %v9109_v52  ;;  %v9111_v59 = vld [vmem:[#allocation33_spill] sm:$0xff]  ;;  %v2359_v40 = vmul.f32 %v7932_v44, %v9112_v21 }
 0x4ac   : > { %v3670_v1 = vpop.f32.mrb[212].mxu1 }
 0x4ad   : > { %v3671_v54 = vadd.f32 %v3670_v1, %v2345_v2  ;;  %v3672_v12 = vpop.f32.mrb[213].mxu1  ;;  %v2360_v2 = vmul.f32 %v7935_v26, %v9112_v21 }
 0x4ae   : > { %v3673_v37 = vadd.f32 %v3672_v12, %v2346_v31  ;;  %v3674_v39 = vpop.f32.mrb[214].mxu1  ;;  %v9114_v31 = vld [vmem:[#allocation84_spill] sm:$0xff] }
 0x4af   : > { %4718 = vst [vmem:[%s6935_s24 + $0x940] sm:$0xff] %v3671_v54  ;;  %v3675_v13 = vadd.f32 %v3674_v39, %v2352_v6  ;;  %v3676_v15 = vpop.f32.mrb[215].mxu1  ;;  %v2366_v6 = vmul.f32 %v7932_v44, %v9114_v31 }
 0x4b0   : > { %4719 = vst [vmem:[%s6935_s24 + $0x948] sm:$0xff] %v3673_v37  ;;  %v3677_v52 = vadd.f32 %v3676_v15, %v2353_v24  ;;  %v2367_v24 = vmul.f32 %v7935_v26, %v9114_v31  ;;  %v9117_v31 = vld [vmem:[#allocation38_spill] sm:$0xff] }
 0x4b1   : > { %4725 = vst [vmem:[%s6935_s24 + $0x978] sm:$0xff] %v3675_v13  ;;  %4293 = vmatmul.mubr.bf16.gmra.mrb[64].mxu1 %v9111_v59  ;;  %v9116_v59 = vld [vmem:[#allocation85_spill] sm:$0xff] }
 0x4b2   : > { %4726 = vst [vmem:[%s6935_s24 + $0x980] sm:$0xff] %v3677_v52  ;;  %4300 = vmatprep.mubr.bf16.mxu1 %v9113_v38  ;;  %v9115_v52 = vld [vmem:[#allocation35_spill] sm:$0xff]  ;;  %v2373_v21 = vmul.f32 %v7932_v44, %v9116_v59 }
 0x4b4   : > { %v3680_v1 = vpop.f32.mrb[216].mxu1 }
 0x4b5   : > { %v3681_v54 = vadd.f32 %v3680_v1, %v2359_v40  ;;  %v3682_v12 = vpop.f32.mrb[217].mxu1  ;;  %v2374_v40 = vmul.f32 %v7935_v26, %v9116_v59 }
 0x4b6   : > { %v3683_v37 = vadd.f32 %v3682_v12, %v2360_v2  ;;  %v3684_v39 = vpop.f32.mrb[218].mxu1  ;;  %v9118_v2 = vld [vmem:[#allocation86_spill] sm:$0xff] }
 0x4b7   : > { %4732 = vst [vmem:[%s6935_s24 + $0x9b0] sm:$0xff] %v3681_v54  ;;  %v3685_v13 = vadd.f32 %v3684_v39, %v2366_v6  ;;  %v3686_v15 = vpop.f32.mrb[219].mxu1  ;;  %v2380_v6 = vmul.f32 %v7932_v44, %v9118_v2 }
 0x4b8   : > { %4733 = vst [vmem:[%s6935_s24 + $0x9b8] sm:$0xff] %v3683_v37  ;;  %v3687_v38 = vadd.f32 %v3686_v15, %v2367_v24  ;;  %v2381_v24 = vmul.f32 %v7935_v26, %v9118_v2  ;;  %v9121_v2 = vld [vmem:[#allocation40_spill] sm:$0xff] }
 0x4b9   : > { %4739 = vst [vmem:[%s6935_s24 + $0x9e8] sm:$0xff] %v3685_v13  ;;  %4301 = vmatmul.mubr.bf16.gmra.mrb[68].mxu1 %v9115_v52  ;;  %v9120_v52 = vld [vmem:[#allocation87_spill] sm:$0xff] }
 0x4ba   : > { %4740 = vst [vmem:[%s6935_s24 + $0x9f0] sm:$0xff] %v3687_v38  ;;  %4308 = vmatprep.mubr.bf16.mxu1 %v9117_v31  ;;  %v9119_v38 = vld [vmem:[#allocation37_spill] sm:$0xff]  ;;  %v2387_v59 = vmul.f32 %v7932_v44, %v9120_v52 }
 0x4bc   : > { %v3690_v1 = vpop.f32.mrb[220].mxu1 }
 0x4bd   : > { %v3691_v54 = vadd.f32 %v3690_v1, %v2373_v21  ;;  %v3692_v12 = vpop.f32.mrb[221].mxu1  ;;  %v2388_v21 = vmul.f32 %v7935_v26, %v9120_v52 }
 0x4be   : > { %v3693_v37 = vadd.f32 %v3692_v12, %v2374_v40  ;;  %v3694_v39 = vpop.f32.mrb[222].mxu1  ;;  %v9122_v40 = vld [vmem:[#allocation88_spill] sm:$0xff] }
 0x4bf   : > { %4746 = vst [vmem:[%s6935_s24 + $0xa20] sm:$0xff] %v3691_v54  ;;  %v3695_v13 = vadd.f32 %v3694_v39, %v2380_v6  ;;  %v3696_v15 = vpop.f32.mrb[223].mxu1  ;;  %v2394_v6 = vmul.f32 %v7932_v44, %v9122_v40 }
 0x4c0   : > { %4747 = vst [vmem:[%s6935_s24 + $0xa28] sm:$0xff] %v3693_v37  ;;  %v3697_v31 = vadd.f32 %v3696_v15, %v2381_v24  ;;  %v2395_v24 = vmul.f32 %v7935_v26, %v9122_v40  ;;  %v9125_v40 = vld [vmem:[#allocation42_spill] sm:$0xff] }
 0x4c1   : > { %4753 = vst [vmem:[%s6935_s24 + $0xa58] sm:$0xff] %v3695_v13  ;;  %4309 = vmatmul.mubr.bf16.gmra.mrb[72].mxu1 %v9119_v38  ;;  %v9124_v38 = vld [vmem:[#allocation89_spill] sm:$0xff] }
 0x4c2   : > { %4754 = vst [vmem:[%s6935_s24 + $0xa60] sm:$0xff] %v3697_v31  ;;  %4316 = vmatprep.mubr.bf16.mxu1 %v9121_v2  ;;  %v9123_v31 = vld [vmem:[#allocation39_spill] sm:$0xff]  ;;  %v2401_v52 = vmul.f32 %v7932_v44, %v9124_v38 }
 0x4c4   : > { %v3700_v1 = vpop.f32.mrb[224].mxu1 }
 0x4c5   : > { %v3701_v54 = vadd.f32 %v3700_v1, %v2387_v59  ;;  %v3702_v12 = vpop.f32.mrb[225].mxu1  ;;  %v2402_v59 = vmul.f32 %v7935_v26, %v9124_v38 }
 0x4c6   : > { %v3703_v37 = vadd.f32 %v3702_v12, %v2388_v21  ;;  %v3704_v39 = vpop.f32.mrb[226].mxu1  ;;  %v9126_v21 = vld [vmem:[#allocation90_spill] sm:$0xff] }
 0x4c7   : > { %4760 = vst [vmem:[%s6935_s24 + $0xa90] sm:$0xff] %v3701_v54  ;;  %v3705_v13 = vadd.f32 %v3704_v39, %v2394_v6  ;;  %v3706_v15 = vpop.f32.mrb[227].mxu1  ;;  %v2408_v6 = vmul.f32 %v7932_v44, %v9126_v21 }
 0x4c8   : > { %4761 = vst [vmem:[%s6935_s24 + $0xa98] sm:$0xff] %v3703_v37  ;;  %v3707_v2 = vadd.f32 %v3706_v15, %v2395_v24  ;;  %v2409_v24 = vmul.f32 %v7935_v26, %v9126_v21  ;;  %v9129_v21 = vld [vmem:[#allocation44_spill] sm:$0xff] }
 0x4c9   : > { %4767 = vst [vmem:[%s6935_s24 + $0xac8] sm:$0xff] %v3705_v13  ;;  %4317 = vmatmul.mubr.bf16.gmra.mrb[76].mxu1 %v9123_v31  ;;  %v9128_v31 = vld [vmem:[#allocation91_spill] sm:$0xff] }
 0x4ca   : > { %4768 = vst [vmem:[%s6935_s24 + $0xad0] sm:$0xff] %v3707_v2  ;;  %4324 = vmatprep.mubr.bf16.mxu1 %v9125_v40  ;;  %v9127_v2 = vld [vmem:[#allocation41_spill] sm:$0xff]  ;;  %v2415_v38 = vmul.f32 %v7932_v44, %v9128_v31 }
 0x4cc   : > { %v3710_v1 = vpop.f32.mrb[228].mxu1 }
 0x4cd   : > { %v3711_v54 = vadd.f32 %v3710_v1, %v2401_v52  ;;  %v3712_v12 = vpop.f32.mrb[229].mxu1  ;;  %v2416_v52 = vmul.f32 %v7935_v26, %v9128_v31 }
 0x4ce   : > { %v3713_v37 = vadd.f32 %v3712_v12, %v2402_v59  ;;  %v3714_v39 = vpop.f32.mrb[230].mxu1  ;;  %v9130_v59 = vld [vmem:[#allocation92_spill] sm:$0xff] }
 0x4cf   : > { %4774 = vst [vmem:[%s6935_s24 + $0xb00] sm:$0xff] %v3711_v54  ;;  %v3715_v13 = vadd.f32 %v3714_v39, %v2408_v6  ;;  %v3716_v15 = vpop.f32.mrb[231].mxu1  ;;  %v2422_v6 = vmul.f32 %v7932_v44, %v9130_v59 }
 0x4d0   : > { %4775 = vst [vmem:[%s6935_s24 + $0xb08] sm:$0xff] %v3713_v37  ;;  %v3717_v40 = vadd.f32 %v3716_v15, %v2409_v24  ;;  %v2423_v24 = vmul.f32 %v7935_v26, %v9130_v59  ;;  %v9132_v59 = vld [vmem:[#allocation46_spill] sm:$0xff] }
 0x4d1   : > { %4781 = vst [vmem:[%s6935_s24 + $0xb38] sm:$0xff] %v3715_v13  ;;  %4325 = vmatmul.mubr.bf16.gmra.mrb[80].mxu1 %v9127_v2  ;;  %v2429_v2 = vmul.f32 %v7932_v44, %v7778_v20 }
 0x4d2   : > { %4782 = vst [vmem:[%s6935_s24 + $0xb40] sm:$0xff] %v3717_v40  ;;  %4332 = vmatprep.mubr.bf16.mxu1 %v9129_v21  ;;  %v9131_v40 = vld [vmem:[#allocation43_spill] sm:$0xff] }
 0x4d4   : > { %v3720_v1 = vpop.f32.mrb[232].mxu1 }
 0x4d5   : > { %v3721_v54 = vadd.f32 %v3720_v1, %v2415_v38  ;;  %v3722_v12 = vpop.f32.mrb[233].mxu1  ;;  %v2430_v38 = vmul.f32 %v7935_v26, %v7778_v20  ;;  %v2437_v1 = vmul.f32 %v7935_v26, %v7788_v56 }
 0x4d6   : > { %v3723_v37 = vadd.f32 %v3722_v12, %v2416_v52  ;;  %v3724_v39 = vpop.f32.mrb[234].mxu1  ;;  %v2436_v52 = vmul.f32 %v7932_v44, %v7788_v56 }
 0x4d7   : > { %4788 = vst [vmem:[%s6935_s24 + $0xb70] sm:$0xff] %v3721_v54  ;;  %v3725_v13 = vadd.f32 %v3724_v39, %v2422_v6  ;;  %v3726_v15 = vpop.f32.mrb[235].mxu1 }
 0x4d8   : > { %4789 = vst [vmem:[%s6935_s24 + $0xb78] sm:$0xff] %v3723_v37  ;;  %v3727_v21 = vadd.f32 %v3726_v15, %v2423_v24  ;;  %v9133_v15 = vld [vmem:[#allocation45_spill] sm:$0xff] }
 0x4d9   : > { %4795 = vst [vmem:[%s6935_s24 + $0xba8] sm:$0xff] %v3725_v13  ;;  %4333 = vmatmul.mubr.bf16.gmra.mrb[84].mxu1 %v9131_v40  ;;  %v9134_v40 = vld [vmem:[#allocation48_spill] sm:$0xff] }
 0x4da   : > { %4796 = vst [vmem:[%s6935_s24 + $0xbb0] sm:$0xff] %v3727_v21  ;;  %4340 = vmatprep.mubr.bf16.mxu1 %v9132_v59  ;;  %v2443_v21 = vmul.f32 %v7932_v44, %v7808_v49 }
 0x4dc   : > { %v3730_v6 = vpop.f32.mrb[236].mxu1 }
 0x4dd   : > { %v3731_v24 = vadd.f32 %v3730_v6, %v2429_v2  ;;  %v3732_v54 = vpop.f32.mrb[237].mxu1  ;;  %v2444_v2 = vmul.f32 %v7935_v26, %v7808_v49  ;;  %v2451_v6 = vmul.f32 %v7935_v26, %v7818_v17 }
 0x4de   : > { %v3733_v12 = vadd.f32 %v3732_v54, %v2430_v38  ;;  %v3734_v37 = vpop.f32.mrb[238].mxu1  ;;  %v2450_v38 = vmul.f32 %v7932_v44, %v7818_v17 }
 0x4df   : > { %4802 = vst [vmem:[%s6935_s24 + $0xbe0] sm:$0xff] %v3731_v24  ;;  %v3735_v39 = vadd.f32 %v3734_v37, %v2436_v52  ;;  %v3736_v13 = vpop.f32.mrb[239].mxu1 }
 0x4e0   : > { %4803 = vst [vmem:[%s6935_s24 + $0xbe8] sm:$0xff] %v3733_v12  ;;  %v3737_v59 = vadd.f32 %v3736_v13, %v2437_v1 }
 0x4e1   : > { %4809 = vst [vmem:[%s6935_s24 + $0xc18] sm:$0xff] %v3735_v39  ;;  %4341 = vmatmul.mubr.bf16.gmra.mrb[88].mxu1 %v9133_v15  ;;  %v2457_v15 = vmul.f32 %v7932_v44, %v7838_v34 }
 0x4e2   : > { %4810 = vst [vmem:[%s6935_s24 + $0xc20] sm:$0xff] %v3737_v59  ;;  %4348 = vmatprep.mubr.bf16.mxu1 %v9134_v40  ;;  %v9135_v59 = vld [vmem:[#allocation47_spill] sm:$0xff]  ;;  %v9136_v40 = vld [vmem:[#allocation50_spill] sm:$0xff] }
 0x4e4   : > { %v3740_v52 = vpop.f32.mrb[240].mxu1 }
 0x4e5   : > { %v3741_v1 = vadd.f32 %v3740_v52, %v2443_v21  ;;  %v3742_v24 = vpop.f32.mrb[241].mxu1  ;;  %v2458_v21 = vmul.f32 %v7935_v26, %v7838_v34  ;;  %v2465_v52 = vmul.f32 %v7935_v26, %v7848_v55 }
 0x4e6   : > { %v3743_v54 = vadd.f32 %v3742_v24, %v2444_v2  ;;  %v3744_v12 = vpop.f32.mrb[242].mxu1  ;;  %v2464_v2 = vmul.f32 %v7932_v44, %v7848_v55 }
 0x4e7   : > { %4816 = vst [vmem:[%s6935_s24 + $0xc50] sm:$0xff] %v3741_v1  ;;  %v3745_v37 = vadd.f32 %v3744_v12, %v2450_v38  ;;  %v3746_v39 = vpop.f32.mrb[243].mxu1 }
 0x4e8   : > { %4817 = vst [vmem:[%s6935_s24 + $0xc58] sm:$0xff] %v3743_v54  ;;  %v3747_v13 = vadd.f32 %v3746_v39, %v2451_v6 }
 0x4e9   : > { %4823 = vst [vmem:[%s6935_s24 + $0xc88] sm:$0xff] %v3745_v37  ;;  %4349 = vmatmul.mubr.bf16.gmra.mrb[92].mxu1 %v9135_v59  ;;  %v2471_v59 = vmul.f32 %v7932_v44, %v7868_v48 }
 0x4ea   : > { %4824 = vst [vmem:[%s6935_s24 + $0xc90] sm:$0xff] %v3747_v13  ;;  %4356 = vmatprep.mubr.bf16.mxu1 %v9136_v40  ;;  %v9137_v13 = vld [vmem:[#allocation49_spill] sm:$0xff] }
 0x4eb   : > { %v9138_v40 = vld [vmem:[#allocation53_spill] sm:$0xff] }
 0x4ec   : > { %v3750_v38 = vpop.f32.mrb[244].mxu1 }
 0x4ed   : > { %v3751_v6 = vadd.f32 %v3750_v38, %v2457_v15  ;;  %v3752_v1 = vpop.f32.mrb[245].mxu1  ;;  %v2472_v15 = vmul.f32 %v7935_v26, %v7868_v48  ;;  %v2479_v38 = vmul.f32 %v7935_v26, %v7878_v27 }
 0x4ee   : > { %v3753_v24 = vadd.f32 %v3752_v1, %v2458_v21  ;;  %v3754_v54 = vpop.f32.mrb[246].mxu1  ;;  %v2478_v21 = vmul.f32 %v7932_v44, %v7878_v27 }
 0x4ef   : > { %4830 = vst [vmem:[%s6935_s24 + $0xcc0] sm:$0xff] %v3751_v6  ;;  %v3755_v12 = vadd.f32 %v3754_v54, %v2464_v2  ;;  %v3756_v37 = vpop.f32.mrb[247].mxu1 }
 0x4f0   : > { %4831 = vst [vmem:[%s6935_s24 + $0xcc8] sm:$0xff] %v3753_v24  ;;  %v3757_v39 = vadd.f32 %v3756_v37, %v2465_v52 }
 0x4f1   : > { %4837 = vst [vmem:[%s6935_s24 + $0xcf8] sm:$0xff] %v3755_v12  ;;  %4357 = vmatmul.mubr.bf16.gmra.mrb[96].mxu1 %v9137_v13  ;;  %v2485_v13 = vmul.f32 %v7932_v44, %v7898_v25 }
 0x4f2   : > { %4838 = vst [vmem:[%s6935_s24 + $0xd00] sm:$0xff] %v3757_v39  ;;  %4364 = vmatprep.mubr.bf16.mxu1 %v9138_v40  ;;  %v9139_v39 = vld [vmem:[#allocation51_spill] sm:$0xff]  ;;  %v9140_v40 = vld [vmem:[#allocation52_spill] sm:$0xff] }
 0x4f3   : > { %v2040_v48 = vsub.s32 6, %v9140_v40  ;;  %v9142_v40 = vld [vmem:[#allocation55_spill] sm:$0xff] }
 0x4f4   : > { %v3760_v2 = vpop.f32.mrb[248].mxu1 }
 0x4f5   : > { %v3761_v52 = vadd.f32 %v3760_v2, %v2471_v59  ;;  %v3762_v6 = vpop.f32.mrb[249].mxu1  ;;  %v9141_v59 = vld [vmem:[#allocation56_spill] sm:$0xff] }
 0x4f6   : > { %v3763_v1 = vadd.f32 %v3762_v6, %v2472_v15  ;;  %v3764_v24 = vpop.f32.mrb[250].mxu1  ;;  %v2486_v15 = vmul.f32 %v7935_v26, %v7898_v25 }
 0x4f7   : > { %4844 = vst [vmem:[%s6935_s24 + $0xd30] sm:$0xff] %v3761_v52  ;;  %v3765_v54 = vadd.f32 %v3764_v24, %v2478_v21  ;;  %v3766_v12 = vpop.f32.mrb[251].mxu1  ;;  %v2492_v21 = vmul.f32 %v7932_v44, %v7908_v47 }
 0x4f8   : > { %4845 = vst [vmem:[%s6935_s24 + $0xd38] sm:$0xff] %v3763_v1  ;;  %v3767_v37 = vadd.f32 %v3766_v12, %v2479_v38  ;;  %v2493_v38 = vmul.f32 %v7935_v26, %v7908_v47  ;;  %v5428_v1 = vld [vmem:[%s8737_s4] sm:$0x7f] }
 0x4f9   : > { %4851 = vst [vmem:[%s6935_s24 + $0xd68] sm:$0xff] %v3765_v54  ;;  %4365 = vmatmul.mubr.bf16.gmra.mrb[100].mxu1 %v9139_v39  ;;  %v8451_v24 = vrot.slane %v5428_v1, %v2040_v48  ;;  %v9143_v26 = vld [vmem:[#allocation54_spill] sm:$0xff] }
 0x4fa   : > { %4852 = vst [vmem:[%s6935_s24 + $0xd70] sm:$0xff] %v3767_v37  ;;  %4372 = vmatprep.mubr.bf16.mxu1 %v9141_v59  ;;  %v9144_v59 = vld [vmem:[#allocation59_spill] sm:$0xff]  ;;  %v9145_v1 = vld [vmem:[#allocation58_spill] sm:$0xff] }
 0x4fb   : > { %v2062_v48 = vmul.f32 %v8451_v24, %v9055_v4  ;;  %v2076_v4 = vmul.f32 %v8451_v24, %v9057_v62  ;;  %v2090_v62 = vmul.f32 %v8451_v24, %v6972_v45 }
 0x4fc   : > { %v3770_v2 = vpop.f32.mrb[252].mxu1 }
 0x4fd   : > { %v3771_v52 = vadd.f32 %v3770_v2, %v2485_v13  ;;  %v3772_v6 = vpop.f32.mrb[253].mxu1  ;;  %v2055_v13 = vmul.f32 %v8451_v24, %v9143_v26 }
 0x4fe   : > { %v3773_v54 = vadd.f32 %v3772_v6, %v2486_v15  ;;  %v3774_v12 = vpop.f32.mrb[254].mxu1 }
 0x4ff   : > { %4858 = vst [vmem:[%s6935_s24 + $0xda0] sm:$0xff] %v3771_v52  ;;  %v3775_v37 = vadd.f32 %v3774_v12, %v2492_v21  ;;  %v3776_v39 = vpop.f32.mrb[255].mxu1  ;;  %v9146_v12 = vld [vmem:[#allocation61_spill] sm:$0xff] }
 0x500   : > { %4859 = vst [vmem:[%s6935_s24 + $0xda8] sm:$0xff] %v3773_v54  ;;  %v3777_v44 = vadd.f32 %v3776_v39, %v2493_v38  ;;  %v2069_v54 = vmul.f32 %v8451_v24, %v9145_v1 }
 0x501   : > { %4865 = vst [vmem:[%s6935_s24 + $0xdd8] sm:$0xff] %v3775_v37  ;;  %4373 = vmatmul.mubr.bf16.gmra.mrb[104].mxu1 %v9142_v40 }
 0x502   : > { %4866 = vst [vmem:[%s6935_s24 + $0xde0] sm:$0xff] %v3777_v44  ;;  %4380 = vmatprep.mubr.bf16.mxu1 %v9144_v59 }
 0x504   : > { %v4166_v15 = vpop.f32.mrb[0].mxu1 }
 0x505   : > { %v4167_v21 = vadd.f32 %v4166_v15, %v2055_v13  ;;  %v4168_v2 = vpop.f32.mrb[1].mxu1 }
 0x506   : > { %v4169_v52 = vpop.f32.mrb[2].mxu1 }
 0x507   : > { %4428 = vst.msk [vmem:[%s6935_s24 + $0x30] sm:$0xff] %vm4427_vm0, %v4167_v21  ;;  %v4170_v38 = vadd.f32 %v4169_v52, %v2062_v48  ;;  %v4171_v6 = vpop.f32.mrb[3].mxu1 }
 0x509   : > { %4435 = vst.msk [vmem:[%s6935_s24 + $0x68] sm:$0xff] %vm4427_vm0, %v4170_v38  ;;  %4381 = vmatmul.mubr.bf16.gmra.mrb[108].mxu1 %v6939_v0  ;;  %v2083_v0 = vmul.f32 %v8451_v24, %v6965_v32  ;;  %v2097_v32 = vmul.f32 %v8451_v24, %v6989_v61  ;;  %v2111_v61 = vmul.f32 %v8451_v24, %v7013_v43 }
 0x50a   : > { %4388 = vmatprep.mubr.bf16.mxu1 %v9146_v12  ;;  %v2132_v43 = vmul.f32 %v8451_v24, %v7056_v46 }
 0x50c   : > { %v4174_v37 = vpop.f32.mrb[4].mxu1 }
 0x50d   : > { %v4175_v39 = vadd.f32 %v4174_v37, %v2069_v54  ;;  %v4176_v44 = vpop.f32.mrb[5].mxu1 }
 0x50e   : > { %v4177_v40 = vpop.f32.mrb[6].mxu1 }
 0x50f   : > { %4442 = vst.msk [vmem:[%s6935_s24 + $0xa0] sm:$0xff] %vm4427_vm0, %v4175_v39  ;;  %v4178_v26 = vadd.f32 %v4177_v40, %v2076_v4  ;;  %v4179_v13 = vpop.f32.mrb[7].mxu1 }
 0x511   : > { %4449 = vst.msk [vmem:[%s6935_s24 + $0xd8] sm:$0xff] %vm4427_vm0, %v4178_v26  ;;  %4389 = vmatmul.mubr.bf16.gmra.mrb[112].mxu1 %v6961_v7  ;;  %v2104_v7 = vmul.f32 %v8451_v24, %v6996_v16 }
 0x512   : > { %4396 = vmatprep.mubr.bf16.mxu1 %v6987_v53 }
 0x514   : > { %v4182_v59 = vpop.f32.mrb[8].mxu1 }
 0x515   : > { %v4183_v48 = vadd.f32 %v4182_v59, %v2083_v0  ;;  %v4184_v15 = vpop.f32.mrb[9].mxu1 }
 0x516   : > { %v4185_v21 = vpop.f32.mrb[10].mxu1 }
 0x517   : > { %4456 = vst.msk [vmem:[%s6935_s24 + $0x110] sm:$0xff] %vm4427_vm0, %v4183_v48  ;;  %v4186_v2 = vadd.f32 %v4185_v21, %v2090_v62  ;;  %v4187_v52 = vpop.f32.mrb[11].mxu1  ;;  %v2153_v21 = vmul.f32 %v8451_v24, %v7115_v14  ;;  %v2174_v14 = vmul.f32 %v8451_v24, %v7171_v60 }
 0x519   : > { %4463 = vst.msk [vmem:[%s6935_s24 + $0x148] sm:$0xff] %vm4427_vm0, %v4186_v2  ;;  %4397 = vmatmul.mubr.bf16.gmra.mrb[116].mxu1 %v6985_v19  ;;  %v2118_v19 = vmul.f32 %v8451_v24, %v7021_v51 }
 0x51a   : > { %4404 = vmatprep.mubr.bf16.mxu1 %v7011_v3 }
 0x51c   : > { %v4190_v45 = vpop.f32.mrb[12].mxu1 }
 0x51d   : > { %v4191_v53 = vadd.f32 %v4190_v45, %v2097_v32  ;;  %v4192_v38 = vpop.f32.mrb[13].mxu1 }
 0x51e   : > { %v4193_v6 = vpop.f32.mrb[14].mxu1 }
 0x51f   : > { %4470 = vst.msk [vmem:[%s6935_s24 + $0x180] sm:$0xff] %vm4427_vm0, %v4191_v53  ;;  %v4194_v1 = vadd.f32 %v4193_v6, %v2104_v7  ;;  %v4195_v54 = vpop.f32.mrb[15].mxu1  ;;  %v2167_v53 = vmul.f32 %v8451_v24, %v7155_v8  ;;  %v2188_v8 = vmul.f32 %v8451_v24, %v7211_v42 }
 0x521   : > { %4477 = vst.msk [vmem:[%s6935_s24 + $0x1b8] sm:$0xff] %vm4427_vm0, %v4194_v1  ;;  %4405 = vmatmul.mubr.bf16.gmra.mrb[120].mxu1 %v7009_v63 }
 0x522   : > { %4412 = vmatprep.mubr.bf16.mxu1 %v7043_v41  ;;  %v2125_v41 = vmul.f32 %v8451_v24, %v7045_v9  ;;  %v2146_v9 = vmul.f32 %v8451_v24, %v7091_v5 }
 0x524   : > { %v4198_v16 = vpop.f32.mrb[16].mxu1 }
 0x525   : > { %v4199_v3 = vadd.f32 %v4198_v16, %v2111_v61  ;;  %v4200_v12 = vpop.f32.mrb[17].mxu1 }
 0x526   : > { %v4201_v4 = vpop.f32.mrb[18].mxu1 }
 0x527   : > { %4484 = vst.msk [vmem:[%s6935_s24 + $0x1f0] sm:$0xff] %vm4427_vm0, %v4199_v3  ;;  %v4202_v37 = vadd.f32 %v4201_v4, %v2118_v19  ;;  %v4203_v39 = vpop.f32.mrb[19].mxu1  ;;  %v2181_v19 = vmul.f32 %v8451_v24, %v7195_v23  ;;  %v2202_v23 = vmul.f32 %v8451_v24, %v7250_v57 }
 0x528   : > { %v2195_v39 = vmul.f32 %v8451_v24, %v7235_v30  ;;  %v2216_v30 = vmul.f32 %v8451_v24, %v9071_v10 }
 0x529   : > { %4491 = vst.msk [vmem:[%s6935_s24 + $0x228] sm:$0xff] %vm4427_vm0, %v4202_v37  ;;  %4413 = vmatmul.mubr.bf16.gmra.mrb[124].mxu1 %v7041_v18  ;;  %v2139_v18 = vmul.f32 %v8451_v24, %v7076_v58  ;;  %v2160_v58 = vmul.f32 %v8451_v24, %v7131_v50 }
 0x52c   : > { %v4206_v63 = vpop.f32.mrb[20].mxu1 }
 0x52d   : > { %v4207_v51 = vadd.f32 %v4206_v63, %v2125_v41  ;;  %v4208_v44 = vpop.f32.mrb[21].mxu1 }
 0x52e   : > { %v4209_v40 = vpop.f32.mrb[22].mxu1 }
 0x52f   : > { %4498 = vst.msk [vmem:[%s6935_s24 + $0x260] sm:$0xff] %vm4427_vm0, %v4207_v51  ;;  %v4210_v26 = vadd.f32 %v4209_v40, %v2132_v43  ;;  %v4211_v13 = vpop.f32.mrb[23].mxu1  ;;  %v2209_v40 = vmul.f32 %v8451_v24, %v9069_v33  ;;  %v2230_v33 = vmul.f32 %v8451_v24, %v9075_v22 }
 0x531   : > { %4505 = vst.msk [vmem:[%s6935_s24 + $0x298] sm:$0xff] %vm4427_vm0, %v4210_v26 }
 0x534   : > { %v4214_v0 = vpop.f32.mrb[24].mxu1 }
 0x535   : > { %v4215_v46 = vadd.f32 %v4214_v0, %v2139_v18  ;;  %v4216_v62 = vpop.f32.mrb[25].mxu1 }
 0x536   : > { %v4217_v59 = vpop.f32.mrb[26].mxu1 }
 0x537   : > { %4512 = vst.msk [vmem:[%s6935_s24 + $0x2d0] sm:$0xff] %vm4427_vm0, %v4215_v46  ;;  %v4218_v48 = vadd.f32 %v4217_v59, %v2146_v9  ;;  %v4219_v15 = vpop.f32.mrb[27].mxu1  ;;  %v2223_v46 = vmul.f32 %v8451_v24, %v9073_v28  ;;  %v2244_v28 = vmul.f32 %v8451_v24, %v9078_v11 }
 0x539   : > { %4519 = vst.msk [vmem:[%s6935_s24 + $0x308] sm:$0xff] %vm4427_vm0, %v4218_v48 }
 0x53c   : > { %v4222_v2 = vpop.f32.mrb[28].mxu1 }
 0x53d   : > { %v4223_v5 = vadd.f32 %v4222_v2, %v2153_v21  ;;  %v4224_v52 = vpop.f32.mrb[29].mxu1 }
 0x53e   : > { %v4225_v32 = vpop.f32.mrb[30].mxu1 }
 0x53f   : > { %4526 = vst.msk [vmem:[%s6935_s24 + $0x340] sm:$0xff] %vm4427_vm0, %v4223_v5  ;;  %v4226_v7 = vadd.f32 %v4225_v32, %v2160_v58  ;;  %v4227_v45 = vpop.f32.mrb[31].mxu1  ;;  %v2237_v58 = vmul.f32 %v8451_v24, %v7342_v29  ;;  %v2258_v29 = vmul.f32 %v8451_v24, %v9082_v36 }
 0x540   : > { %v2251_v45 = vmul.f32 %v8451_v24, %v9080_v35 }
 0x541   : > { %4533 = vst.msk [vmem:[%s6935_s24 + $0x378] sm:$0xff] %vm4427_vm0, %v4226_v7 }
 0x544   : > { %v4230_v38 = vpop.f32.mrb[32].mxu1 }
 0x545   : > { %v4231_v50 = vadd.f32 %v4230_v38, %v2167_v53  ;;  %v4232_v6 = vpop.f32.mrb[33].mxu1 }
 0x546   : > { %v4233_v1 = vpop.f32.mrb[34].mxu1 }
 0x547   : > { %4540 = vst.msk [vmem:[%s6935_s24 + $0x3b0] sm:$0xff] %vm4427_vm0, %v4231_v50  ;;  %v4234_v54 = vadd.f32 %v4233_v1, %v2174_v14  ;;  %v4235_v61 = vpop.f32.mrb[35].mxu1  ;;  %v9147_v1 = vld [vmem:[#allocation69_spill] sm:$0xff] }
 0x548   : > { %v9148_v61 = vld [vmem:[#allocation70_spill] sm:$0xff] }
 0x549   : > { %4547 = vst.msk [vmem:[%s6935_s24 + $0x3e8] sm:$0xff] %vm4427_vm0, %v4234_v54  ;;  %v2265_v54 = vmul.f32 %v8451_v24, %v9147_v1  ;;  %v2272_v35 = vmul.f32 %v8451_v24, %v9148_v61  ;;  %v9158_v61 = vld [vmem:[#allocation80_spill] sm:$0xff] }
 0x54c   : > { %v4238_v16 = vpop.f32.mrb[36].mxu1 }
 0x54d   : > { %v4239_v60 = vadd.f32 %v4238_v16, %v2181_v19  ;;  %v4240_v3 = vpop.f32.mrb[37].mxu1 }
 0x54e   : > { %v4241_v12 = vpop.f32.mrb[38].mxu1 }
 0x54f   : > { %4554 = vst.msk [vmem:[%s6935_s24 + $0x420] sm:$0xff] %vm4427_vm0, %v4239_v60  ;;  %v4242_v4 = vadd.f32 %v4241_v12, %v2188_v8  ;;  %v4243_v37 = vpop.f32.mrb[39].mxu1  ;;  %v9149_v12 = vld [vmem:[#allocation71_spill] sm:$0xff] }
 0x551   : > { %4561 = vst.msk [vmem:[%s6935_s24 + $0x458] sm:$0xff] %vm4427_vm0, %v4242_v4  ;;  %v2279_v4 = vmul.f32 %v8451_v24, %v9149_v12 }
 0x554   : > { %v4246_v41 = vpop.f32.mrb[40].mxu1 }
 0x555   : > { %v4247_v42 = vadd.f32 %v4246_v41, %v2195_v39  ;;  %v4248_v43 = vpop.f32.mrb[41].mxu1  ;;  %v9150_v41 = vld [vmem:[#allocation72_spill] sm:$0xff] }
 0x556   : > { %v4249_v63 = vpop.f32.mrb[42].mxu1 }
 0x557   : > { %4568 = vst.msk [vmem:[%s6935_s24 + $0x490] sm:$0xff] %vm4427_vm0, %v4247_v42  ;;  %v4250_v51 = vadd.f32 %v4249_v63, %v2202_v23  ;;  %v4251_v44 = vpop.f32.mrb[43].mxu1  ;;  %v2286_v42 = vmul.f32 %v8451_v24, %v9150_v41 }
 0x558   : > { %v9151_v44 = vld [vmem:[#allocation73_spill] sm:$0xff] }
 0x559   : > { %4575 = vst.msk [vmem:[%s6935_s24 + $0x4c8] sm:$0xff] %vm4427_vm0, %v4250_v51 }
 0x55c   : > { %v4254_v26 = vpop.f32.mrb[44].mxu1 }
 0x55d   : > { %v4255_v57 = vadd.f32 %v4254_v26, %v2209_v40  ;;  %v4256_v13 = vpop.f32.mrb[45].mxu1  ;;  %v2293_v40 = vmul.f32 %v8451_v24, %v9151_v44 }
 0x55e   : > { %v4257_v18 = vpop.f32.mrb[46].mxu1  ;;  %v9152_v13 = vld [vmem:[#allocation74_spill] sm:$0xff] }
 0x55f   : > { %4582 = vst.msk [vmem:[%s6935_s24 + $0x500] sm:$0xff] %vm4427_vm0, %v4255_v57  ;;  %v4258_v9 = vadd.f32 %v4257_v18, %v2216_v30  ;;  %v4259_v0 = vpop.f32.mrb[47].mxu1  ;;  %v2300_v18 = vmul.f32 %v8451_v24, %v9152_v13 }
 0x561   : > { %4589 = vst.msk [vmem:[%s6935_s24 + $0x538] sm:$0xff] %vm4427_vm0, %v4258_v9 }
 0x564   : > { %v4262_v62 = vpop.f32.mrb[48].mxu1 }
 0x565   : > { %v4263_v10 = vadd.f32 %v4262_v62, %v2223_v46  ;;  %v4264_v59 = vpop.f32.mrb[49].mxu1 }
 0x566   : > { %v4265_v48 = vpop.f32.mrb[50].mxu1 }
 0x567   : > { %4596 = vst.msk [vmem:[%s6935_s24 + $0x570] sm:$0xff] %vm4427_vm0, %v4263_v10  ;;  %v4266_v15 = vadd.f32 %v4265_v48, %v2230_v33  ;;  %v4267_v21 = vpop.f32.mrb[51].mxu1  ;;  %v9153_v33 = vld [vmem:[#allocation75_spill] sm:$0xff] }
 0x568   : > { %v2307_v62 = vmul.f32 %v8451_v24, %v9153_v33 }
 0x569   : > { %4603 = vst.msk [vmem:[%s6935_s24 + $0x5a8] sm:$0xff] %vm4427_vm0, %v4266_v15  ;;  %v9154_v15 = vld [vmem:[#allocation76_spill] sm:$0xff] }
 0x56a   : > { %v2314_v21 = vmul.f32 %v8451_v24, %v9154_v15 }
 0x56c   : > { %v4270_v2 = vpop.f32.mrb[52].mxu1 }
 0x56d   : > { %v4271_v22 = vadd.f32 %v4270_v2, %v2237_v58  ;;  %v4272_v5 = vpop.f32.mrb[53].mxu1 }
 0x56e   : > { %v4273_v52 = vpop.f32.mrb[54].mxu1 }
 0x56f   : > { %4610 = vst.msk [vmem:[%s6935_s24 + $0x5e0] sm:$0xff] %vm4427_vm0, %v4271_v22  ;;  %v4274_v32 = vadd.f32 %v4273_v52, %v2244_v28  ;;  %v4275_v7 = vpop.f32.mrb[55].mxu1  ;;  %v9155_v22 = vld [vmem:[#allocation77_spill] sm:$0xff] }
 0x570   : > { %v2321_v5 = vmul.f32 %v8451_v24, %v9155_v22 }
 0x571   : > { %4617 = vst.msk [vmem:[%s6935_s24 + $0x618] sm:$0xff] %vm4427_vm0, %v4274_v32 }
 0x574   : > { %v4278_v53 = vpop.f32.mrb[56].mxu1 }
 0x575   : > { %v4279_v11 = vadd.f32 %v4278_v53, %v2251_v45  ;;  %v4280_v14 = vpop.f32.mrb[57].mxu1  ;;  %v9156_v45 = vld [vmem:[#allocation78_spill] sm:$0xff] }
 0x576   : > { %v4281_v38 = vpop.f32.mrb[58].mxu1 }
 0x577   : > { %4624 = vst.msk [vmem:[%s6935_s24 + $0x650] sm:$0xff] %vm4427_vm0, %v4279_v11  ;;  %v4282_v50 = vadd.f32 %v4281_v38, %v2258_v29  ;;  %v4283_v6 = vpop.f32.mrb[59].mxu1  ;;  %v2328_v29 = vmul.f32 %v8451_v24, %v9156_v45  ;;  %v9157_v38 = vld [vmem:[#allocation79_spill] sm:$0xff] }
 0x579   : > { %4631 = vst.msk [vmem:[%s6935_s24 + $0x688] sm:$0xff] %vm4427_vm0, %v4282_v50  ;;  %v2335_v50 = vmul.f32 %v8451_v24, %v9157_v38 }
 0x57c   : > { %v4286_v19 = vpop.f32.mrb[60].mxu1 }
 0x57d   : > { %v4287_v36 = vadd.f32 %v4286_v19, %v2265_v54  ;;  %v4288_v8 = vpop.f32.mrb[61].mxu1 }
 0x57e   : > { %v4289_v16 = vpop.f32.mrb[62].mxu1 }
 0x57f   : > { %4638 = vst.msk [vmem:[%s6935_s24 + $0x6c0] sm:$0xff] %vm4427_vm0, %v4287_v36  ;;  %v4290_v60 = vadd.f32 %v4289_v16, %v2272_v35  ;;  %v4291_v3 = vpop.f32.mrb[63].mxu1  ;;  %v2342_v35 = vmul.f32 %v8451_v24, %v9158_v61  ;;  %v9159_v16 = vld [vmem:[#allocation81_spill] sm:$0xff] }
 0x581   : > { %4645 = vst.msk [vmem:[%s6935_s24 + $0x6f8] sm:$0xff] %vm4427_vm0, %v4290_v60  ;;  %v2349_v60 = vmul.f32 %v8451_v24, %v9159_v16 }
 0x584   : > { %v4294_v37 = vpop.f32.mrb[64].mxu1 }
 0x585   : > { %v4295_v39 = vadd.f32 %v4294_v37, %v2279_v4  ;;  %v4296_v23 = vpop.f32.mrb[65].mxu1  ;;  %v9160_v37 = vld [vmem:[#allocation82_spill] sm:$0xff] }
 0x586   : > { %v4297_v43 = vpop.f32.mrb[66].mxu1 }
 0x587   : > { %4652 = vst.msk [vmem:[%s6935_s24 + $0x730] sm:$0xff] %vm4427_vm0, %v4295_v39  ;;  %v4298_v63 = vadd.f32 %v4297_v43, %v2286_v42  ;;  %v4299_v51 = vpop.f32.mrb[67].mxu1  ;;  %v2356_v39 = vmul.f32 %v8451_v24, %v9160_v37  ;;  %v9161_v43 = vld [vmem:[#allocation83_spill] sm:$0xff] }
 0x589   : > { %4659 = vst.msk [vmem:[%s6935_s24 + $0x768] sm:$0xff] %vm4427_vm0, %v4298_v63  ;;  %v2363_v63 = vmul.f32 %v8451_v24, %v9161_v43 }
 0x58c   : > { %v4302_v30 = vpop.f32.mrb[68].mxu1 }
 0x58d   : > { %v4303_v26 = vadd.f32 %v4302_v30, %v2293_v40  ;;  %v4304_v57 = vpop.f32.mrb[69].mxu1  ;;  %v9162_v30 = vld [vmem:[#allocation84_spill] sm:$0xff] }
 0x58e   : > { %v4305_v9 = vpop.f32.mrb[70].mxu1 }
 0x58f   : > { %4666 = vst.msk [vmem:[%s6935_s24 + $0x7a0] sm:$0xff] %vm4427_vm0, %v4303_v26  ;;  %v4306_v0 = vadd.f32 %v4305_v9, %v2300_v18  ;;  %v4307_v46 = vpop.f32.mrb[71].mxu1  ;;  %v2370_v26 = vmul.f32 %v8451_v24, %v9162_v30  ;;  %v9163_v9 = vld [vmem:[#allocation85_spill] sm:$0xff] }
 0x591   : > { %4673 = vst.msk [vmem:[%s6935_s24 + $0x7d8] sm:$0xff] %vm4427_vm0, %v4306_v0  ;;  %v2377_v0 = vmul.f32 %v8451_v24, %v9163_v9 }
 0x594   : > { %v4310_v10 = vpop.f32.mrb[72].mxu1 }
 0x595   : > { %v4311_v59 = vadd.f32 %v4310_v10, %v2307_v62  ;;  %v4312_v48 = vpop.f32.mrb[73].mxu1  ;;  %v9164_v10 = vld [vmem:[#allocation86_spill] sm:$0xff] }
 0x596   : > { %v4313_v58 = vpop.f32.mrb[74].mxu1 }
 0x597   : > { %4680 = vst.msk [vmem:[%s6935_s24 + $0x810] sm:$0xff] %vm4427_vm0, %v4311_v59  ;;  %v4314_v28 = vadd.f32 %v4313_v58, %v2314_v21  ;;  %v4315_v2 = vpop.f32.mrb[75].mxu1  ;;  %v2384_v59 = vmul.f32 %v8451_v24, %v9164_v10  ;;  %v9165_v58 = vld [vmem:[#allocation87_spill] sm:$0xff]  ;;  %v9170_v10 = vld [vmem:[#allocation93_spill] sm:$0xff] }
 0x599   : > { %4687 = vst.msk [vmem:[%s6935_s24 + $0x848] sm:$0xff] %vm4427_vm0, %v4314_v28  ;;  %v2391_v28 = vmul.f32 %v8451_v24, %v9165_v58 }
 0x59c   : > { %v4318_v52 = vpop.f32.mrb[76].mxu1 }
 0x59d   : > { %v4319_v32 = vadd.f32 %v4318_v52, %v2321_v5  ;;  %v4320_v7 = vpop.f32.mrb[77].mxu1  ;;  %v9166_v52 = vld [vmem:[#allocation88_spill] sm:$0xff] }
 0x59e   : > { %v4321_v53 = vpop.f32.mrb[78].mxu1 }
 0x59f   : > { %4694 = vst.msk [vmem:[%s6935_s24 + $0x880] sm:$0xff] %vm4427_vm0, %v4319_v32  ;;  %v4322_v11 = vadd.f32 %v4321_v53, %v2328_v29  ;;  %v4323_v14 = vpop.f32.mrb[79].mxu1  ;;  %v2398_v32 = vmul.f32 %v8451_v24, %v9166_v52  ;;  %v9167_v53 = vld [vmem:[#allocation89_spill] sm:$0xff] }
 0x5a1   : > { %4701 = vst.msk [vmem:[%s6935_s24 + $0x8b8] sm:$0xff] %vm4427_vm0, %v4322_v11  ;;  %v2405_v11 = vmul.f32 %v8451_v24, %v9167_v53 }
 0x5a4   : > { %v4326_v6 = vpop.f32.mrb[80].mxu1 }
 0x5a5   : > { %v4327_v1 = vadd.f32 %v4326_v6, %v2335_v50  ;;  %v4328_v54 = vpop.f32.mrb[81].mxu1  ;;  %v9168_v6 = vld [vmem:[#allocation90_spill] sm:$0xff] }
 0x5a6   : > { %v4329_v19 = vpop.f32.mrb[82].mxu1 }
 0x5a7   : > { %4708 = vst.msk [vmem:[%s6935_s24 + $0x8f0] sm:$0xff] %vm4427_vm0, %v4327_v1  ;;  %v4330_v36 = vadd.f32 %v4329_v19, %v2342_v35  ;;  %v4331_v8 = vpop.f32.mrb[83].mxu1  ;;  %v2412_v1 = vmul.f32 %v8451_v24, %v9168_v6  ;;  %v2419_v19 = vmul.f32 %v8451_v24, %v9128_v31 }
 0x5a9   : > { %4715 = vst.msk [vmem:[%s6935_s24 + $0x928] sm:$0xff] %vm4427_vm0, %v4330_v36 }
 0x5ac   : > { %v4334_v3 = vpop.f32.mrb[84].mxu1 }
 0x5ad   : > { %v4335_v12 = vadd.f32 %v4334_v3, %v2349_v60  ;;  %v4336_v4 = vpop.f32.mrb[85].mxu1  ;;  %v9169_v60 = vld [vmem:[#allocation92_spill] sm:$0xff] }
 0x5ae   : > { %v4337_v23 = vpop.f32.mrb[86].mxu1  ;;  %v2426_v3 = vmul.f32 %v8451_v24, %v9169_v60 }
 0x5af   : > { %4722 = vst.msk [vmem:[%s6935_s24 + $0x960] sm:$0xff] %vm4427_vm0, %v4335_v12  ;;  %v4338_v41 = vadd.f32 %v4337_v23, %v2356_v39  ;;  %v4339_v42 = vpop.f32.mrb[87].mxu1  ;;  %v2433_v39 = vmul.f32 %v8451_v24, %v7778_v20 }
 0x5b0   : > { %v2440_v42 = vmul.f32 %v8451_v24, %v7788_v56 }
 0x5b1   : > { %4729 = vst.msk [vmem:[%s6935_s24 + $0x998] sm:$0xff] %vm4427_vm0, %v4338_v41 }
 0x5b4   : > { %v4342_v51 = vpop.f32.mrb[88].mxu1 }
 0x5b5   : > { %v4343_v44 = vadd.f32 %v4342_v51, %v2363_v63  ;;  %v4344_v40 = vpop.f32.mrb[89].mxu1 }
 0x5b6   : > { %v4345_v57 = vpop.f32.mrb[90].mxu1 }
 0x5b7   : > { %4736 = vst.msk [vmem:[%s6935_s24 + $0x9d0] sm:$0xff] %vm4427_vm0, %v4343_v44  ;;  %v4346_v13 = vadd.f32 %v4345_v57, %v2370_v26  ;;  %v4347_v18 = vpop.f32.mrb[91].mxu1  ;;  %v2447_v44 = vmul.f32 %v8451_v24, %v7808_v49  ;;  %v2454_v26 = vmul.f32 %v8451_v24, %v7818_v17 }
 0x5b8   : > { %v2461_v18 = vmul.f32 %v8451_v24, %v7838_v34 }
 0x5b9   : > { %4743 = vst.msk [vmem:[%s6935_s24 + $0xa08] sm:$0xff] %vm4427_vm0, %v4346_v13 }
 0x5bc   : > { %v4350_v46 = vpop.f32.mrb[92].mxu1 }
 0x5bd   : > { %v4351_v33 = vadd.f32 %v4350_v46, %v2377_v0  ;;  %v4352_v62 = vpop.f32.mrb[93].mxu1  ;;  %v2468_v46 = vmul.f32 %v8451_v24, %v7848_v55 }
 0x5be   : > { %v4353_v48 = vpop.f32.mrb[94].mxu1 }
 0x5bf   : > { %4750 = vst.msk [vmem:[%s6935_s24 + $0xa40] sm:$0xff] %vm4427_vm0, %v4351_v33  ;;  %v4354_v15 = vadd.f32 %v4353_v48, %v2384_v59  ;;  %v4355_v21 = vpop.f32.mrb[95].mxu1  ;;  %v2475_v59 = vmul.f32 %v8451_v24, %v9170_v10 }
 0x5c0   : > { %v2482_v21 = vmul.f32 %v8451_v24, %v7878_v27 }
 0x5c1   : > { %4757 = vst.msk [vmem:[%s6935_s24 + $0xa78] sm:$0xff] %vm4427_vm0, %v4354_v15 }
 0x5c4   : > { %v4358_v2 = vpop.f32.mrb[96].mxu1 }
 0x5c5   : > { %v4359_v22 = vadd.f32 %v4358_v2, %v2391_v28  ;;  %v4360_v5 = vpop.f32.mrb[97].mxu1  ;;  %v2489_v2 = vmul.f32 %v8451_v24, %v7898_v25 }
 0x5c6   : > { %v4361_v7 = vpop.f32.mrb[98].mxu1 }
 0x5c7   : > { %4764 = vst.msk [vmem:[%s6935_s24 + $0xab0] sm:$0xff] %vm4427_vm0, %v4359_v22  ;;  %v4362_v45 = vadd.f32 %v4361_v7, %v2398_v32  ;;  %v4363_v29 = vpop.f32.mrb[99].mxu1  ;;  %v2496_v32 = vmul.f32 %v8451_v24, %v7908_v47 }
 0x5c9   : > { %4771 = vst.msk [vmem:[%s6935_s24 + $0xae8] sm:$0xff] %vm4427_vm0, %v4362_v45 }
 0x5cc   : > { %v4366_v14 = vpop.f32.mrb[100].mxu1 }
 0x5cd   : > { %v4367_v38 = vadd.f32 %v4366_v14, %v2405_v11  ;;  %v4368_v50 = vpop.f32.mrb[101].mxu1 }
 0x5ce   : > { %v4369_v54 = vpop.f32.mrb[102].mxu1 }
 0x5cf   : > { %4778 = vst.msk [vmem:[%s6935_s24 + $0xb20] sm:$0xff] %vm4427_vm0, %v4367_v38  ;;  %v4370_v61 = vadd.f32 %v4369_v54, %v2412_v1  ;;  %v4371_v35 = vpop.f32.mrb[103].mxu1 }
 0x5d1   : > { %4785 = vst.msk [vmem:[%s6935_s24 + $0xb58] sm:$0xff] %vm4427_vm0, %v4370_v61 }
 0x5d4   : > { %v4374_v36 = vpop.f32.mrb[104].mxu1 }
 0x5d5   : > { %v4375_v8 = vadd.f32 %v4374_v36, %v2419_v19  ;;  %v4376_v16 = vpop.f32.mrb[105].mxu1 }
 0x5d6   : > { %v4377_v12 = vpop.f32.mrb[106].mxu1 }
 0x5d7   : > { %4792 = vst.msk [vmem:[%s6935_s24 + $0xb90] sm:$0xff] %vm4427_vm0, %v4375_v8  ;;  %v4378_v4 = vadd.f32 %v4377_v12, %v2426_v3  ;;  %v4379_v37 = vpop.f32.mrb[107].mxu1 }
 0x5d9   : > { %4799 = vst.msk [vmem:[%s6935_s24 + $0xbc8] sm:$0xff] %vm4427_vm0, %v4378_v4 }
 0x5dc   : > { %v4382_v31 = vpop.f32.mrb[108].mxu1 }
 0x5dd   : > { %v4383_v23 = vadd.f32 %v4382_v31, %v2433_v39  ;;  %v4384_v41 = vpop.f32.mrb[109].mxu1 }
 0x5de   : > { %v4385_v43 = vpop.f32.mrb[110].mxu1 }
 0x5df   : > { %4806 = vst.msk [vmem:[%s6935_s24 + $0xc00] sm:$0xff] %vm4427_vm0, %v4383_v23  ;;  %v4386_v63 = vadd.f32 %v4385_v43, %v2440_v42  ;;  %v4387_v51 = vpop.f32.mrb[111].mxu1 }
 0x5e1   : > { %4813 = vst.msk [vmem:[%s6935_s24 + $0xc38] sm:$0xff] %vm4427_vm0, %v4386_v63 }
 0x5e4   : > { %v4390_v20 = vpop.f32.mrb[112].mxu1 }
 0x5e5   : > { %v4391_v40 = vadd.f32 %v4390_v20, %v2447_v44  ;;  %v4392_v30 = vpop.f32.mrb[113].mxu1 }
 0x5e6   : > { %v4393_v57 = vpop.f32.mrb[114].mxu1 }
 0x5e7   : > { %4820 = vst.msk [vmem:[%s6935_s24 + $0xc70] sm:$0xff] %vm4427_vm0, %v4391_v40  ;;  %v4394_v56 = vadd.f32 %v4393_v57, %v2454_v26  ;;  %v4395_v13 = vpop.f32.mrb[115].mxu1 }
 0x5e9   : > { %4827 = vst.msk [vmem:[%s6935_s24 + $0xca8] sm:$0xff] %vm4427_vm0, %v4394_v56 }
 0x5ec   : > { %v4398_v49 = vpop.f32.mrb[116].mxu1 }
 0x5ed   : > { %v4399_v9 = vadd.f32 %v4398_v49, %v2461_v18  ;;  %v4400_v0 = vpop.f32.mrb[117].mxu1 }
 0x5ee   : > { %v4401_v33 = vpop.f32.mrb[118].mxu1 }
 0x5ef   : > { %4834 = vst.msk [vmem:[%s6935_s24 + $0xce0] sm:$0xff] %vm4427_vm0, %v4399_v9  ;;  %v4402_v17 = vadd.f32 %v4401_v33, %v2468_v46  ;;  %v4403_v62 = vpop.f32.mrb[119].mxu1 }
 0x5f1   : > { %4841 = vst.msk [vmem:[%s6935_s24 + $0xd18] sm:$0xff] %vm4427_vm0, %v4402_v17 }
 0x5f4   : > { %v4406_v34 = vpop.f32.mrb[120].mxu1 }
 0x5f5   : > { %v4407_v48 = vadd.f32 %v4406_v34, %v2475_v59  ;;  %v4408_v15 = vpop.f32.mrb[121].mxu1 }
 0x5f6   : > { %v4409_v58 = vpop.f32.mrb[122].mxu1 }
 0x5f7   : > { %4848 = vst.msk [vmem:[%s6935_s24 + $0xd50] sm:$0xff] %vm4427_vm0, %v4407_v48  ;;  %v4410_v55 = vadd.f32 %v4409_v58, %v2482_v21  ;;  %v4411_v28 = vpop.f32.mrb[123].mxu1 }
 0x5f9   : > { %4855 = vst.msk [vmem:[%s6935_s24 + $0xd88] sm:$0xff] %vm4427_vm0, %v4410_v55 }
 0x5fc   : > { %v4414_v22 = vpop.f32.mrb[124].mxu1 }
 0x5fd   : > { %v4415_v5 = vadd.f32 %v4414_v22, %v2489_v2  ;;  %v4416_v52 = vpop.f32.mrb[125].mxu1 }
 0x5fe   : > { %v4417_v7 = vpop.f32.mrb[126].mxu1 }
 0x5ff   : > { %4862 = vst.msk [vmem:[%s6935_s24 + $0xdc0] sm:$0xff] %vm4427_vm0, %v4415_v5  ;;  %v4418_v27 = vadd.f32 %v4417_v7, %v2496_v32  ;;  %v4419_v45 = vpop.f32.mrb[127].mxu1 }
 0x601   : > { %4869 = vst.msk [vmem:[%s6935_s24 + $0xdf8] sm:$0xff] %vm4427_vm0, %v4418_v27 }
 0x602 PF: > { %s15_s20 = sadd.s32 1, %s5451_s20   ;;  %s9171_s18 = smov %s5447_s19 }
 0x603   : > { %p12_p5 = scmp.ge.s32.totalorder %s15_s20, 4   ;;  %s9172_s19 = smov %s9174_s21 }
 0x605   :  { %14 = sbr.rel (!%p12_p5) target bundleno = 2 (0x2), region = 76 }

</bundles_post_ra>
